<compile_context>
chip_gen: v5e
topology: v5e:2x2
jax: 0.10.0
libtpu: 0.0.40
codegen_flags: <defaults>
</compile_context>

<pallas_src>
import functools

import jax
import jax.numpy as jnp
from jax import lax
from jax.experimental import pallas as pl
from jax.experimental.pallas import tpu as pltpu

# A @ B^T : contract the last dims of both operands.
_NT_DIMS = (((1,), (1,)), ((), ()))
_LANE = 128


def _encoder_kernel(items_ref, rknap_ref, wstack_ref, wbig_ref, out_ref,
                    *, n_valid: int):
    f32 = jnp.float32
    n_pad, nd = items_ref.shape                   # [N_pad, 1+D]
    E = wstack_ref.shape[-1]                      # embed_dim
    seg = wbig_ref.shape[-1] // 3                 # lane-aligned segment width

    row = lambda i: wstack_ref[i:i + 1, :]        # [1, E] single-row ref load

    items = items_ref[...]                        # [N_pad, 1+D]
    value = items[:, 0:1]                         # [N_pad, 1]
    weight = items[:, 1:]                         # [N_pad, D]

    # ---- __input_transform (1/knapsack precomputed host-side) --------------
    util = weight * rknap_ref[...]                # [N_pad, D]
    meanutil = jnp.mean(util, axis=-1, keepdims=True)
    maxutil = jnp.max(util, axis=-1, keepdims=True)
    minutil = jnp.min(util, axis=-1, keepdims=True)
    r_mean = pl.reciprocal(meanutil, approx=False)
    r_max = pl.reciprocal(maxutil, approx=False)
    r_min = pl.reciprocal(minutil, approx=False)
    ext = (meanutil, maxutil, minutil,
           value * r_mean, value * r_max, value * r_min,
           meanutil * r_max, meanutil * r_min, maxutil * r_min)

    # ---- item_embedding MLP -------------------------------------------------
    # pre = concat([items, ext...]) @ w_emb + b_emb; the 9 extra columns are
    # folded in as rank-1 VPU updates accumulated in 3 independent partials.
    pre = jnp.dot(items, wstack_ref[0:nd, :], preferred_element_type=f32)
    acc0 = ext[0] * row(nd + 0) + ext[3] * row(nd + 3) + ext[6] * row(nd + 6)
    acc1 = ext[1] * row(nd + 1) + ext[4] * row(nd + 4) + ext[7] * row(nd + 7)
    acc2 = ext[2] * row(nd + 2) + ext[5] * row(nd + 5) + ext[8] * row(nd + 8)
    pre = pre + row(nd + 9) + (acc0 + (acc1 + acc2))      # + b_emb
    ei_raw = jnp.maximum(pre, 0.0)                        # un-normalized Ei

    # ---- fused attention-key projections, Ei scale deferred past the MXU ----
    k12_raw = jnp.dot(ei_raw, wbig_ref[:, 0:2 * seg],
                      preferred_element_type=f32)         # [N_pad, 2*seg]
    span = (jnp.max(ei_raw) - jnp.min(ei_raw)).reshape(1, 1)
    r_scale = pl.reciprocal(span, approx=True)            # 1 / (max - min)

    q1 = row(nd + 10)      # precomputed lp @ Wq1 + bq1
    q2b = row(nd + 11)     # precomputed lp @ Wq2[:E] + bq2
    v1r = row(nd + 12)     # v1^T  [1, E]
    v2r = row(nd + 13)     # v2^T  [1, E]

    # ---- att_to_item: softmax pooling on VPU/XLU ----------------------------
    k1 = k12_raw[:, 0:E] * r_scale                        # lane-aligned slice
    m1 = jnp.tanh(q1 + k1)                                # [N_pad, E]
    s1 = jnp.sum(m1 * v1r, axis=-1, keepdims=True)        # [N_pad, 1]
    e1 = jnp.exp(s1 - jnp.max(s1))
    if n_valid < n_pad:                                   # mask padded rows
        mask = lax.broadcasted_iota(jnp.int32, (n_pad, 1), 0) < n_valid
        e1 = jnp.where(mask, e1, 0.0)
    inv_denom = pl.reciprocal(jnp.sum(e1).reshape(1, 1), approx=True)
    # softmax denominator + deferred Ei scale folded into gi
    gi = (r_scale * inv_denom) * jnp.sum(e1 * ei_raw, axis=0, keepdims=True)

    # ---- global_item_attention: lane-dense [1, N_pad] output ---------------
    q2 = jnp.dot(gi, wbig_ref[:, 2 * seg:2 * seg + E],
                 preferred_element_type=f32) + q2b        # [1, E]
    k2 = k12_raw[:, seg:seg + E] * r_scale                # lane-aligned slice
    m2 = jnp.tanh(q2 + k2)                                # [N_pad, E]
    logits = lax.dot_general(v2r, m2, _NT_DIMS,
                             preferred_element_type=f32)  # [1, N_pad]
    out_ref[...] = logits.astype(out_ref.dtype)


def prepare_params(params, embed_dim):
    """One-time packing of the module parameters for the kernel."""
    E = embed_dim
    q1 = params["lp"] @ params["wq1"] + params["bq1"]                 # [1, E]
    q2_base = params["lp"] @ params["wq2"][:E, :] + params["bq2"]     # [1, E]
    wstack = jnp.concatenate(
        [params["w_emb"],         # rows 0 .. D+9   (item_embedding weight)
         params["b_emb"],         # row  D+10
         q1,                      # row  D+11
         q2_base,                 # row  D+12
         params["v1"].T,          # row  D+13
         params["v2"].T],         # row  D+14
        axis=0).astype(jnp.float32)                                   # [1+D+14, E]
    # Lane-aligned fused weights: each block starts on a 128-lane boundary so
    # the split of the fused MXU result needs no lane relayout.
    seg = max(_LANE, ((E + _LANE - 1) // _LANE) * _LANE)
    wbig = jnp.zeros((E, 3 * seg), jnp.float32)
    wbig = wbig.at[:, 0:E].set(params["wr1"])
    wbig = wbig.at[:, seg:seg + E].set(params["wr2"])
    wbig = wbig.at[:, 2 * seg:2 * seg + E].set(params["wq2"][E:, :])
    return dict(wstack=wstack, wbig=wbig)


def encoder_distilation_forward(items, knapsacks, packed):
    """Batched forward.

    items:     [B, N, 1+D]
    knapsacks: [B, 1, D]
    returns:   item_logits [B, N]   (row b == item_logits.view(1, -1) for b)
    """
    B, N, nd = items.shape
    D = nd - 1
    n_pad = ((N + _LANE - 1) // _LANE) * _LANE            # lane-dense output
    if n_pad != N:
        # Pad with copies of item 0: duplicates leave max/min/softmax-max
        # unchanged and are masked out of the softmax sum inside the kernel.
        pad = jnp.broadcast_to(items[:, :1, :], (B, n_pad - N, nd))
        items_p = jnp.concatenate([items, pad], axis=1)
    else:
        items_p = items
    rknap = (1.0 / knapsacks).astype(jnp.float32)         # [B, 1, D]

    kernel = functools.partial(_encoder_kernel, n_valid=N)
    out = pl.pallas_call(
        kernel,
        out_shape=jax.ShapeDtypeStruct((B, 1, n_pad), jnp.float32),
        grid=(B,),
        in_specs=[
            pl.BlockSpec((None, n_pad, nd), lambda b: (b, 0, 0)),
            pl.BlockSpec((None, 1, D), lambda b: (b, 0, 0)),
            pl.BlockSpec(packed["wstack"].shape, lambda b: (0, 0)),
            pl.BlockSpec(packed["wbig"].shape, lambda b: (0, 0)),
        ],
        out_specs=pl.BlockSpec((None, 1, n_pad), lambda b: (b, 0, 0)),
        compiler_params=pltpu.CompilerParams(
            dimension_semantics=("parallel",)),
    )(items_p, rknap, packed["wstack"], packed["wbig"])
    return out.reshape(B, n_pad)[:, :N]


def init_params(key, dimension, embed_dim):
    """Deterministic parameter init matching the module's __init__ shapes."""
    D, E = dimension, embed_dim
    ks = jax.random.split(key, 13)

    def lin(kw, kb, fan_in, fan_out, bias=True):
        bound = 1.0 / float(fan_in) ** 0.5
        w = jax.random.uniform(kw, (fan_in, fan_out), jnp.float32, -bound, bound)
        b = (jax.random.uniform(kb, (1, fan_out), jnp.float32, -bound, bound)
             if bias else None)
        return w, b

    w_emb, b_emb = lin(ks[0], ks[1], D + 10, E)        # item_embedding MLP
    wq1, bq1 = lin(ks[2], ks[3], E, E)                 # att_to_item W_query
    wr1, _ = lin(ks[4], ks[5], E, E, bias=False)       # att_to_item W_ref
    v1 = 1e-4 * jax.random.normal(ks[6], (E, 1), jnp.float32)
    wq2, bq2 = lin(ks[7], ks[8], 2 * E, E)             # global_item_attention W_query
    wr2, _ = lin(ks[9], ks[10], E, E, bias=False)      # global_item_attention W_ref
    v2 = 1e-4 * jax.random.normal(ks[11], (E, 1), jnp.float32)
    lp = 1e-4 * jax.random.normal(ks[12], (1, E), jnp.float32)  # learnable_parameter
    return dict(w_emb=w_emb, b_emb=b_emb, wq1=wq1, bq1=bq1, wr1=wr1, v1=v1,
                wq2=wq2, bq2=bq2, wr2=wr2, v2=v2, lp=lp)


def reference_forward(items, knapsacks, p):
    """Pure-JAX single-instance reference mirroring the PyTorch forward."""
    value = items[:, 0:1]
    weight = items[:, 1:]
    util = weight / knapsacks
    meanutil = jnp.mean(util, -1, keepdims=True)
    maxutil = jnp.max(util, -1, keepdims=True)
    minutil = jnp.min(util, -1, keepdims=True)
    feats = jnp.concatenate(
        [items, meanutil, maxutil, minutil,
         value / meanutil, value / maxutil, value / minutil,
         meanutil / maxutil, meanutil / minutil, maxutil / minutil], axis=-1)
    ei = jax.nn.relu(feats @ p["w_emb"] + p["b_emb"])
    ei = ei / (jnp.max(ei) - jnp.min(ei))
    q1 = p["lp"] @ p["wq1"] + p["bq1"]
    m1 = jnp.tanh(q1 + ei @ p["wr1"])
    att = jax.nn.softmax(m1 @ p["v1"], axis=0)          # [N, 1]
    gi = att.reshape(1, -1) @ ei                         # [1, E]
    gv = jnp.concatenate([p["lp"], gi], axis=-1)         # [1, 2E]
    q2 = gv @ p["wq2"] + p["bq2"]
    m2 = jnp.tanh(q2 + ei @ p["wr2"])
    return (m2 @ p["v2"]).reshape(1, -1)                 # [1, N]


if __name__ == "__main__":
    dimension, embed_dim, num_items, batch = 6, 32, 16, 4
    key = jax.random.PRNGKey(0)
    k_items, k_knap, k_params = jax.random.split(key, 3)

    # items: [B, N, 1 + D] (value column + D positive weights), knapsack: [B, 1, D]
    items = jax.random.uniform(k_items, (batch, num_items, 1 + dimension),
                               jnp.float32, minval=0.1, maxval=1.0)
    knapsacks = jax.random.uniform(k_knap, (batch, 1, dimension),
                                   jnp.float32, minval=0.5, maxval=1.5)
    params = init_params(k_params, dimension, embed_dim)
    packed = prepare_params(params, embed_dim)           # one-time packing

    fwd = jax.jit(encoder_distilation_forward)
    out = fwd(items, knapsacks, packed)
    jax.block_until_ready(out)

    ref = jax.vmap(lambda it, kn: reference_forward(it, kn, params))(
        items, knapsacks).reshape(batch, num_items)
    assert out.shape == (batch, num_items), out.shape
    assert jnp.allclose(out, ref, atol=1e-5, rtol=1e-4), (out, ref)
    print("KERNEL_OK")
</pallas_src>

<mosaic_0001>
module attributes {stable_mosaic.version = 11 : i64} {
  func.func @_encoder_kernel(%arg0: i32, %arg1: memref<1x128x7xf32, #tpu.memory_space<vmem>>, %arg2: memref<1x1x6xf32, #tpu.memory_space<vmem>>, %arg3: memref<21x32xf32, #tpu.memory_space<vmem>>, %arg4: memref<32x384xf32, #tpu.memory_space<vmem>>, %arg5: memref<1x1x128xf32, #tpu.memory_space<vmem>>) attributes {dimension_semantics = [#tpu.dimension_semantics<parallel>], iteration_bounds = array<i64: 4>, scalar_prefetch = 0 : i64, scratch_operands = 0 : i64, tpu.core_type = #tpu.core_type<tc>, window_params = [{transform_indices = @transform_0, window_bounds = array<i64: 1, 128, 7>}, {transform_indices = @transform_1, window_bounds = array<i64: 1, 1, 6>}, {pipeline_mode = #tpu.pipeline_mode<synchronous>, transform_indices = @transform_2, window_bounds = array<i64: 21, 32>}, {pipeline_mode = #tpu.pipeline_mode<synchronous>, transform_indices = @transform_3, window_bounds = array<i64: 32, 384>}, {transform_indices = @transform_4, window_bounds = array<i64: 1, 1, 128>}]} {
    %c0 = arith.constant 0 : index
    %c0_0 = arith.constant 0 : index
    %c0_1 = arith.constant 0 : index
    %0 = vector.load %arg1[%c0, %c0_0, %c0_1] : memref<1x128x7xf32, #tpu.memory_space<vmem>>, vector<1x128x7xf32>
    %1 = vector.shape_cast %0 : vector<1x128x7xf32> to vector<128x7xf32>
    %2 = vector.extract_strided_slice %1 {offsets = [0, 0], sizes = [128, 1], strides = [1, 1]} : vector<128x7xf32> to vector<128x1xf32>
    %3 = vector.extract_strided_slice %1 {offsets = [0, 1], sizes = [128, 6], strides = [1, 1]} : vector<128x7xf32> to vector<128x6xf32>
    %c0_2 = arith.constant 0 : index
    %c0_3 = arith.constant 0 : index
    %c0_4 = arith.constant 0 : index
    %4 = vector.load %arg2[%c0_2, %c0_3, %c0_4] : memref<1x1x6xf32, #tpu.memory_space<vmem>>, vector<1x1x6xf32>
    %5 = vector.shape_cast %4 : vector<1x1x6xf32> to vector<1x6xf32>
    %6 = vector.broadcast %5 : vector<1x6xf32> to vector<128x6xf32>
    %7 = arith.mulf %3, %6 : vector<128x6xf32>
    %cst = arith.constant dense<0.000000e+00> : vector<128xf32>
    %8 = vector.multi_reduction <add>, %7, %cst [1] : vector<128x6xf32> to vector<128xf32>
    %9 = vector.shape_cast %8 : vector<128xf32> to vector<128x1xf32>
    %cst_5 = arith.constant 6.000000e+00 : f32
    %10 = vector.broadcast %cst_5 : f32 to vector<128x1xf32>
    %11 = arith.divf %9, %10 : vector<128x1xf32>
    %cst_6 = arith.constant dense<0xFF800000> : vector<128xf32>
    %12 = vector.multi_reduction <maximumf>, %7, %cst_6 [1] : vector<128x6xf32> to vector<128xf32>
    %13 = vector.shape_cast %12 : vector<128xf32> to vector<128x1xf32>
    %cst_7 = arith.constant dense<0x7F800000> : vector<128xf32>
    %14 = vector.multi_reduction <minimumf>, %7, %cst_7 [1] : vector<128x6xf32> to vector<128xf32>
    %15 = vector.shape_cast %14 : vector<128xf32> to vector<128x1xf32>
    %16 = tpu.reciprocal %11 : vector<128x1xf32> -> vector<128x1xf32>
    %17 = tpu.reciprocal %13 : vector<128x1xf32> -> vector<128x1xf32>
    %18 = tpu.reciprocal %15 : vector<128x1xf32> -> vector<128x1xf32>
    %19 = arith.mulf %2, %16 : vector<128x1xf32>
    %20 = arith.mulf %2, %17 : vector<128x1xf32>
    %21 = arith.mulf %2, %18 : vector<128x1xf32>
    %22 = arith.mulf %11, %17 : vector<128x1xf32>
    %23 = arith.mulf %11, %18 : vector<128x1xf32>
    %24 = arith.mulf %13, %18 : vector<128x1xf32>
    %c0_8 = arith.constant 0 : index
    %c0_9 = arith.constant 0 : index
    %25 = vector.load %arg3[%c0_8, %c0_9] : memref<21x32xf32, #tpu.memory_space<vmem>>, vector<7x32xf32>
    %cst_10 = arith.constant dense<0.000000e+00> : vector<128x32xf32>
    %26 = tpu.matmul %1, %25, %cst_10 {dimension_numbers = #tpu.dot_dimension_numbers<[1], [0], [0], [1], [0, 0, 1, 1], [], []>} : vector<128x7xf32>, vector<7x32xf32>, vector<128x32xf32> -> vector<128x32xf32>
    %c7 = arith.constant 7 : index
    %c0_11 = arith.constant 0 : index
    %27 = vector.load %arg3[%c7, %c0_11] : memref<21x32xf32, #tpu.memory_space<vmem>>, vector<1x32xf32>
    %28 = vector.broadcast %11 : vector<128x1xf32> to vector<128x32xf32>
    %29 = vector.broadcast %27 : vector<1x32xf32> to vector<128x32xf32>
    %30 = arith.mulf %28, %29 : vector<128x32xf32>
    %c10 = arith.constant 10 : index
    %c0_12 = arith.constant 0 : index
    %31 = vector.load %arg3[%c10, %c0_12] : memref<21x32xf32, #tpu.memory_space<vmem>>, vector<1x32xf32>
    %32 = vector.broadcast %19 : vector<128x1xf32> to vector<128x32xf32>
    %33 = vector.broadcast %31 : vector<1x32xf32> to vector<128x32xf32>
    %34 = arith.mulf %32, %33 : vector<128x32xf32>
    %35 = arith.addf %30, %34 : vector<128x32xf32>
    %c13 = arith.constant 13 : index
    %c0_13 = arith.constant 0 : index
    %36 = vector.load %arg3[%c13, %c0_13] : memref<21x32xf32, #tpu.memory_space<vmem>>, vector<1x32xf32>
    %37 = vector.broadcast %22 : vector<128x1xf32> to vector<128x32xf32>
    %38 = vector.broadcast %36 : vector<1x32xf32> to vector<128x32xf32>
    %39 = arith.mulf %37, %38 : vector<128x32xf32>
    %40 = arith.addf %35, %39 : vector<128x32xf32>
    %c8 = arith.constant 8 : index
    %c0_14 = arith.constant 0 : index
    %41 = vector.load %arg3[%c8, %c0_14] : memref<21x32xf32, #tpu.memory_space<vmem>>, vector<1x32xf32>
    %42 = vector.broadcast %13 : vector<128x1xf32> to vector<128x32xf32>
    %43 = vector.broadcast %41 : vector<1x32xf32> to vector<128x32xf32>
    %44 = arith.mulf %42, %43 : vector<128x32xf32>
    %c11 = arith.constant 11 : index
    %c0_15 = arith.constant 0 : index
    %45 = vector.load %arg3[%c11, %c0_15] : memref<21x32xf32, #tpu.memory_space<vmem>>, vector<1x32xf32>
    %46 = vector.broadcast %20 : vector<128x1xf32> to vector<128x32xf32>
    %47 = vector.broadcast %45 : vector<1x32xf32> to vector<128x32xf32>
    %48 = arith.mulf %46, %47 : vector<128x32xf32>
    %49 = arith.addf %44, %48 : vector<128x32xf32>
    %c14 = arith.constant 14 : index
    %c0_16 = arith.constant 0 : index
    %50 = vector.load %arg3[%c14, %c0_16] : memref<21x32xf32, #tpu.memory_space<vmem>>, vector<1x32xf32>
    %51 = vector.broadcast %23 : vector<128x1xf32> to vector<128x32xf32>
    %52 = vector.broadcast %50 : vector<1x32xf32> to vector<128x32xf32>
    %53 = arith.mulf %51, %52 : vector<128x32xf32>
    %54 = arith.addf %49, %53 : vector<128x32xf32>
    %c9 = arith.constant 9 : index
    %c0_17 = arith.constant 0 : index
    %55 = vector.load %arg3[%c9, %c0_17] : memref<21x32xf32, #tpu.memory_space<vmem>>, vector<1x32xf32>
    %56 = vector.broadcast %15 : vector<128x1xf32> to vector<128x32xf32>
    %57 = vector.broadcast %55 : vector<1x32xf32> to vector<128x32xf32>
    %58 = arith.mulf %56, %57 : vector<128x32xf32>
    %c12 = arith.constant 12 : index
    %c0_18 = arith.constant 0 : index
    %59 = vector.load %arg3[%c12, %c0_18] : memref<21x32xf32, #tpu.memory_space<vmem>>, vector<1x32xf32>
    %60 = vector.broadcast %21 : vector<128x1xf32> to vector<128x32xf32>
    %61 = vector.broadcast %59 : vector<1x32xf32> to vector<128x32xf32>
    %62 = arith.mulf %60, %61 : vector<128x32xf32>
    %63 = arith.addf %58, %62 : vector<128x32xf32>
    %c15 = arith.constant 15 : index
    %c0_19 = arith.constant 0 : index
    %64 = vector.load %arg3[%c15, %c0_19] : memref<21x32xf32, #tpu.memory_space<vmem>>, vector<1x32xf32>
    %65 = vector.broadcast %24 : vector<128x1xf32> to vector<128x32xf32>
    %66 = vector.broadcast %64 : vector<1x32xf32> to vector<128x32xf32>
    %67 = arith.mulf %65, %66 : vector<128x32xf32>
    %68 = arith.addf %63, %67 : vector<128x32xf32>
    %c16 = arith.constant 16 : index
    %c0_20 = arith.constant 0 : index
    %69 = vector.load %arg3[%c16, %c0_20] : memref<21x32xf32, #tpu.memory_space<vmem>>, vector<1x32xf32>
    %70 = vector.broadcast %69 : vector<1x32xf32> to vector<128x32xf32>
    %71 = arith.addf %26, %70 : vector<128x32xf32>
    %72 = arith.addf %54, %68 : vector<128x32xf32>
    %73 = arith.addf %40, %72 : vector<128x32xf32>
    %74 = arith.addf %71, %73 : vector<128x32xf32>
    %cst_21 = arith.constant 0.000000e+00 : f32
    %75 = vector.broadcast %cst_21 : f32 to vector<128x32xf32>
    %76 = arith.maximumf %74, %75 : vector<128x32xf32>
    %c0_22 = arith.constant 0 : index
    %c0_23 = arith.constant 0 : index
    %77 = vector.load %arg4[%c0_22, %c0_23] : memref<32x384xf32, #tpu.memory_space<vmem>>, vector<32x256xf32>
    %cst_24 = arith.constant dense<0.000000e+00> : vector<128x256xf32>
    %78 = tpu.matmul %76, %77, %cst_24 {dimension_numbers = #tpu.dot_dimension_numbers<[1], [0], [0], [1], [0, 0, 1, 1], [], []>} : vector<128x32xf32>, vector<32x256xf32>, vector<128x256xf32> -> vector<128x256xf32>
    %79 = vector.shape_cast %76 : vector<128x32xf32> to vector<1x128x32xf32>
    %cst_25 = arith.constant dense<0xFF800000> : vector<1xf32>
    %80 = vector.multi_reduction <maximumf>, %79, %cst_25 [1, 2] : vector<1x128x32xf32> to vector<1xf32>
    %81 = vector.shape_cast %80 : vector<1xf32> to vector<1x1x1xf32>
    %82 = vector.extract %81[0, 0, 0] : f32 from vector<1x1x1xf32>
    %83 = vector.shape_cast %76 : vector<128x32xf32> to vector<1x128x32xf32>
    %cst_26 = arith.constant dense<0x7F800000> : vector<1xf32>
    %84 = vector.multi_reduction <minimumf>, %83, %cst_26 [1, 2] : vector<1x128x32xf32> to vector<1xf32>
    %85 = vector.shape_cast %84 : vector<1xf32> to vector<1x1x1xf32>
    %86 = vector.extract %85[0, 0, 0] : f32 from vector<1x1x1xf32>
    %87 = arith.subf %82, %86 : f32
    %88 = vector.broadcast %87 : f32 to vector<1x1xf32>
    %89 = tpu.reciprocal %88 {approx = true} : vector<1x1xf32> -> vector<1x1xf32>
    %c17 = arith.constant 17 : index
    %c0_27 = arith.constant 0 : index
    %90 = vector.load %arg3[%c17, %c0_27] : memref<21x32xf32, #tpu.memory_space<vmem>>, vector<1x32xf32>
    %c18 = arith.constant 18 : index
    %c0_28 = arith.constant 0 : index
    %91 = vector.load %arg3[%c18, %c0_28] : memref<21x32xf32, #tpu.memory_space<vmem>>, vector<1x32xf32>
    %c19 = arith.constant 19 : index
    %c0_29 = arith.constant 0 : index
    %92 = vector.load %arg3[%c19, %c0_29] : memref<21x32xf32, #tpu.memory_space<vmem>>, vector<1x32xf32>
    %c20 = arith.constant 20 : index
    %c0_30 = arith.constant 0 : index
    %93 = vector.load %arg3[%c20, %c0_30] : memref<21x32xf32, #tpu.memory_space<vmem>>, vector<1x32xf32>
    %94 = vector.extract_strided_slice %78 {offsets = [0, 0], sizes = [128, 32], strides = [1, 1]} : vector<128x256xf32> to vector<128x32xf32>
    %95 = vector.broadcast %89 : vector<1x1xf32> to vector<128x32xf32>
    %96 = arith.mulf %94, %95 : vector<128x32xf32>
    %97 = vector.broadcast %90 : vector<1x32xf32> to vector<128x32xf32>
    %98 = arith.addf %97, %96 : vector<128x32xf32>
    %99 = math.tanh %98 : vector<128x32xf32>
    %100 = vector.broadcast %92 : vector<1x32xf32> to vector<128x32xf32>
    %101 = arith.mulf %99, %100 : vector<128x32xf32>
    %cst_31 = arith.constant dense<0.000000e+00> : vector<128xf32>
    %102 = vector.multi_reduction <add>, %101, %cst_31 [1] : vector<128x32xf32> to vector<128xf32>
    %103 = vector.shape_cast %102 : vector<128xf32> to vector<128x1xf32>
    %104 = vector.shape_cast %103 : vector<128x1xf32> to vector<1x128x1xf32>
    %cst_32 = arith.constant dense<0xFF800000> : vector<1xf32>
    %105 = vector.multi_reduction <maximumf>, %104, %cst_32 [1, 2] : vector<1x128x1xf32> to vector<1xf32>
    %106 = vector.shape_cast %105 : vector<1xf32> to vector<1x1x1xf32>
    %107 = vector.extract %106[0, 0, 0] : f32 from vector<1x1x1xf32>
    %108 = vector.broadcast %107 : f32 to vector<128x1xf32>
    %109 = arith.subf %103, %108 : vector<128x1xf32>
    %110 = math.exp %109 : vector<128x1xf32>
    %111 = tpu.iota {dimensions = array<i32: 0>} : vector<128x1xi32>
    %c16_i32 = arith.constant 16 : i32
    %112 = vector.broadcast %c16_i32 : i32 to vector<128x1xi32>
    %113 = arith.cmpi slt, %111, %112 : vector<128x1xi32>
    %cst_33 = arith.constant 0.000000e+00 : f32
    %114 = vector.broadcast %cst_33 : f32 to vector<128x1xf32>
    %115 = arith.select %113, %110, %114 : vector<128x1xi1>, vector<128x1xf32>
    %116 = vector.shape_cast %115 : vector<128x1xf32> to vector<1x128x1xf32>
    %cst_34 = arith.constant dense<0.000000e+00> : vector<1xf32>
    %117 = vector.multi_reduction <add>, %116, %cst_34 [1, 2] : vector<1x128x1xf32> to vector<1xf32>
    %118 = vector.shape_cast %117 : vector<1xf32> to vector<1x1x1xf32>
    %119 = vector.extract %118[0, 0, 0] : f32 from vector<1x1x1xf32>
    %120 = vector.broadcast %119 : f32 to vector<1x1xf32>
    %121 = tpu.reciprocal %120 {approx = true} : vector<1x1xf32> -> vector<1x1xf32>
    %122 = arith.mulf %89, %121 : vector<1x1xf32>
    %123 = vector.broadcast %115 : vector<128x1xf32> to vector<128x32xf32>
    %124 = arith.mulf %123, %76 : vector<128x32xf32>
    %cst_35 = arith.constant dense<0.000000e+00> : vector<32xf32>
    %125 = vector.multi_reduction <add>, %124, %cst_35 [0] : vector<128x32xf32> to vector<32xf32>
    %126 = vector.shape_cast %125 : vector<32xf32> to vector<1x32xf32>
    %127 = vector.broadcast %122 : vector<1x1xf32> to vector<1x32xf32>
    %128 = arith.mulf %127, %126 : vector<1x32xf32>
    %c0_36 = arith.constant 0 : index
    %c256 = arith.constant 256 : index
    %129 = vector.load %arg4[%c0_36, %c256] : memref<32x384xf32, #tpu.memory_space<vmem>>, vector<32x32xf32>
    %cst_37 = arith.constant dense<0.000000e+00> : vector<1x32xf32>
    %130 = tpu.matmul %128, %129, %cst_37 {dimension_numbers = #tpu.dot_dimension_numbers<[1], [0], [0], [1], [0, 0, 1, 1], [], []>} : vector<1x32xf32>, vector<32x32xf32>, vector<1x32xf32> -> vector<1x32xf32>
    %131 = arith.addf %130, %91 : vector<1x32xf32>
    %132 = vector.extract_strided_slice %78 {offsets = [0, 128], sizes = [128, 32], strides = [1, 1]} : vector<128x256xf32> to vector<128x32xf32>
    %133 = vector.broadcast %89 : vector<1x1xf32> to vector<128x32xf32>
    %134 = arith.mulf %132, %133 : vector<128x32xf32>
    %135 = vector.broadcast %131 : vector<1x32xf32> to vector<128x32xf32>
    %136 = arith.addf %135, %134 : vector<128x32xf32>
    %137 = math.tanh %136 : vector<128x32xf32>
    %cst_38 = arith.constant dense<0.000000e+00> : vector<1x128xf32>
    %138 = tpu.matmul %93, %137, %cst_38 {dimension_numbers = #tpu.dot_dimension_numbers<[1], [1], [0], [0], [0, 0, 1, 0], [], []>} : vector<1x32xf32>, vector<128x32xf32>, vector<1x128xf32> -> vector<1x128xf32>
    %c0_39 = arith.constant 0 : index
    %c0_40 = arith.constant 0 : index
    %c0_41 = arith.constant 0 : index
    %139 = vector.load %arg5[%c0_39, %c0_40, %c0_41] : memref<1x1x128xf32, #tpu.memory_space<vmem>>, vector<1x1x128xf32>
    %140 = vector.shape_cast %139 : vector<1x1x128xf32> to vector<1x128xf32>
    %141 = vector.shape_cast %138 : vector<1x128xf32> to vector<1x1x128xf32>
    tpu.vector_store %arg5[%c0_39, %c0_40, %c0_41], %141 {strides = array<i32>} : memref<1x1x128xf32, #tpu.memory_space<vmem>>, vector<1x1x128xf32>,
    return
  }
  func.func @transform_0(%arg0: i32) -> (i32, i32, i32) {
    %c0_i32 = arith.constant 0 : i32
    %c0_i32_0 = arith.constant 0 : i32
    %c0_i32_1 = arith.constant 0 : i32
    return %arg0, %c0_i32, %c0_i32_0 : i32, i32, i32
  }
  func.func @transform_1(%arg0: i32) -> (i32, i32, i32) {
    %c0_i32 = arith.constant 0 : i32
    %c0_i32_0 = arith.constant 0 : i32
    %c0_i32_1 = arith.constant 0 : i32
    return %arg0, %c0_i32, %c0_i32_0 : i32, i32, i32
  }
  func.func @transform_2(%arg0: i32) -> (i32, i32) {
    %c0_i32 = arith.constant 0 : i32
    %c0_i32_0 = arith.constant 0 : i32
    %c0_i32_1 = arith.constant 0 : i32
    return %c0_i32, %c0_i32_0 : i32, i32
  }
  func.func @transform_3(%arg0: i32) -> (i32, i32) {
    %c0_i32 = arith.constant 0 : i32
    %c0_i32_0 = arith.constant 0 : i32
    %c0_i32_1 = arith.constant 0 : i32
    return %c0_i32, %c0_i32_0 : i32, i32
  }
  func.func @transform_4(%arg0: i32) -> (i32, i32, i32) {
    %c0_i32 = arith.constant 0 : i32
    %c0_i32_0 = arith.constant 0 : i32
    %c0_i32_1 = arith.constant 0 : i32
    return %arg0, %c0_i32, %c0_i32_0 : i32, i32, i32
  }
}

</mosaic_0001>

<bundles_post_ra>
// kernel: encoder_distilation_forward.1
= control target key start
LH: loop header
LB: loop body
LE: loop exit
PB: predicated region body
PF: predicated region fallthrough
CT: control target
= control target key end

     0   :  { %9 = vsyncpa [#allocation3], 0  ;;  %s5908_s0 = inlined_call_operand.vmem [shape: f32[4,128,7], index: 0, kind: input, shape index: {}]   ;;  %s5909_s1 = inlined_call_operand.vmem [shape: f32[4,1,6], index: 1, kind: input, shape index: {}]   ;;  %s5910_s2 = inlined_call_operand.vmem [shape: f32[21,32], index: 2, kind: input, shape index: {}]   ;;  %s5911_s3 = inlined_call_operand.vmem [shape: f32[32,384], index: 3, kind: input, shape index: {}]   ;;  %s5912_s4 = inlined_call_operand.hbm [shape: f32[4,1,128], index: 4, kind: output, shape index: {}]  }
   0x1   :  { %11 = vsyncpa [#allocation3 + $0x1], 0  ;;  %s3200_s15 = smov 0   ;;  %s3202_s16 = smov 0  }
   0x2   :  { %s3204_s17 = smov 0   ;;  %s3206_s18 = smov 0  }
   0x3 LB: > { %s3221_s19 = sadd.s32 4294967295, %s3169_s18   ;;  %s2762_s20 = sadd.s32 4294967294, %s3169_s18   ;;  %s3169_s18 = sphi %s3206_s18, %s6260_s18   ;;  %s3165_s17 = sphi %s3204_s17, %s6259_s17   ;;  %s3161_s16 = sphi %s3202_s16, %s6258_s16   ;;  %s3157_s15 = sphi %s3200_s15, %s6257_s15  }
   0x4   : > { %s3225_s21 = sadd.s32 1, %s3169_s18   ;;  %s118_s22 = sadd.s32 1, %s3165_s17 }
   0x5   : > { %s115_s23 = ssub.s32 %s3169_s18, %s3225_s21  ;;  %p128_p0 = scmp.ne.s32.totalorder %s3165_s17, %s3161_s16 }
   0x6   : > { %p116_p1 = scmp.eq.s32.totalorder %s115_s23, 0  ;;  %p129_p2 = scmp.eq.s32.totalorder %s3221_s19, 3 }
   0x7   : > { %p134_p3 = scmp.ne.s32.totalorder %s3161_s16, %s3157_s15  ;;  %p135_p4 = scmp.eq.s32.totalorder %s2762_s20, 3 }
   0x8   : > { %s3236_s24 = scalar_select %p116_p1, %s3165_s17, %s118_s22  }
   0x9   : > { %p3238_p5 = por %p129_p2, %p128_p0  ;;  %p3242_p6 = por %p135_p4, %p134_p3 }
   0xa   : > { %p2765_p7 = scmp.ge.s32.totalorder %s3169_s18, 1  ;;  %p173_p8 = scmp.lt.s32.totalorder %s3169_s18, 5 }
   0xc   : > { %p174_p9 = pnand %p2765_p7, %p173_p8 }
   0xe   : > { %177 = sbr.rel (%p174_p9) target bundleno = 1715 (0x6b3), region = 36 }
  0x13   : > { %p201_p10 = scmp.lt.s32.totalorder %s3221_s19, 3  ;;  %s3171_s5 = smov 1   ;;  %vm383_vm0 = vcmask 56328   ;;  %vm311_vm1 = vcmask 48128   ;;  %vm1798_vm6 = vcmask 1046528   ;;  %vm1749_vm9 = vcmask 56320  }
  0x14   : > { %s3172_s10 = smov 127  }
  0x15   : > { %s202_s27 = scalar_select %p201_p10, %s3221_s19, 3 }
  0x17   : > { %s208_s30 = scalar_lea.vmem %s5909_s1, %s202_s27  ;;  %s2837_s6 = sshll.u32 %s202_s27, 7 }
  0x18   : > { %v2901_v0 = vld [vmem:[%s208_s30] ss:$0 sm:$0xff]  ;;  %s3256_s9 = scalar_lea.vmem %s5908_s0, %s2837_s6  ;;  %s199_s6 = sand.u32 1, %s3161_s16  }
  0x19   : > { %228 = vrot.lane.b32.xlu0 %v2901_v0, %s3171_s5  ;;  %v3259_v1 = vld [vmem:[%s3256_s9 + $0x18] sm:$0xff]  ;;  %v3262_v2 = vld [vmem:[%s3256_s9 + $0x8] sm:$0xff]  ;;  %v3265_v3 = vld [vmem:[%s3256_s9] sm:$0xff]  ;;  %s200_s11 = scalar_lea.vmem [#allocation2], %s199_s6  ;;  %s2686_s14 = scalar_lea.sflag [#allocation3], %s199_s6 }
  0x1a   : > { %v3276_v8 = vld [vmem:[%s3256_s9 + $0x28] sm:$0xff]  ;;  %v3279_v9 = vld [vmem:[%s3256_s9 + $0x38] sm:$0xff]  ;;  %v217_v10 = vld [vmem:[%s3256_s9 + $0x40] sm:$0xff]  ;;  %s2696_s12 = sshll.u32 %s200_s11, 4  ;;  %s2697_s12 = int_to_ptr.vmem [resolvable:$true] %s2696_s12 }
  0x1b   : > { %v3291_v14 = vld [vmem:[%s3256_s9 + $0x20] sm:$0xff]  ;;  %v3294_v15 = vld [vmem:[%s3256_s9 + $0x10] sm:$0xff]  ;;  %v218_v36 = vld [vmem:[%s3256_s9 + $0x48] sm:$0xff] }
  0x1c   : > { %v3317_v23 = vld [vmem:[%s3256_s9 + $0x30] sm:$0xff]  ;;  %v220_v37 = vld [vmem:[%s3256_s9 + $0x58] sm:$0xff]  ;;  %v221_v46 = vld [vmem:[%s3256_s9 + $0x60] sm:$0xff] }
  0x1d   : > { %v219_v41 = vld [vmem:[%s3256_s9 + $0x50] sm:$0xff]  ;;  %v3368_v48 = vld [vmem:[%s3256_s9 + $0x78] sm:$0xff] }
  0x1e   : > { %v223_v42 = vld [vmem:[%s3256_s9 + $0x70] sm:$0xff] }
  0x8b   : > { %v3267_v4 = vpop.permute.xlu0 %228 }
  0x8c   : > { %v234_v5 = vmul.f32 %v3267_v4, %v3259_v1  ;;  %v232_v6 = vmul.f32 %v3267_v4, %v3262_v2  ;;  %v231_v7 = vmul.f32 %v3267_v4, %v3265_v3  ;;  %v236_v11 = vmul.f32 %v3267_v4, %v3276_v8 }
  0x8d   : > { %v238_v12 = vmul.f32 %v3267_v4, %v3279_v9  ;;  %v239_v13 = vmul.f32 %v3267_v4, %v217_v10  ;;  %v235_v19 = vmul.f32 %v3267_v4, %v3291_v14  ;;  %v233_v20 = vmul.f32 %v3267_v4, %v3294_v15 }
  0x8e   : > { %269 = vrot.lane.b32.xlu2 %v234_v5, %s3172_s10  ;;  %265 = vrot.lane.b32.xlu1 %v232_v6, %s3172_s10  ;;  %v447_v16 = vsel %vm383_vm0, %v236_v11, inf  ;;  %v237_v24 = vmul.f32 %v3267_v4, %v3317_v23  ;;  %v384_v25 = vsel %vm383_vm0, %v231_v7, -inf  ;;  %v435_v26 = vsel %vm383_vm0, %v232_v6, inf }
  0x8f   : > { %263 = vrot.lane.b32.xlu0 %v231_v7, %s3172_s10  ;;  %v3298_v17 = vsel %vm383_vm0, %v238_v12, -inf  ;;  %v3301_v18 = vsel %vm383_vm0, %v238_v12, inf  ;;  %v3308_v21 = vsel %vm383_vm0, %v239_v13, -inf  ;;  %v3311_v22 = vsel %vm383_vm0, %v239_v13, inf }
  0x90   : > { %v432_v27 = vsel %vm383_vm0, %v231_v7, inf  ;;  %v390_v28 = vsel %vm383_vm0, %v233_v20, -inf  ;;  %v438_v29 = vsel %vm383_vm0, %v233_v20, inf  ;;  %v387_v30 = vsel %vm383_vm0, %v232_v6, -inf }
  0x91   : > { %v441_v31 = vsel %vm383_vm0, %v234_v5, inf  ;;  %v393_v32 = vsel %vm383_vm0, %v234_v5, -inf  ;;  %v396_v33 = vsel %vm383_vm0, %v235_v19, -inf  ;;  %v444_v34 = vsel %vm383_vm0, %v235_v19, inf }
  0x92   : > { %v399_v35 = vsel %vm383_vm0, %v236_v11, -inf  ;;  %v3338_v38 = vmul.f32 %v3267_v4, %v218_v36  ;;  %v3343_v39 = vmul.f32 %v3267_v4, %v220_v37  ;;  %v402_v40 = vsel %vm383_vm0, %v237_v24, -inf }
  0x93   : > { %v3351_v43 = vmul.f32 %v3267_v4, %v219_v41  ;;  %v3356_v44 = vmul.f32 %v3267_v4, %v223_v42  ;;  %v450_v45 = vsel %vm383_vm0, %v237_v24, inf  ;;  %v3363_v47 = vmul.f32 %v3267_v4, %v221_v46 }
  0x94   : > { %v3372_v49 = vmul.f32 %v3267_v4, %v3368_v48  ;;  %v411_v7 = vsel %vm383_vm0, %v3338_v38, -inf  ;;  %v3173_v37 = vmov 0  }
  0x95   : > { %2900 = vset.pattern.permute.xlu2 %v3173_v37  ;;  %2899 = vset.pattern.permute.xlu0 %v3173_v37 }
  0x96   : > { %271 = vrot.lane.b32.xlu2 %v235_v19, %s3172_s10  ;;  %267 = vrot.lane.b32.xlu1 %v233_v20, %s3172_s10 }
  0x97   : > { %273 = vrot.lane.b32.xlu0 %v236_v11, %s3172_s10  ;;  %2898 = vset.pattern.permute.xlu1 %v3173_v37 }
  0x9e   : > { %275 = vrot.lane.b32.xlu2 %v237_v24, %s3172_s10  ;;  %279 = vrot.lane.b32.xlu1 %v239_v13, %s3172_s10  ;;  %v222_v24 = vld [vmem:[%s3256_s9 + $0x68] sm:$0xff] }
  0x9f   : > { %277 = vrot.lane.b32.xlu0 %v238_v12, %s3172_s10 }
  0xc7   : > { %385 = vmax.xlane.f32.xlu2 %v384_v25 }
  0xc8   : > { %436 = vmin.xlane.f32.xlu1 %v435_v26 }
  0xc9   : > { %433 = vmin.xlane.f32.xlu0 %v432_v27 }
  0xcf   : > { %391 = vmax.xlane.f32.xlu2 %v390_v28  ;;  %v3412_v28 = vmul.f32 %v3267_v4, %v222_v24  ;;  %v414_v4 = vsel %vm383_vm0, %v3351_v43, -inf }
  0xd0   : > { %439 = vmin.xlane.f32.xlu1 %v438_v29 }
  0xd1   : > { %388 = vmax.xlane.f32.xlu0 %v387_v30  ;;  %v459_v30 = vsel %vm383_vm0, %v3338_v38, inf  ;;  %v471_v42 = vsel %vm383_vm0, %v3412_v28, inf }
  0xd7   : > { %442 = vmin.xlane.f32.xlu2 %v441_v31 }
  0xd8   : > { %394 = vmax.xlane.f32.xlu1 %v393_v32  ;;  %v417_v32 = vsel %vm383_vm0, %v3343_v39, -inf }
  0xd9   : > { %397 = vmax.xlane.f32.xlu0 %v396_v33 }
  0xe1   : > { %445 = vmin.xlane.f32.xlu0 %v444_v34  ;;  %v420_v34 = vsel %vm383_vm0, %v3363_v47, -inf }
  0xe8   : > { %v270_v50 = vpop.permute.xlu2 %269 }
  0xe9   : > { %400 = vmax.xlane.f32.xlu0 %v399_v35  ;;  %v321_v6 = vsel %vm311_vm1, %v270_v50, 0.0 }
  0xef   : > { %281 = vrot.lane.b32.xlu2 %v3338_v38, %s3172_s10  ;;  %v429_v38 = vsel %vm383_vm0, %v3372_v49, -inf }
  0xf0   : > { %v272_v54 = vpop.permute.xlu2 %271 }
  0xf1   : > { %403 = vmax.xlane.f32.xlu0 %v402_v40  ;;  %285 = vrot.lane.b32.xlu1 %v3343_v39, %s3172_s10  ;;  %v324_v13 = vsel %vm311_vm1, %v272_v54, 0.0 }
  0xf7   : > { %283 = vrot.lane.b32.xlu2 %v3351_v43, %s3172_s10 }
  0xf8   : > { %v276_v58 = vpop.permute.xlu2 %275 }
  0xf9   : > { %451 = vmin.xlane.f32.xlu0 %v450_v45  ;;  %291 = vrot.lane.b32.xlu1 %v3356_v44, %s3172_s10  ;;  %v3174_v45 = vmov 6.0  }
 0x100   : > { %v266_v52 = vpop.permute.xlu1 %265 }
 0x101   : > { %v264_v51 = vpop.permute.xlu0 %263  ;;  %v315_v57 = vsel %vm311_vm1, %v266_v52, 0.0 }
 0x102   : > { %v312_v53 = vsel %vm311_vm1, %v264_v51, 0.0 }
 0x108   : > { %v268_v55 = vpop.permute.xlu1 %267 }
 0x109   : > { %v274_v56 = vpop.permute.xlu0 %273  ;;  %v318_v59 = vsel %vm311_vm1, %v268_v55, 0.0 }
 0x10a   : > { %v327_v0 = vsel %vm311_vm1, %v274_v56, 0.0 }
 0x10d   : > { %287 = vrot.lane.b32.xlu0 %v3363_v47, %s3172_s10 }
 0x110   : > { %v280_v60 = vpop.permute.xlu1 %279 }
 0x111   : > { %v278_v61 = vpop.permute.xlu0 %277  ;;  %v336_v62 = vsel %vm311_vm1, %v280_v60, 0.0 }
 0x112   : > { %v333_v11 = vsel %vm311_vm1, %v278_v61, 0.0 }
 0x115   : > { %293 = vrot.lane.b32.xlu0 %v3372_v49, %s3172_s10 }
 0x120   : > { %448 = vmin.xlane.f32.xlu2 %v447_v16 }
 0x123   : > { %313 = vadd.xlane.f32.xlu1 %v312_v53 }
 0x128   : > { %406 = vmax.xlane.f32.xlu2 %v3298_v17  ;;  %v330_v17 = vsel %vm311_vm1, %v276_v58, 0.0 }
 0x12b   : > { %316 = vadd.xlane.f32.xlu1 %v315_v57 }
 0x130   : > { %454 = vmin.xlane.f32.xlu2 %v3301_v18 }
 0x133   : > { %319 = vadd.xlane.f32.xlu1 %v318_v59 }
 0x138   : > { %337 = vadd.xlane.f32.xlu2 %v336_v62 }
 0x13a   : > { %v3382_v63 = vpop.xlane.xlu2 %385 }
 0x13b   : > { %328 = vadd.xlane.f32.xlu1 %v327_v0  ;;  %v3399_v18 = vpop.xlane.xlu1 %436  ;;  %2914 = vrcp.f32 %v3382_v63  ;;  %vm709_vm3 = vweird.f32 %v3382_v63 }
 0x13c   : > { %v3385_v5 = vpop.xlane.xlu0 %433 }
 0x13f   : > { %322 = vadd.xlane.f32.xlu0 %v321_v6  ;;  %v715_v6 = vand.u32 2147483648, %v3382_v63 }
 0x140   : > { %412 = vmax.xlane.f32.xlu2 %v411_v7  ;;  %v713_v7 = vand.u32 2147483647, %v3382_v63 }
 0x141   : > { %v2915_v41 = vpop.eup %2914 }
 0x142   : > { %v3390_v10 = vpop.xlane.xlu2 %391  ;;  %v705_v46 = vmul.f32 %v2915_v41, %v3382_v63  ;;  %vm710_vm2 = vweird.f32 %v2915_v41  ;;  %vm714_vm5 = vcmp.eq.f32.partialorder %v713_v7, 8.507059e+37 }
 0x143   : > { %6003 = vst [vmem:[#allocation5_spill] sm:$0xff] %v3390_v10  ;;  %334 = vadd.xlane.f32.xlu1 %v333_v11  ;;  %v3407_v25 = vpop.xlane.xlu1 %439  ;;  %vm711_vm4 = vmor %vm709_vm3, %vm710_vm2 }
 0x144   : > { %v3393_v12 = vpop.xlane.xlu0 %388  ;;  %6005 = vst [vmem:[#allocation7_spill] sm:$0xff] %v3407_v25  ;;  %v706_v53 = vsub.f32 1.0, %v705_v46 }
 0x145   : > { %2916 = vrcp.f32 %v3393_v12  ;;  %vm723_vm10 = vweird.f32 %v3393_v12 }
 0x146   : > { %2918 = vrcp.f32 %v3174_v45  ;;  %v707_v56 = vmul.f32 %v2915_v41, %v706_v53 }
 0x147   : > { %325 = vadd.xlane.f32.xlu0 %v324_v13 }
 0x148   : > { %v708_v60 = vadd.f32 %v2915_v41, %v707_v56 }
 0x14a   : > { %v3396_v16 = vpop.xlane.xlu2 %442  ;;  %v712_v11 = vsel %vm711_vm4, %v2915_v41, %v708_v60  ;;  %vm933_vm4 = vweird.f32 %v3385_v5 }
 0x14b   : > { %v3441_v51 = vpop.eup %2916 }
 0x14c   : > { %v3401_v19 = vpop.xlane.xlu0 %397  ;;  %v2919_v54 = vpop.eup %2918  ;;  %v719_v55 = vmul.f32 %v3441_v51, %v3393_v12  ;;  %vm724_vm7 = vweird.f32 %v3441_v51 }
 0x14d   : > { %6004 = vst [vmem:[#allocation6_spill] sm:$0xff] %v3401_v19  ;;  %v361_v57 = vmul.f32 6.0, %v2919_v54  ;;  %vm365_vm8 = vweird.f32 %v2919_v54  ;;  %vm725_vm11 = vmor %vm723_vm10, %vm724_vm7 }
 0x14e   : > { %v720_v62 = vsub.f32 1.0, %v719_v55 }
 0x14f   : > { %331 = vadd.xlane.f32.xlu0 %v330_v17  ;;  %v362_v61 = vsub.f32 1.0, %v361_v57  ;;  %v423_v57 = vsel %vm383_vm0, %v3412_v28, -inf }
 0x150   : > { %v721_v17 = vmul.f32 %v3441_v51, %v720_v62 }
 0x151   : > { %v363_v13 = vmul.f32 %v2919_v54, %v362_v61 }
 0x152   : > { %v3403_v20 = vpop.permute.xlu2 %281 }
 0x153   : > { %v339_v24 = vsel %vm311_vm1, %v3403_v20, 0.0  ;;  %v722_v20 = vadd.f32 %v3441_v51, %v721_v17 }
 0x154   : > { %v3409_v26 = vpop.xlane.xlu0 %445 }
 0x155   : > { %6006 = vst [vmem:[#allocation8_spill] sm:$0xff] %v3409_v26  ;;  %v726_v45 = vsel %vm725_vm11, %v3441_v51, %v722_v20  ;;  %v3542_v20 = vsel %vm383_vm0, %v3356_v44, -inf }
 0x157   : > { %409 = vmax.xlane.f32.xlu0 %v3308_v21  ;;  %v3419_v21 = vpop.xlane.xlu1 %394 }
 0x158   : > { %2920 = vrcp.f32 %v3419_v21  ;;  %vm751_vm14 = vweird.f32 %v3419_v21  ;;  %v755_v61 = vand.u32 2147483647, %v3419_v21 }
 0x159   : > { %2922 = vrcp.f32 %v3385_v5 }
 0x15a   : > { %v284_v27 = vpop.permute.xlu2 %283  ;;  %2924 = vrcp.f32 %v3399_v18  ;;  %vm756_vm2 = vcmp.eq.f32.partialorder %v755_v61, 8.507059e+37  ;;  %v3582_v61 = vsel %vm383_vm0, %v3356_v44, inf }
 0x15b   : > { %v342_v29 = vsel %vm311_vm1, %v284_v27, 0.0  ;;  %v716_v27 = vor.u32 1.1754944e-38, %v715_v6 }
 0x15c   : > { %289 = vrot.lane.b32.xlu1 %v3412_v28, %s3172_s10  ;;  %343 = vadd.xlane.f32.xlu2 %v342_v29  ;;  %v3421_v31 = vpop.xlane.xlu0 %400 }
 0x15d   : > { %6007 = vst [vmem:[#allocation9_spill] sm:$0xff] %v3421_v31 }
 0x15e   : > { %v3449_v0 = vpop.eup %2920 }
 0x15f   : > { %460 = vmin.xlane.f32.xlu0 %v459_v30  ;;  %v477_v30 = vsel %vm383_vm0, %v3372_v49, inf  ;;  %v729_v49 = vand.u32 2147483648, %v3393_v12  ;;  %vm752_vm13 = vweird.f32 %v3449_v0 }
 0x160   : > { %vm753_vm15 = vmor %vm751_vm14, %vm752_vm13 }
 0x161   : > { %v730_v53 = vor.u32 1.1754944e-38, %v729_v49 }
 0x163   : > { %v286_v33 = vpop.permute.xlu1 %285 }
 0x164   : > { %418 = vmax.xlane.f32.xlu2 %v417_v32  ;;  %v3429_v35 = vpop.xlane.xlu0 %403  ;;  %v345_v36 = vsel %vm311_vm1, %v286_v33, 0.0  ;;  %v3465_v32 = vsel %vm714_vm5, %v716_v27, %v712_v11  ;;  %v364_v33 = vadd.f32 %v2919_v54, %v363_v13 }
 0x165   : > { %6008 = vst [vmem:[#allocation10_spill] sm:$0xff] %v3429_v35  ;;  %v1168_v37 = vmul.f32 %v3465_v32, %v3265_v3 }
 0x167   : > { %415 = vmax.xlane.f32.xlu0 %v414_v4  ;;  %v1248_v4 = vld [vmem:[%s5910_s2] sm:$0x7f] }
 0x168   : > { %2768 = vmatpush.msk.msra.mxu0 %vm1798_vm6, %v1248_v4  ;;  %2838 = vmatpush.msk.msra.mxu3 %vm1798_vm6, %v1248_v4 }
 0x169   : > { %2769 = vmatmul.msk.f32.vlgmr.msra.gmra.mxu0 %vm1749_vm9, %v3265_v3  ;;  %2784 = vmatmul.msk.f32.vlgmr.msra.gmra.mxu3 %vm1749_vm9, %v3368_v48  ;;  %v462_v48 = vsel %vm383_vm0, %v3351_v43, inf }
 0x16b   : > { %v3460_v29 = vpop.permute.xlu1 %291 }
 0x16c   : > { %421 = vmax.xlane.f32.xlu2 %v420_v34  ;;  %v3435_v40 = vpop.xlane.xlu0 %451 }
 0x16d   : > { %6009 = vst [vmem:[#allocation11_spill] sm:$0xff] %v3435_v40 }
 0x16f   : > { %346 = vadd.xlane.f32.xlu0 %v345_v36  ;;  %v3472_v36 = vpop.eup %2922 }
 0x170   : > { %vm934_vm3 = vweird.f32 %v3472_v36 }
 0x171   : > { %2770 = vmatmul.msk.f32.gmra.mxu0 %vm1749_vm9, %v3262_v2  ;;  %vm3555_vm5 = vmor %vm933_vm4, %vm934_vm3  ;;  %vm961_vm4 = vweird.f32 %v3407_v25 }
 0x174   : > { %430 = vmax.xlane.f32.xlu2 %v429_v38  ;;  %v727_v38 = vand.u32 2147483647, %v3393_v12 }
 0x176   : > { %vm728_vm12 = vcmp.eq.f32.partialorder %v727_v38, 8.507059e+37  ;;  %v951_v38 = vand.u32 2147483647, %v3399_v18 }
 0x178   : > { %vm3596_vm10 = vcmp.eq.f32.partialorder %v951_v38, 8.507059e+37 }
 0x179   : > { %2771 = vmatmul.msk.f32.gmra.mxu0 %vm1749_vm9, %v3294_v15 }
 0x17c   : > { %472 = vmin.xlane.f32.xlu2 %v471_v42  ;;  %v3487_v42 = vsel %vm365_vm8, %v2919_v54, %v364_v33  ;;  %v3500_v54 = vsel %vm728_vm12, %v730_v53, %v726_v45  ;;  %v939_v33 = vand.u32 2147483648, %v3385_v5  ;;  %v3565_v53 = vld [vmem:[%s5910_s2 + $0x8] ss:$0 sm:$0xff]  ;;  %vm947_vm8 = vweird.f32 %v3399_v18 }
 0x17d   : > { %6011 = vst [vmem:[#allocation13_spill] sm:$0xff] %v3500_v54  ;;  %v1169_v60 = vmul.f32 %v3500_v54, %v3262_v2 }
 0x17f   : > { %v288_v50 = vpop.permute.xlu0 %287 }
 0x180   : > { %v348_v52 = vsel %vm311_vm1, %v288_v50, 0.0  ;;  %v3491_v50 = vpop.eup %2924 }
 0x181   : > { %349 = vadd.xlane.f32.xlu0 %v348_v52  ;;  %v929_v52 = vmul.f32 %v3472_v36, %v3385_v5  ;;  %v943_v51 = vmul.f32 %v3491_v50, %v3399_v18  ;;  %vm948_vm6 = vweird.f32 %v3491_v50  ;;  %2772 = vmatmul.msk.f32.gmra.mxu0 %vm1749_vm9, %v3259_v1 }
 0x183   : > { %v930_v43 = vsub.f32 1.0, %v929_v52  ;;  %v944_v62 = vsub.f32 1.0, %v943_v51 }
 0x185   : > { %v931_v7 = vmul.f32 %v3472_v36, %v930_v43  ;;  %v945_v27 = vmul.f32 %v3491_v50, %v944_v62 }
 0x186   : > { %457 = vmin.xlane.f32.xlu1 %v3311_v22  ;;  %v747_v22 = vmul.f32 %v3449_v0, %v3419_v21 }
 0x187   : > { %v294_v58 = vpop.permute.xlu0 %293  ;;  %v946_v52 = vadd.f32 %v3491_v50, %v945_v27 }
 0x188   : > { %v357_v59 = vsel %vm311_vm1, %v294_v58, 0.0  ;;  %v748_v34 = vsub.f32 1.0, %v747_v22  ;;  %v465_v22 = vsel %vm383_vm0, %v3343_v39, inf }
 0x189   : > { %358 = vadd.xlane.f32.xlu0 %v357_v59  ;;  %v757_v59 = vand.u32 2147483648, %v3419_v21  ;;  %2773 = vmatmul.msk.f32.gmra.mxu0 %vm1749_vm9, %v3291_v14 }
 0x18a   : > { %v749_v46 = vmul.f32 %v3449_v0, %v748_v34 }
 0x18b   : > { %v758_v11 = vor.u32 1.1754944e-38, %v757_v59 }
 0x18c   : > { %v750_v58 = vadd.f32 %v3449_v0, %v749_v46 }
 0x18e   : > { %340 = vadd.xlane.f32.xlu1 %v339_v24  ;;  %v754_v6 = vsel %vm753_vm15, %v3449_v0, %v750_v58  ;;  %vm975_vm15 = vweird.f32 %v3396_v16 }
 0x18f   : > { %v3526_v24 = vsel %vm756_vm2, %v758_v11, %v754_v6  ;;  %v3611_v11 = vmul.f32 %v3565_v53, %v3382_v63 }
 0x190   : > { %6013 = vst [vmem:[#allocation15_spill] sm:$0xff] %v3526_v24  ;;  %v1171_v4 = vmul.f32 %v3526_v24, %v3259_v1 }
 0x191   : > { %478 = vmin.xlane.f32.xlu0 %v477_v30  ;;  %v932_v30 = vadd.f32 %v3472_v36, %v931_v7  ;;  %6020 = vst [vmem:[#allocation16_spill] sm:$0xff] %v3611_v11  ;;  %2774 = vmatmul.msk.f32.gmra.mxu0 %vm1749_vm9, %v3276_v8 }
 0x193   : > { %v3483_v41 = vpop.xlane.xlu2 %448  ;;  %v936_v51 = vsel %vm3555_vm5, %v3472_v36, %v932_v30  ;;  %v3591_v36 = vld [vmem:[%s5910_s2 + $0x9] ss:$0 sm:$0xff] }
 0x194   : > { %6010 = vst [vmem:[#allocation12_spill] sm:$0xff] %v3483_v41  ;;  %1436 = vperm.xlu2 %2900, %v1168_v37   ;;  %v937_v37 = vand.u32 2147483647, %v3385_v5  ;;  %v3633_v38 = vmul.f32 %v3591_v36, %v3399_v18 }
 0x196   : > { %v314_v55 = vpop.xlane.xlu1 %313  ;;  %463 = vmin.xlane.f32.xlu1 %v462_v48  ;;  %v953_v48 = vand.u32 2147483648, %v3399_v18  ;;  %vm938_vm7 = vcmp.eq.f32.partialorder %v937_v37, 8.507059e+37  ;;  %v3629_v37 = vmul.f32 %v3591_v36, %v3385_v5  ;;  %6022 = vst [vmem:[#allocation18_spill] sm:$0xff] %v3633_v38  ;;  %v769_v18 = vand.u32 2147483647, %v3401_v19 }
 0x197   : > { %v3498_v56 = vmul.f32 %v3487_v42, %v314_v55  ;;  %v354_v55 = vsel %vm311_vm1, %v3460_v29, 0.0  ;;  %v3586_v29 = vsel %vm383_vm0, %v3363_v47, inf  ;;  %vm3604_vm0 = vmor %vm947_vm8, %vm948_vm6  ;;  %v967_v47 = vand.u32 2147483648, %v3407_v25 }
 0x198   : > { %v954_v7 = vor.u32 1.1754944e-38, %v953_v48  ;;  %v950_v30 = vsel %vm3604_vm0, %v3491_v50, %v946_v52  ;;  %6021 = vst [vmem:[#allocation17_spill] sm:$0xff] %v3629_v37 }
 0x199   : > { %2926 = vrcp.f32 %v3498_v56  ;;  %424 = vmax.xlane.f32.xlu0 %v423_v57  ;;  %vm485_vm12 = vweird.f32 %v3498_v56  ;;  %v489_v52 = vand.u32 2147483647, %v3498_v56  ;;  %2775 = vmatmul.msk.f32.gmra.mxu0 %vm1749_vm9, %v3317_v23 }
 0x19a   : > { %v3647_v5 = vsel %vm3596_vm10, %v954_v7, %v950_v30  ;;  %vm737_vm10 = vweird.f32 %v3390_v10 }
 0x19b   : > { %v3516_v28 = vpop.xlane.xlu2 %406  ;;  %vm490_vm14 = vcmp.eq.f32.partialorder %v489_v52, 8.507059e+37 }
 0x19c   : > { %6012 = vst [vmem:[#allocation14_spill] sm:$0xff] %v3516_v28  ;;  %1441 = vperm.xlu2 %2900, %v1169_v60   ;;  %2928 = vrcp.f32 %v3516_v28  ;;  %v940_v60 = vor.u32 1.1754944e-38, %v939_v33  ;;  %v491_v33 = vand.u32 2147483648, %v3498_v56  ;;  %vm807_vm8 = vweird.f32 %v3516_v28 }
 0x19d   : > { %2930 = vrcp.f32 %v3407_v25 }
 0x19e   : > { %v317_v13 = vpop.xlane.xlu1 %316  ;;  %466 = vmin.xlane.f32.xlu1 %v465_v22  ;;  %2932 = vrcp.f32 %v3396_v16  ;;  %v3600_v44 = vsel %vm938_vm7, %v940_v60, %v936_v51  ;;  %v743_v22 = vand.u32 2147483648, %v3390_v10  ;;  %vm765_vm7 = vweird.f32 %v3401_v19 }
 0x19f   : > { %v3524_v17 = vpop.eup %2926  ;;  %v3531_v0 = vmul.f32 %v3487_v42, %v317_v13  ;;  %2934 = vrcp.f32 %v3390_v10  ;;  %v1184_v50 = vmul.f32 %v3600_v44, %v3265_v3 }
 0x1a0   : > { %v481_v39 = vmul.f32 %v3524_v17, %v3498_v56  ;;  %vm486_vm11 = vweird.f32 %v3524_v17  ;;  %v3650_v51 = vor.u32 1.1754944e-38, %v743_v22 }
 0x1a1   : > { %2936 = vrcp.f32 %v3531_v0  ;;  %vm3641_vm13 = vmor %vm485_vm12, %vm486_vm11  ;;  %2776 = vmatmul.msk.f32.gmra.mxu0 %vm1749_vm9, %v3279_v9 }
 0x1a2   : > { %v482_v34 = vsub.f32 1.0, %v481_v39  ;;  %v3546_v49 = vpop.eup %2928  ;;  %2938 = vrcp.f32 %v3401_v19 }
 0x1a3   : > { %v3552_v45 = vpop.eup %2930  ;;  %v803_v43 = vmul.f32 %v3546_v49, %v3516_v28  ;;  %2940 = vrcp.f32 %v3409_v26  ;;  %vm808_vm3 = vweird.f32 %v3546_v49 }
 0x1a4   : > { %1451 = vperm.xlu2 %2900, %v1171_v4   ;;  %v483_v57 = vmul.f32 %v3524_v17, %v482_v34  ;;  %v3574_v58 = vpop.eup %2932  ;;  %v957_v62 = vmul.f32 %v3552_v45, %v3407_v25  ;;  %2942 = vrcp.f32 %v3483_v41  ;;  %vm3705_vm0 = vmor %vm807_vm8, %vm808_vm3  ;;  %vm962_vm3 = vweird.f32 %v3552_v45 }
 0x1a5   : > { %v3613_v13 = vpop.eup %2934  ;;  %v971_v27 = vmul.f32 %v3574_v58, %v3396_v16  ;;  %v804_v34 = vsub.f32 1.0, %v803_v43  ;;  %vm976_vm2 = vweird.f32 %v3574_v58 }
 0x1a6   : > { %v3578_v59 = vpop.xlane.xlu1 %319  ;;  %355 = vadd.xlane.f32.xlu1 %v354_v55  ;;  %v484_v39 = vadd.f32 %v3524_v17, %v483_v57  ;;  %v958_v48 = vsub.f32 1.0, %v957_v62  ;;  %v733_v6 = vmul.f32 %v3613_v13, %v3390_v10  ;;  %v979_v55 = vand.u32 2147483647, %v3396_v16  ;;  %vm3731_vm12 = vmor %vm975_vm15, %vm976_vm2 }
 0x1a7   : > { %v3622_v4 = vpop.eup %2936  ;;  %v972_v43 = vsub.f32 1.0, %v971_v27  ;;  %v492_v27 = vor.u32 1.1754944e-38, %v491_v33  ;;  %v805_v30 = vmul.f32 %v3546_v49, %v804_v34  ;;  %v981_v57 = vand.u32 2147483648, %v3396_v16 }
 0x1a8   : > { %v3635_v46 = vpop.eup %2938  ;;  %v488_v60 = vsel %vm3641_vm13, %v3524_v17, %v484_v39  ;;  %v495_v62 = vmul.f32 %v3622_v4, %v3531_v0  ;;  %v3668_v17 = vmul.f32 %v3647_v5, %v3262_v2  ;;  %v771_v34 = vand.u32 2147483648, %v3401_v19 }
 0x1a9   : > { %v761_v7 = vmul.f32 %v3635_v46, %v3401_v19  ;;  %v493_v39 = vsel %vm490_vm14, %v492_v27, %v488_v60  ;;  %v806_v38 = vadd.f32 %v3546_v49, %v805_v30  ;;  %v3683_v60 = vpop.xlane.xlu2 %454  ;;  %v734_v27 = vsub.f32 1.0, %v733_v6  ;;  %v3722_v54 = vpop.eup %2940 }
 0x1aa   : > { %v496_v33 = vsub.f32 1.0, %v495_v62  ;;  %6025 = vst [vmem:[#allocation19_spill] sm:$0xff] %v3683_v60  ;;  %v1152_v62 = vmul.f32 %v493_v39, %v3265_v3  ;;  %vm738_vm5 = vweird.f32 %v3613_v13  ;;  %vm3692_vm6 = vcmp.eq.f32.partialorder %v979_v55, 8.507059e+37 }
 0x1ab   : > { %v762_v52 = vsub.f32 1.0, %v761_v7  ;;  %v813_v7 = vand.u32 2147483648, %v3516_v28  ;;  %v982_v39 = vor.u32 1.1754944e-38, %v981_v57  ;;  %vm766_vm11 = vweird.f32 %v3635_v46 }
 0x1ac   : > { %v497_v3 = vmul.f32 %v3622_v4, %v496_v33  ;;  %v810_v57 = vsel %vm3705_vm0, %v3546_v49, %v806_v38  ;;  %v735_v33 = vmul.f32 %v3613_v13, %v734_v27  ;;  %vm3735_vm13 = vcmp.eq.f32.partialorder %v769_v18, 8.507059e+37  ;;  %v3755_v27 = vpop.eup %2942 }
 0x1ad   : > { %1602 = vperm.xlu0 %2899, %v1184_v50   ;;  %v959_v50 = vmul.f32 %v3552_v45, %v958_v48  ;;  %v814_v24 = vor.u32 1.1754944e-38, %v813_v7  ;;  %v3740_v38 = vor.u32 1.1754944e-38, %v967_v47  ;;  %vm500_vm8 = vweird.f32 %v3622_v4 }
 0x1ae   : > { %v329_v22 = vpop.xlane.xlu1 %328  ;;  %427 = vmax.xlane.f32.xlu1 %v3542_v20  ;;  %v973_v20 = vmul.f32 %v3574_v58, %v972_v43  ;;  %v505_v7 = vand.u32 2147483648, %v3531_v0  ;;  %vm499_vm0 = vweird.f32 %v3531_v0  ;;  %v736_v49 = vadd.f32 %v3613_v13, %v735_v33 }
 0x1af   : > { %v3720_v11 = vadd.f32 %v3552_v45, %v959_v50 }
 0x1b0   : > { %v974_v6 = vadd.f32 %v3574_v58, %v973_v20 }
 0x1b2   : > { %v323_v48 = vpop.xlane.xlu0 %322  ;;  %v978_v50 = vsel %vm3731_vm12, %v3574_v58, %v974_v6  ;;  %v6039_v58 = vand.u32 2147483647, %v3407_v25  ;;  %vm3785_vm12 = vmor %vm961_vm4, %vm962_vm3  ;;  %v985_v25 = vmul.f32 %v3722_v54, %v3409_v26 }
 0x1b3   : > { %v3686_v43 = vmul.f32 %v3487_v42, %v323_v48  ;;  %v811_v48 = vand.u32 2147483647, %v3516_v28  ;;  %v763_v28 = vmul.f32 %v3635_v46, %v762_v52  ;;  %v3799_v33 = vsel %vm3692_vm6, %v982_v39, %v978_v50  ;;  %vm3820_vm4 = vmor %vm765_vm7, %vm766_vm11 }
 0x1b4   : > { %vm3765_vm2 = vcmp.eq.f32.partialorder %v6039_v58, 8.507059e+37  ;;  %v964_v58 = vsel %vm3785_vm12, %v3552_v45, %v3720_v11  ;;  %v506_v11 = vor.u32 1.1754944e-38, %v505_v7  ;;  %vm3833_vm6 = vmor %vm737_vm10, %vm738_vm5  ;;  %v3846_v8 = vmul.f32 %v3799_v33, %v3259_v1 }
 0x1b5   : > { %2944 = vrcp.f32 %v3686_v43  ;;  %1270 = vperm.xlu0 %2899, %v1152_v62   ;;  %v772_v62 = vor.u32 1.1754944e-38, %v771_v34  ;;  %vm812_vm14 = vcmp.eq.f32.partialorder %v811_v48, 8.507059e+37  ;;  %v6035_v34 = vand.u32 2147483647, %v3390_v10 }
 0x1b6   : > { %v335_v37 = vpop.xlane.xlu1 %334  ;;  %475 = vmin.xlane.f32.xlu1 %v3582_v61  ;;  %v3725_v61 = vmul.f32 %v3487_v42, %v329_v22  ;;  %v498_v22 = vadd.f32 %v3622_v4, %v497_v3  ;;  %v3753_v52 = vsel %vm812_vm14, %v814_v24, %v810_v57  ;;  %v764_v48 = vadd.f32 %v3635_v46, %v763_v28  ;;  %vm3792_vm14 = vmor %vm499_vm0, %vm500_vm8 }
 0x1b7   : > { %v3716_v20 = vmul.f32 %v3487_v42, %v335_v37  ;;  %vm3749_vm15 = vcmp.eq.f32.partialorder %v6035_v34, 8.507059e+37  ;;  %v3773_v24 = vmul.f32 %v3565_v53, %v3393_v12  ;;  %v503_v57 = vand.u32 2147483647, %v3531_v0 }
 0x1b8   : > { %6030 = vst [vmem:[#allocation20_spill] sm:$0xff] %v3725_v61  ;;  %2946 = vrcp.f32 %v3725_v61  ;;  %v502_v30 = vsel %vm3792_vm14, %v3622_v4, %v498_v22  ;;  %v533_v22 = vand.u32 2147483648, %v3686_v43  ;;  %vm527_vm5 = vweird.f32 %v3686_v43 }
 0x1b9   : > { %v3761_v3 = vmul.f32 %v3753_v52, %v3716_v20  ;;  %6042 = vst [vmem:[#allocation22_spill] sm:$0xff] %v3773_v24  ;;  %v3809_v24 = vpop.xlane.xlu2 %337  ;;  %vm504_vm7 = vcmp.eq.f32.partialorder %v503_v57, 8.507059e+37  ;;  %v3870_v45 = vsel %vm3765_vm2, %v3740_v38, %v964_v58  ;;  %vm1004_vm8 = vweird.f32 %v3755_v27 }
 0x1ba   : > { %v326_v47 = vpop.xlane.xlu0 %325  ;;  %v507_v50 = vsel %vm504_vm7, %v506_v11, %v502_v30  ;;  %6055 = vst [vmem:[#allocation27_spill] sm:$0xff] %v3870_v45  ;;  %v3892_v4 = vmul.f32 %v3870_v45, %v3294_v15  ;;  %vm1003_vm0 = vweird.f32 %v3483_v41  ;;  %vm1017_vm7 = vweird.f32 %v3435_v40 }
 0x1bb   : > { %6038 = vst [vmem:[#allocation21_spill] sm:$0xff] %v3761_v3  ;;  %v2945_v55 = vpop.eup %2944  ;;  %v3776_v28 = vmul.f32 %v3487_v42, %v326_v47  ;;  %v999_v3 = vmul.f32 %v3755_v27, %v3483_v41  ;;  %vm3926_vm14 = vmor %vm1003_vm0, %vm1004_vm8 }
 0x1bc   : > { %v523_v47 = vmul.f32 %v2945_v55, %v3686_v43  ;;  %vm528_vm11 = vweird.f32 %v2945_v55 }
 0x1bd   : > { %6043 = vst [vmem:[#allocation23_spill] sm:$0xff] %v3776_v28  ;;  %2948 = vrcp.f32 %v3776_v28  ;;  %1607 = vperm.xlu0 %2899, %v3668_v17   ;;  %v768_v17 = vsel %vm3820_vm4, %v3635_v46, %v764_v48  ;;  %v531_v46 = vand.u32 2147483647, %v3686_v43  ;;  %v1000_v48 = vsub.f32 1.0, %v999_v3  ;;  %vm529_vm10 = vmor %vm527_vm5, %vm528_vm11 }
 0x1be   : > { %2950 = vrcp.f32 %v3421_v31  ;;  %469 = vmin.xlane.f32.xlu1 %v3586_v29  ;;  %v524_v39 = vsub.f32 1.0, %v523_v47  ;;  %v740_v29 = vsel %vm3833_vm6, %v3613_v13, %v736_v49  ;;  %v3850_v57 = vsel %vm3735_vm13, %v772_v62, %v768_v17  ;;  %v3852_v34 = vpop.eup %2946 }
 0x1bf   : > { %2952 = vrcp.f32 %v3683_v60  ;;  %6052 = vst [vmem:[#allocation24_spill] sm:$0xff] %v3850_v57  ;;  %v986_v47 = vsub.f32 1.0, %v985_v25  ;;  %v3858_v30 = vsel %vm3749_vm15, %v3650_v51, %v740_v29  ;;  %v1153_v62 = vmul.f32 %v507_v50, %v3262_v2 }
 0x1c0   : > { %v525_v7 = vmul.f32 %v2945_v55, %v524_v39  ;;  %2954 = vrcp.f32 %v3435_v40  ;;  %6053 = vst [vmem:[#allocation25_spill] sm:$0xff] %v3858_v30  ;;  %v534_v25 = vor.u32 1.1754944e-38, %v533_v22  ;;  %vm532_vm13 = vcmp.eq.f32.partialorder %v531_v46, 8.507059e+37 }
 0x1c1   : > { %v3877_v11 = vmul.f32 %v3850_v57, %v3291_v14  ;;  %v1001_v2 = vmul.f32 %v3755_v27, %v1000_v48  ;;  %v551_v38 = vmul.f32 %v3852_v34, %v3725_v61  ;;  %v3888_v17 = vmul.f32 %v3858_v30, %v3294_v15  ;;  %v3899_v50 = vpop.xlane.xlu2 %412 }
 0x1c2   : > { %v332_v13 = vpop.xlane.xlu0 %331  ;;  %v526_v49 = vadd.f32 %v2945_v55, %v525_v7  ;;  %v3897_v29 = vmul.f32 %v3722_v54, %v986_v47  ;;  %6056 = vst [vmem:[#allocation28_spill] sm:$0xff] %v3899_v50  ;;  %v545_v15 = vand.u32 2147483647, %v3776_v28  ;;  %vm541_vm15 = vweird.f32 %v3776_v28 }
 0x1c3   : > { %v2949_v3 = vpop.eup %2948  ;;  %v3863_v37 = vmul.f32 %v3487_v42, %v332_v13  ;;  %v1002_v47 = vadd.f32 %v3755_v27, %v1001_v2  ;;  %v552_v13 = vsub.f32 1.0, %v551_v38  ;;  %vm555_vm6 = vweird.f32 %v3725_v61 }
 0x1c4   : > { %v3872_v18 = vpop.eup %2950  ;;  %v530_v51 = vsel %vm529_vm10, %v2945_v55, %v526_v49  ;;  %v537_v23 = vmul.f32 %v2949_v3, %v3776_v28  ;;  %vm542_vm3 = vweird.f32 %v2949_v3  ;;  %vm546_vm12 = vcmp.eq.f32.partialorder %v545_v15, 8.507059e+37 }
 0x1c5   : > { %6054 = vst [vmem:[#allocation26_spill] sm:$0xff] %v3863_v37  ;;  %v3879_v39 = vpop.eup %2952  ;;  %2956 = vrcp.f32 %v3863_v37  ;;  %1275 = vperm.xlu0 %2899, %v1153_v62   ;;  %v535_v6 = vsel %vm532_vm13, %v534_v25, %v530_v51  ;;  %v1009_v25 = vand.u32 2147483648, %v3483_v41  ;;  %vm543_vm2 = vmor %vm541_vm15, %vm542_vm3  ;;  %v1006_v15 = vsel %vm3926_vm14, %v3755_v27, %v1002_v47 }
 0x1c6   : > { %v1155_v55 = vmul.f32 %v535_v6, %v3259_v1  ;;  %v538_v58 = vsub.f32 1.0, %v537_v23  ;;  %v3894_v22 = vpop.eup %2954  ;;  %2958 = vrcp.f32 %v3716_v20  ;;  %v547_v1 = vand.u32 2147483648, %v3776_v28 }
 0x1c7   : > { %2960 = vrcp.f32 %v3429_v35  ;;  %v1027_v48 = vmul.f32 %v3879_v39, %v3683_v60  ;;  %v1013_v49 = vmul.f32 %v3894_v22, %v3435_v40  ;;  %v3920_v23 = vmul.f32 %v3487_v42, %v3809_v24 }
 0x1c8   : > { %1285 = vperm.xlu2 %2900, %v1155_v55   ;;  %v539_v46 = vmul.f32 %v2949_v3, %v538_v58  ;;  %v548_v2 = vor.u32 1.1754944e-38, %v547_v1  ;;  %v1007_v6 = vand.u32 2147483647, %v3483_v41  ;;  %v1010_v30 = vor.u32 1.1754944e-38, %v1009_v25 }
 0x1c9   : > { %6057 = vst [vmem:[#allocation29_spill] sm:$0xff] %v3920_v23  ;;  %v1028_v1 = vsub.f32 1.0, %v1027_v48  ;;  %v1014_v41 = vsub.f32 1.0, %v1013_v49  ;;  %2962 = vrcp.f32 %v3920_v23  ;;  %v3951_v27 = vmul.f32 %v3565_v53, %v3419_v21 }
 0x1ca   : > { %v540_v62 = vadd.f32 %v2949_v3, %v539_v46  ;;  %v3935_v46 = vpop.xlane.xlu0 %409  ;;  %vm1008_vm4 = vcmp.eq.f32.partialorder %v1007_v6, 8.507059e+37  ;;  %v561_v6 = vand.u32 2147483648, %v3725_v61  ;;  %v3980_v55 = vmul.f32 %v3487_v42, %v3578_v59 }
 0x1cb   : > { %v3916_v51 = vpop.eup %2956  ;;  %6060 = vst [vmem:[#allocation30_spill] sm:$0xff] %v3935_v46  ;;  %v3953_v47 = vsel %vm1008_vm4, %v1010_v30, %v1006_v15  ;;  %v1015_v30 = vmul.f32 %v3894_v22, %v1014_v41  ;;  %v559_v41 = vand.u32 2147483647, %v3725_v61  ;;  %2964 = vrcp.f32 %v3935_v46 }
 0x1cc   : > { %v544_v38 = vsel %vm543_vm2, %v2949_v3, %v540_v62  ;;  %v565_v9 = vmul.f32 %v3916_v51, %v3863_v37  ;;  %v3933_v58 = vpop.eup %2958  ;;  %v553_v62 = vmul.f32 %v3852_v34, %v552_v13  ;;  %6061 = vst [vmem:[#allocation31_spill] sm:$0xff] %v3953_v47  ;;  %vm570_vm5 = vweird.f32 %v3916_v51 }
 0x1cd   : > { %1617 = vperm.xlu0 %2899, %v3846_v8   ;;  %v549_v3 = vsel %vm546_vm12, %v548_v2, %v544_v38  ;;  %v3942_v7 = vpop.eup %2960  ;;  %v579_v13 = vmul.f32 %v3933_v58, %v3716_v20  ;;  %v3965_v2 = vmul.f32 %v3872_v18, %v3421_v31  ;;  %v3974_v38 = vld [vmem:[%s3256_s9 + $0x40] sm:$0xff]  ;;  %6062 = vst [vmem:[#allocation32_spill] sm:$0xff] %v3980_v55  ;;  %vm1032_vm10 = vweird.f32 %v3879_v39 }
 0x1ce   : > { %v290_v57 = vpop.permute.xlu1 %289  ;;  %v1156_v24 = vmul.f32 %v549_v3, %v3291_v14  ;;  %v566_v10 = vsub.f32 1.0, %v565_v9  ;;  %v554_v25 = vadd.f32 %v3852_v34, %v553_v62  ;;  %2777 = vmatmul.msk.f32.gmra.mxu0 %vm1749_vm9, %v3974_v38  ;;  %v3983_v9 = vld [vmem:[%s3256_s9 + $0x28] sm:$0xff]  ;;  %v562_v53 = vor.u32 1.1754944e-38, %v561_v6 }
 0x1cf   : > { %v3946_v48 = vpop.xlane.xlu2 %343  ;;  %v351_v8 = vsel %vm311_vm1, %v290_v57, 0.0  ;;  %v1029_v57 = vmul.f32 %v3879_v39, %v1028_v1  ;;  %vm556_vm1 = vweird.f32 %v3852_v34  ;;  %v580_v3 = vsub.f32 1.0, %v579_v13  ;;  %v3999_v15 = vpop.eup %2962 }
 0x1d0   : > { %1290 = vperm.xlu2 %2900, %v1156_v24   ;;  %352 = vadd.xlane.f32.xlu1 %v351_v8  ;;  %v567_v14 = vmul.f32 %v3916_v51, %v566_v10  ;;  %v3969_v10 = vmul.f32 %v3942_v7, %v3429_v35  ;;  %v1189_v24 = vmul.f32 %v3983_v9, %v3953_v47  ;;  %vm3993_vm11 = vmor %vm555_vm6, %vm556_vm1  ;;  %v575_v8 = vand.u32 2147483648, %v3863_v37 }
 0x1d1   : > { %v558_v62 = vsel %vm3993_vm11, %v3852_v34, %v554_v25  ;;  %v1030_v49 = vadd.f32 %v3879_v39, %v1029_v57  ;;  %vm569_vm13 = vweird.f32 %v3863_v37  ;;  %v1037_v13 = vand.u32 2147483648, %v3683_v60 }
 0x1d2   : > { %v568_v59 = vadd.f32 %v3916_v51, %v567_v14  ;;  %v573_v14 = vand.u32 2147483647, %v3863_v37  ;;  %2966 = vrcp.f32 %v3980_v55  ;;  %vm560_vm3 = vcmp.eq.f32.partialorder %v559_v41, 8.507059e+37  ;;  %vm4018_vm8 = vmor %vm569_vm13, %vm570_vm5 }
 0x1d3   : > { %vm990_vm15 = vweird.f32 %v3722_v54  ;;  %vm1031_vm2 = vweird.f32 %v3683_v60  ;;  %v1035_v57 = vand.u32 2147483647, %v3683_v60  ;;  %v563_v25 = vsel %vm560_vm3, %v562_v53, %v558_v62  ;;  %v4043_v53 = vpop.eup %2964 }
 0x1d4   : > { %v572_v6 = vsel %vm4018_vm8, %v3916_v51, %v568_v59  ;;  %v581_v41 = vmul.f32 %v3933_v58, %v580_v3  ;;  %v593_v1 = vmul.f32 %v3999_v15, %v3920_v23  ;;  %vm4033_vm0 = vmor %vm1031_vm2, %vm1032_vm10  ;;  %v576_v47 = vor.u32 1.1754944e-38, %v575_v8  ;;  %v4048_v3 = vld [vmem:[%s3256_s9 + $0x48] sm:$0xff] }
 0x1d5   : > { %1456 = vperm.xlu0 %2899, %v3877_v11   ;;  %v4012_v11 = vpop.xlane.xlu0 %460  ;;  %v1016_v60 = vadd.f32 %v3894_v22, %v1015_v30  ;;  %vm1018_vm12 = vweird.f32 %v3894_v22  ;;  %vm989_vm14 = vweird.f32 %v3409_v26  ;;  %v1034_v51 = vsel %vm4033_vm0, %v3879_v39, %v1030_v49 }
 0x1d6   : > { %6065 = vst [vmem:[#allocation33_spill] sm:$0xff] %v4012_v11  ;;  %vm574_vm4 = vcmp.eq.f32.partialorder %v573_v14, 8.507059e+37  ;;  %v1023_v59 = vand.u32 2147483648, %v3435_v40  ;;  %2778 = vmatmul.msk.f32.gmra.mxu0 %vm1749_vm9, %v4048_v3  ;;  %v1038_v30 = vor.u32 1.1754944e-38, %v1037_v13  ;;  %2968 = vrcp.f32 %v3899_v50  ;;  %vm4056_vm6 = vmor %vm1017_vm7, %vm1018_vm12 }
 0x1d7   : > { %v4014_v61 = vpop.xlane.xlu2 %418  ;;  %v1157_v62 = vmul.f32 %v3983_v9, %v563_v25  ;;  %v577_v37 = vsel %vm574_vm4, %v576_v47, %v572_v6  ;;  %vm1036_vm1 = vcmp.eq.f32.partialorder %v1035_v57, 8.507059e+37  ;;  %v582_v49 = vadd.f32 %v3933_v58, %v581_v41  ;;  %v4077_v6 = vld [vmem:[%s3256_s9 + $0x30] sm:$0xff]  ;;  %vm4128_vm8 = vmor %vm989_vm14, %vm990_vm15 }
 0x1d8   : > { %6066 = vst [vmem:[#allocation34_spill] sm:$0xff] %v4014_v61  ;;  %1627 = vperm.xlu2 %2900, %v1189_v24   ;;  %v1021_v24 = vand.u32 2147483647, %v3435_v40  ;;  %vm584_vm11 = vweird.f32 %v3933_v58  ;;  %v594_v8 = vsub.f32 1.0, %v593_v1  ;;  %v4062_v14 = vsel %vm1036_vm1, %v1038_v30, %v1034_v51  ;;  %v4064_v13 = vpop.eup %2966 }
 0x1d9   : > { %6073 = vst [vmem:[#allocation35_spill] sm:$0xff] %v4062_v14  ;;  %v817_v34 = vmul.f32 %v4043_v53, %v3935_v46  ;;  %v1020_v47 = vsel %vm4056_vm6, %v3894_v22, %v1016_v60  ;;  %v589_v57 = vand.u32 2147483648, %v3716_v20  ;;  %v4074_v25 = vmul.f32 %v4062_v14, %v3716_v20 }
 0x1da   : > { %v1158_v41 = vmul.f32 %v4077_v6, %v577_v37  ;;  %v1024_v1 = vor.u32 1.1754944e-38, %v1023_v59  ;;  %vm583_vm7 = vweird.f32 %v3716_v20  ;;  %v587_v51 = vand.u32 2147483647, %v3716_v20 }
 0x1db   : > { %6074 = vst [vmem:[#allocation36_spill] sm:$0xff] %v4074_v25  ;;  %v6075_v30 = vand.u32 2147483647, %v3409_v26  ;;  %vm1022_vm10 = vcmp.eq.f32.partialorder %v1021_v24, 8.507059e+37  ;;  %vm4092_vm13 = vmor %vm583_vm7, %vm584_vm11  ;;  %v988_v59 = vadd.f32 %v3722_v54, %v3897_v29  ;;  %v776_v37 = vsub.f32 1.0, %v3965_v2 }
 0x1dc   : > { %v1232_v39 = vmul.f32 %v3600_v44, %v3382_v63  ;;  %v586_v24 = vsel %vm4092_vm13, %v3933_v58, %v582_v49  ;;  %v595_v25 = vmul.f32 %v3999_v15, %v594_v8  ;;  %v509_v45 = vmul.f32 %v4064_v13, %v3980_v55  ;;  %v4109_v40 = vpop.eup %2968 }
 0x1dd   : > { %1295 = vperm.xlu0 %2899, %v1157_v62   ;;  %vm4084_vm5 = vcmp.eq.f32.partialorder %v6075_v30, 8.507059e+37  ;;  %v4101_v30 = vsel %vm1022_vm10, %v1024_v1, %v1020_v47  ;;  %v4111_v29 = vpop.xlane.xlu0 %415  ;;  %v590_v2 = vor.u32 1.1754944e-38, %v589_v57  ;;  %v818_v19 = vsub.f32 1.0, %v817_v34  ;;  %v4118_v47 = vld [vmem:[%s5910_s2 + $0xf] ss:$0 sm:$0xff]  ;;  %v4138_v1 = vld [vmem:[%s3256_s9 + $0x50] sm:$0xff] }
 0x1de   : > { %6081 = vst [vmem:[#allocation38_spill] sm:$0xff] %v4101_v30  ;;  %v6083_v63 = vand.u32 2147483648, %v3409_v26  ;;  %v4122_v58 = vmul.f32 %v3647_v5, %v3393_v12  ;;  %vm588_vm3 = vcmp.eq.f32.partialorder %v587_v51, 8.507059e+37  ;;  %v6086_v8 = vand.u32 2147483648, %v3421_v31  ;;  %2779 = vmatmul.msk.f32.gmra.mxu0 %vm1749_vm9, %v4138_v1 }
 0x1df   : > { %v4088_v60 = vpop.xlane.xlu2 %421  ;;  %6082 = vst [vmem:[#allocation39_spill] sm:$0xff] %v4111_v29  ;;  %v790_v57 = vsub.f32 1.0, %v3969_v10  ;;  %v4144_v12 = vmul.f32 %v3799_v33, %v3419_v21  ;;  %v1190_v51 = vmul.f32 %v4077_v6, %v4101_v30  ;;  %v591_v22 = vsel %vm588_vm3, %v590_v2, %v586_v24 }
 0x1e0   : > { %6078 = vst [vmem:[#allocation37_spill] sm:$0xff] %v4088_v60  ;;  %1300 = vperm.xlu2 %2900, %v1158_v41   ;;  %v996_v41 = vor.u32 1.1754944e-38, %v6083_v63  ;;  %v4134_v34 = vor.u32 1.1754944e-38, %v6086_v8  ;;  %v992_v63 = vsel %vm4128_vm8, %v3722_v54, %v988_v59  ;;  %v777_v10 = vmul.f32 %v3872_v18, %v776_v37  ;;  %v4164_v59 = vld [vmem:[%s3256_s9 + $0x38] sm:$0xff] }
 0x1e1   : > { %2970 = vrcp.f32 %v4111_v29  ;;  %v596_v8 = vadd.f32 %v3999_v15, %v595_v25  ;;  %vm598_vm15 = vweird.f32 %v3999_v15  ;;  %v510_v26 = vsub.f32 1.0, %v509_v45 }
 0x1e2   : > { %vm779_vm2 = vweird.f32 %v3421_v31  ;;  %v831_v21 = vmul.f32 %v4109_v40, %v3899_v50  ;;  %v603_v24 = vand.u32 2147483648, %v3920_v23  ;;  %v819_v2 = vmul.f32 %v4043_v53, %v818_v19 }
 0x1e3   : > { %v4161_v54 = vmul.f32 %v4118_v47, %v1232_v39  ;;  %v1159_v25 = vmul.f32 %v4164_v59, %v591_v22  ;;  %vm597_vm0 = vweird.f32 %v3920_v23  ;;  %v601_v45 = vand.u32 2147483647, %v3920_v23 }
 0x1e4   : > { %v791_v37 = vmul.f32 %v3942_v7, %v790_v57  ;;  %vm4172_vm12 = vmor %vm597_vm0, %vm598_vm15  ;;  %v4178_v19 = vsel %vm4084_vm5, %v996_v41, %v992_v63  ;;  %vm780_vm14 = vweird.f32 %v3872_v18  ;;  %vm793_vm4 = vweird.f32 %v3429_v35 }
 0x1e5   : > { %1632 = vperm.xlu0 %2899, %v1190_v51   ;;  %6089 = vst [vmem:[#allocation40_spill] sm:$0xff] %v4178_v19  ;;  %v4184_v39 = vmul.f32 %v3591_v36, %v3396_v16  ;;  %v600_v57 = vsel %vm4172_vm12, %v3999_v15, %v596_v8  ;;  %v511_v22 = vmul.f32 %v4064_v13, %v510_v26  ;;  %v797_v41 = vand.u32 2147483647, %v3429_v35  ;;  %vm4235_vm3 = vmor %vm779_vm2, %vm780_vm14 }
 0x1e6   : > { %v778_v62 = vadd.f32 %v3872_v18, %v777_v10  ;;  %v604_v63 = vor.u32 1.1754944e-38, %v603_v24  ;;  %v820_v23 = vadd.f32 %v4043_v53, %v819_v2  ;;  %vm822_vm1 = vweird.f32 %v4043_v53 }
 0x1e7   : > { %v4170_v49 = vpop.xlane.xlu2 %430  ;;  %v832_v16 = vsub.f32 1.0, %v831_v21  ;;  %v6090_v36 = vand.u32 2147483647, %v3421_v31  ;;  %v4201_v15 = vpop.eup %2970  ;;  %vm602_vm11 = vcmp.eq.f32.partialorder %v601_v45, 8.507059e+37  ;;  %v827_v26 = vand.u32 2147483648, %v3935_v46 }
 0x1e8   : > { %1305 = vperm.xlu2 %2900, %v1159_v25   ;;  %v792_v10 = vadd.f32 %v3942_v7, %v791_v37  ;;  %vm794_vm7 = vweird.f32 %v3942_v7  ;;  %v1175_v8 = vmul.f32 %v4164_v59, %v3753_v52  ;;  %v605_v21 = vsel %vm602_vm11, %v604_v63, %v600_v57 }
 0x1e9   : > { %1446 = vperm.xlu1 %2898, %v3888_v17   ;;  %vm4197_vm6 = vcmp.eq.f32.partialorder %v6090_v36, 8.507059e+37  ;;  %v4207_v17 = vld [vmem:[%s3256_s9 + $0x58] sm:$0xff]  ;;  %vm821_vm5 = vweird.f32 %v3935_v46  ;;  %v825_v24 = vand.u32 2147483647, %v3935_v46  ;;  %2972 = vrcp.f32 %v4014_v61  ;;  %vm4250_vm0 = vmor %vm793_vm4, %vm794_vm7 }
 0x1ea   : > { %2780 = vmatmul.msk.f32.gmra.mxu0 %vm1749_vm9, %v4207_v17  ;;  %vm4218_vm10 = vmor %vm821_vm5, %vm822_vm1  ;;  %v512_v45 = vadd.f32 %v4064_v13, %v511_v22  ;;  %vm514_vm13 = vweird.f32 %v4064_v13  ;;  %v799_v37 = vand.u32 2147483648, %v3429_v35  ;;  %v845_v52 = vmul.f32 %v4201_v15, %v4111_v29 }
 0x1eb   : > { %v824_v51 = vsel %vm4218_vm10, %v4043_v53, %v820_v23  ;;  %v833_v57 = vmul.f32 %v4109_v40, %v832_v16  ;;  %vm4239_vm8 = vcmp.eq.f32.partialorder %v797_v41, 8.507059e+37  ;;  %v1160_v36 = vmul.f32 %v3974_v38, %v605_v21 }
 0x1ec   : > { %vm513_vm15 = vweird.f32 %v3980_v55  ;;  %v519_v23 = vand.u32 2147483648, %v3980_v55  ;;  %vm826_vm2 = vcmp.eq.f32.partialorder %v825_v24, 8.507059e+37  ;;  %v782_v21 = vsel %vm4235_vm3, %v3872_v18, %v778_v62  ;;  %v4279_v18 = vpop.xlane.xlu0 %346 }
 0x1ed   : > { %1471 = vperm.xlu0 %2899, %v1175_v8   ;;  %v828_v8 = vor.u32 1.1754944e-38, %v827_v26  ;;  %vm4258_vm12 = vmor %vm513_vm15, %vm514_vm13  ;;  %v517_v26 = vand.u32 2147483647, %v3980_v55  ;;  %v796_v2 = vsel %vm4250_vm0, %v3942_v7, %v792_v10  ;;  %v4271_v46 = vmul.f32 %v3487_v42, %v3946_v48 }
 0x1ee   : > { %v516_v31 = vsel %vm4258_vm12, %v4064_v13, %v512_v45  ;;  %v800_v55 = vor.u32 1.1754944e-38, %v799_v37  ;;  %2974 = vrcp.f32 %v4012_v11  ;;  %v834_v7 = vadd.f32 %v4109_v40, %v833_v57  ;;  %v4321_v57 = vld [vmem:[%s5910_s2 + $0xe] ss:$0 sm:$0xff] }
 0x1ef   : > { %v4254_v16 = vpop.xlane.xlu2 %472  ;;  %6104 = vst [vmem:[#allocation42_spill] sm:$0xff] %v4271_v46  ;;  %v4273_v24 = vsel %vm826_vm2, %v828_v8, %v824_v51  ;;  %vm836_vm14 = vweird.f32 %v4109_v40  ;;  %v846_v48 = vsub.f32 1.0, %v845_v52  ;;  %v4284_v62 = vpop.eup %2972  ;;  %v520_v10 = vor.u32 1.1754944e-38, %v519_v23  ;;  %v4316_v52 = vld [vmem:[%s5910_s2 + $0xb] ss:$0 sm:$0xff] }
 0x1f0   : > { %6101 = vst [vmem:[#allocation41_spill] sm:$0xff] %v4254_v16  ;;  %1310 = vperm.xlu2 %2900, %v1160_v36   ;;  %v841_v51 = vand.u32 2147483648, %v3899_v50  ;;  %v4290_v13 = vsel %vm4197_vm6, %v4134_v34, %v782_v21  ;;  %v4294_v45 = vsel %vm4239_vm8, %v800_v55, %v796_v2  ;;  %v1176_v37 = vmul.f32 %v3974_v38, %v4273_v24  ;;  %v4308_v34 = vld [vmem:[%s5910_s2 + $0x7] ss:$0 sm:$0xff] }
 0x1f1   : > { %6105 = vst [vmem:[#allocation43_spill] sm:$0xff] %v4273_v24  ;;  %1612 = vperm.xlu1 %2898, %v3892_v4   ;;  %v4297_v4 = vld [vmem:[%s3256_s9 + $0x60] sm:$0xff]  ;;  %vm518_vm4 = vcmp.eq.f32.partialorder %v517_v26, 8.507059e+37  ;;  %vm835_vm1 = vweird.f32 %v3899_v50  ;;  %v839_v25 = vand.u32 2147483647, %v3899_v50  ;;  %2976 = vrcp.f32 %v4271_v46  ;;  %v6119_v50 = vld [vmem:[#allocation15_spill] sm:$0xff] }
 0x1f2   : > { %6106 = vst [vmem:[#allocation44_spill] sm:$0xff] %v4290_v13  ;;  %2781 = vmatmul.msk.f32.gmra.mxu0 %vm1749_vm9, %v4297_v4  ;;  %v1216_v55 = vmul.f32 %v3600_v44, %v3498_v56  ;;  %v521_v22 = vsel %vm518_vm4, %v520_v10, %v516_v31  ;;  %vm4325_vm6 = vmor %vm835_vm1, %vm836_vm14  ;;  %v3092_v36 = vld [vmem:[%s3256_s9 + $0x20] sm:$0xff]  ;;  %v859_v8 = vmul.f32 %v4284_v62, %v4014_v61  ;;  %v842_v41 = vor.u32 1.1754944e-38, %v841_v51 }
 0x1f3   : > { %6107 = vst [vmem:[#allocation45_spill] sm:$0xff] %v4294_v45  ;;  %v4331_v44 = vmul.f32 %v3092_v36, %v4178_v19  ;;  %v838_v23 = vsel %vm4325_vm6, %v4109_v40, %v834_v7  ;;  %v847_v31 = vmul.f32 %v4201_v15, %v846_v48  ;;  %v4341_v53 = vmul.f32 %v4118_v47, %v4122_v58  ;;  %v3093_v48 = vld [vmem:[%s3256_s9 + $0x10] sm:$0xff]  ;;  %v4361_v58 = vld [vmem:[%s5910_s2 + $0xd] ss:$0 sm:$0xff] }
 0x1f4   : > { %6108 = vst [vmem:[#allocation46_spill] sm:$0xff] %v4316_v52  ;;  %v4345_v26 = vmul.f32 %v3983_v9, %v4290_v13  ;;  %v4349_v21 = vmul.f32 %v4077_v6, %v4294_v45  ;;  %v4353_v2 = vmul.f32 %v4118_v47, %v4144_v12  ;;  %v4355_v40 = vpop.eup %2974  ;;  %v1154_v10 = vmul.f32 %v3093_v48, %v521_v22 }
 0x1f5   : > { %6109 = vst [vmem:[#allocation47_spill] sm:$0xff] %v4321_v57  ;;  %1476 = vperm.xlu0 %2899, %v1176_v37   ;;  %vm840_vm11 = vcmp.eq.f32.partialorder %v839_v25, 8.507059e+37  ;;  %v4365_v9 = vmul.f32 %v4308_v34, %v3498_v56  ;;  %v1200_v6 = vmul.f32 %v3465_v32, %v3498_v56  ;;  %v1549_v47 = vmul.f32 %v4321_v57, %v1216_v55  ;;  %v350_v25 = vpop.xlane.xlu0 %349  ;;  %v6114_v32 = vld [vmem:[#allocation13_spill] sm:$0xff] }
 0x1f6   : > { %v4371_v51 = vsel %vm840_vm11, %v842_v41, %v838_v23  ;;  %v1217_v37 = vmul.f32 %v3647_v5, %v3531_v0  ;;  %v848_v63 = vadd.f32 %v4201_v15, %v847_v31  ;;  %vm850_vm7 = vweird.f32 %v4201_v15  ;;  %v6115_v41 = vld [vmem:[#allocation16_spill] sm:$0xff] }
 0x1f7   : > { %v1437_v7 = vpop.permute.xlu2 %1436  ;;  %6112 = vst [vmem:[#allocation48_spill] sm:$0xff] %v4371_v51  ;;  %v860_v36 = vsub.f32 1.0, %v859_v8  ;;  %v1201_v56 = vmul.f32 %v6114_v32, %v3531_v0  ;;  %v4381_v55 = vpop.eup %2976  ;;  %v1055_v23 = vmul.f32 %v4355_v40, %v4012_v11  ;;  %v855_v5 = vand.u32 2147483648, %v4111_v29 }
 0x1f8   : > { %v1515_v12 = vmul.f32 %v4316_v52, %v1437_v7  ;;  %v1219_v48 = vmul.f32 %v3799_v33, %v3686_v43  ;;  %v1177_v8 = vmul.f32 %v4048_v3, %v4371_v51  ;;  %vm849_vm5 = vweird.f32 %v4111_v29 }
 0x1f9   : > { %v4375_v22 = vpop.xlane.xlu1 %457  ;;  %1280 = vperm.xlu1 %2898, %v1154_v10   ;;  %v4390_v10 = vld [vmem:[%s3256_s9 + $0x68] sm:$0xff]  ;;  %v853_v31 = vand.u32 2147483647, %v4111_v29  ;;  %v4399_v32 = vmul.f32 %v4361_v58, %v1200_v6  ;;  %vm4406_vm10 = vmor %vm849_vm5, %vm850_vm7  ;;  %v1203_v51 = vmul.f32 %v6119_v50, %v3686_v43  ;;  %v4414_v24 = vmul.f32 %v4308_v34, %v3531_v0 }
 0x1fa   : > { %6113 = vst [vmem:[#allocation49_spill] sm:$0xff] %v4375_v22  ;;  %v1531_v7 = vadd.f32 %v1515_v12, %v6115_v41  ;;  %2782 = vmatmul.msk.f32.gmra.mxu0 %vm1749_vm9, %v4390_v10  ;;  %v1550_v41 = vmul.f32 %v4321_v57, %v1217_v37  ;;  %v4418_v6 = vmul.f32 %v3487_v42, %v4279_v18  ;;  %v1056_v29 = vsub.f32 1.0, %v1055_v23 }
 0x1fb   : > { %6116 = vst [vmem:[#allocation13_spill] sm:$0xff] %v4390_v10  ;;  %v861_v37 = vmul.f32 %v4284_v62, %v860_v36  ;;  %v856_v50 = vor.u32 1.1754944e-38, %v855_v5  ;;  %v4427_v45 = vmul.f32 %v4321_v57, %v1219_v48  ;;  %v4430_v0 = vmul.f32 %v4361_v58, %v1201_v56 }
 0x1fc   : > { %v4401_v12 = vadd.f32 %v1549_v47, %v1531_v7  ;;  %v852_v47 = vsel %vm4406_vm10, %v4201_v15, %v848_v63  ;;  %v621_v7 = vmul.f32 %v4381_v55, %v4271_v46  ;;  %2978 = vrcp.f32 %v4088_v60 }
 0x1fd   : > { %1481 = vperm.xlu0 %2899, %v1177_v8   ;;  %vm854_vm13 = vcmp.eq.f32.partialorder %v853_v31, 8.507059e+37  ;;  %v4435_v15 = vmul.f32 %v4164_v59, %v4062_v14  ;;  %v4439_v63 = vmul.f32 %v4308_v34, %v3686_v43  ;;  %2980 = vrcp.f32 %v4375_v22  ;;  %v6122_v8 = vld [vmem:[#allocation22_spill] sm:$0xff] }
 0x1fe   : > { %v4443_v23 = vsel %vm854_vm13, %v856_v50, %v852_v47  ;;  %v4446_v56 = vmul.f32 %v4361_v58, %v1203_v51  ;;  %2982 = vrcp.f32 %v4418_v6  ;;  %v862_v5 = vadd.f32 %v4284_v62, %v861_v37  ;;  %v4459_v47 = vld [vmem:[%s3256_s9 + $0x70] sm:$0xff] }
 0x1ff   : > { %v1442_v18 = vpop.permute.xlu2 %1441  ;;  %6120 = vst [vmem:[#allocation16_spill] sm:$0xff] %v4443_v23  ;;  %vm864_vm3 = vweird.f32 %v4284_v62  ;;  %v622_v43 = vsub.f32 1.0, %v621_v7  ;;  %v1057_v48 = vmul.f32 %v4355_v40, %v1056_v29  ;;  %v869_v51 = vand.u32 2147483648, %v4014_v61 }
 0x200   : > { %v1516_v36 = vmul.f32 %v4316_v52, %v1442_v18  ;;  %6121 = vst [vmem:[#allocation15_spill] sm:$0xff] %v4446_v56  ;;  %v1178_v37 = vmul.f32 %v4138_v1, %v4443_v23  ;;  %vm863_vm8 = vweird.f32 %v4014_v61  ;;  %v867_v29 = vand.u32 2147483647, %v4014_v61 }
 0x201   : > { %1622 = vperm.xlu1 %2898, %v4331_v44   ;;  %v341_v59 = vpop.xlane.xlu1 %340  ;;  %v359_v44 = vpop.xlane.xlu0 %358  ;;  %v4469_v7 = vmul.f32 %v4308_v34, %v3716_v20  ;;  %v4472_v50 = vmul.f32 %v3487_v42, %v350_v25  ;;  %v623_v34 = vmul.f32 %v4381_v55, %v622_v43  ;;  %v629_v25 = vand.u32 2147483647, %v4271_v46 }
 0x202   : > { %v1532_v31 = vadd.f32 %v1516_v36, %v6122_v8  ;;  %v4455_v33 = vmul.f32 %v3487_v42, %v341_v59  ;;  %2783 = vmatmul.msk.f32.gmra.mxu0 %vm1749_vm9, %v4459_v47  ;;  %vm4479_vm9 = vmor %vm863_vm8, %vm864_vm3  ;;  %v6127_v59 = vld [vmem:[#allocation21_spill] sm:$0xff]  ;;  %v4487_v61 = vpop.eup %2978  ;;  %v870_v23 = vor.u32 1.1754944e-38, %v869_v51  ;;  %vm1060_vm15 = vweird.f32 %v4355_v40 }
 0x203   : > { %6124 = vst [vmem:[#allocation50_spill] sm:$0xff] %v4472_v50  ;;  %v4485_v8 = vmul.f32 %v4361_v58, %v6127_v59  ;;  %v866_v20 = vsel %vm4479_vm9, %v4284_v62, %v862_v5  ;;  %v631_v58 = vand.u32 2147483648, %v4271_v46  ;;  %v1058_v59 = vadd.f32 %v4355_v40, %v1057_v48 }
 0x204   : > { %6123 = vst [vmem:[#allocation22_spill] sm:$0xff] %v4455_v33  ;;  %v4474_v18 = vadd.f32 %v1550_v41, %v1532_v31  ;;  %2984 = vrcp.f32 %v4455_v33  ;;  %v4496_v41 = vmul.f32 %v4178_v19, %v3776_v28  ;;  %v4498_v31 = vpop.eup %2980  ;;  %vm868_vm0 = vcmp.eq.f32.partialorder %v867_v29, 8.507059e+37 }
 0x205   : > { %6128 = vst [vmem:[#allocation21_spill] sm:$0xff] %v4485_v8  ;;  %1486 = vperm.xlu0 %2899, %v1178_v37   ;;  %v4503_v37 = vpop.eup %2982  ;;  %2986 = vrcp.f32 %v4170_v49  ;;  %vm1059_vm2 = vweird.f32 %v4012_v11  ;;  %v1065_v5 = vand.u32 2147483648, %v4012_v11  ;;  %v4510_v51 = vsel %vm868_vm0, %v870_v23, %v866_v20 }
 0x206   : > { %6129 = vst [vmem:[#allocation51_spill] sm:$0xff] %v4496_v41  ;;  %2988 = vrcp.f32 %v4472_v50  ;;  %v1063_v48 = vand.u32 2147483647, %v4012_v11  ;;  %v1041_v36 = vmul.f32 %v4498_v31, %v4375_v22  ;;  %v624_v29 = vadd.f32 %v4381_v55, %v623_v34  ;;  %vm4523_vm4 = vmor %vm1059_vm2, %vm1060_vm15 }
 0x207   : > { %v1452_v62 = vpop.permute.xlu2 %1451  ;;  %6130 = vst [vmem:[#allocation52_spill] sm:$0xff] %v4510_v51  ;;  %vm625_vm12 = vweird.f32 %v4271_v46  ;;  %vm626_vm14 = vweird.f32 %v4381_v55  ;;  %v635_v11 = vmul.f32 %v4503_v37, %v4418_v6  ;;  %v1062_v34 = vsel %vm4523_vm4, %v4355_v40, %v1058_v59 }
 0x208   : > { %v1518_v43 = vmul.f32 %v4316_v52, %v1452_v62  ;;  %v873_v62 = vmul.f32 %v4487_v61, %v4088_v60  ;;  %v1179_v46 = vmul.f32 %v4207_v17, %v4510_v51  ;;  %vm4538_vm1 = vcmp.eq.f32.partialorder %v629_v25, 8.507059e+37  ;;  %vm4545_vm6 = vmor %vm625_vm12, %vm626_vm14 }
 0x209   : > { %1461 = vperm.xlu1 %2898, %v4345_v26   ;;  %v4516_v14 = vpop.xlane.xlu1 %463  ;;  %v1066_v19 = vor.u32 1.1754944e-38, %v1065_v5  ;;  %vm1064_vm11 = vcmp.eq.f32.partialorder %v1063_v48, 8.507059e+37  ;;  %v883_v40 = vand.u32 2147483648, %v4088_v60  ;;  %v1042_v23 = vsub.f32 1.0, %v1041_v36  ;;  %v4552_v51 = vpop.xlane.xlu0 %478 }
 0x20a   : > { %6131 = vst [vmem:[#allocation53_spill] sm:$0xff] %v4516_v14  ;;  %v2985_v20 = vpop.eup %2984  ;;  %v1534_v26 = vadd.f32 %v1518_v43, %v3951_v27  ;;  %v632_v43 = vor.u32 1.1754944e-38, %v631_v58  ;;  %v4562_v58 = vmul.f32 %v3487_v42, %v359_v44  ;;  %v617_v48 = vand.u32 2147483648, %v4455_v33 }
 0x20b   : > { %v607_v13 = vmul.f32 %v2985_v20, %v4455_v33  ;;  %v4550_v59 = vpop.eup %2986  ;;  %v4557_v5 = vsel %vm1064_vm11, %v1066_v19, %v1062_v34  ;;  %v636_v35 = vsub.f32 1.0, %v635_v11  ;;  %v874_v10 = vsub.f32 1.0, %v873_v62 }
 0x20c   : > { %v4543_v30 = vadd.f32 %v4427_v45, %v1534_v26  ;;  %v628_v45 = vsel %vm4545_vm6, %v4381_v55, %v624_v29  ;;  %6139 = vst [vmem:[#allocation55_spill] sm:$0xff] %v4557_v5  ;;  %v4559_v26 = vpop.eup %2988  ;;  %2990 = vrcp.f32 %v4516_v14  ;;  %vm612_vm7 = vweird.f32 %v2985_v20 }
 0x20d   : > { %1491 = vperm.xlu0 %2899, %v1179_v46   ;;  %v608_v25 = vsub.f32 1.0, %v607_v13  ;;  %v615_v46 = vand.u32 2147483647, %v4455_v33  ;;  %v915_v13 = vmul.f32 %v4550_v59, %v4170_v49  ;;  %v633_v19 = vsel %vm4538_vm1, %v632_v43, %v628_v45 }
 0x20e   : > { %6136 = vst [vmem:[#allocation54_spill] sm:$0xff] %v4543_v30  ;;  %v4573_v55 = vmul.f32 %v4048_v3, %v4557_v5  ;;  %vm877_vm5 = vweird.f32 %v4088_v60  ;;  %v881_v11 = vand.u32 2147483647, %v4088_v60  ;;  %v1043_v44 = vmul.f32 %v4498_v31, %v1042_v23 }
 0x20f   : > { %v609_v36 = vmul.f32 %v2985_v20, %v608_v25  ;;  %vm611_vm10 = vweird.f32 %v4455_v33  ;;  %v649_v28 = vmul.f32 %v4559_v26, %v4472_v50  ;;  %2992 = vrcp.f32 %v4562_v58 }
 0x210   : > { %vm613_vm13 = vmor %vm611_vm10, %vm612_vm7  ;;  %v618_v34 = vor.u32 1.1754944e-38, %v617_v48  ;;  %v875_v27 = vmul.f32 %v4487_v61, %v874_v10  ;;  %v4586_v43 = vor.u32 1.1754944e-38, %v883_v40  ;;  %vm616_vm3 = vcmp.eq.f32.partialorder %v615_v46, 8.507059e+37 }
 0x211   : > { %1466 = vperm.xlu1 %2898, %v4349_v21   ;;  %v4579_v29 = vpop.xlane.xlu1 %466  ;;  %v610_v62 = vadd.f32 %v2985_v20, %v609_v36  ;;  %v4589_v21 = vmul.f32 %v4138_v1, %v633_v19  ;;  %v637_v23 = vmul.f32 %v4503_v37, %v636_v35  ;;  %v643_v36 = vand.u32 2147483647, %v4418_v6  ;;  %v4605_v35 = vld [vmem:[%s5911_s3 + $0x50] sm:$0xff] }
 0x212   : > { %v645_v57 = vand.u32 2147483648, %v4418_v6  ;;  %v916_v41 = vsub.f32 1.0, %v915_v13  ;;  %v4594_v52 = vpop.eup %2990  ;;  %v1044_v10 = vadd.f32 %v4498_v31, %v1043_v44  ;;  %vm1046_vm8 = vweird.f32 %v4498_v31  ;;  %2065 = vmatpush.msra.mxu2 %v4605_v35  ;;  %v4616_v13 = vld [vmem:[%s5911_s3 + $0x38] sm:$0xff]  ;;  %v4622_v44 = vpop.xlane.xlu0 %424 }
 0x213   : > { %v614_v25 = vsel %vm613_vm13, %v2985_v20, %v610_v62  ;;  %v1937_v20 = vld [vmem:[%s5911_s3 + $0x48] sm:$0xff]  ;;  %v650_v40 = vsub.f32 1.0, %v649_v28  ;;  %v1051_v46 = vand.u32 2147483648, %v4375_v22  ;;  %vm640_vm9 = vweird.f32 %v4503_v37 }
 0x214   : > { %v619_v45 = vsel %vm616_vm3, %v618_v34, %v614_v25  ;;  %2000 = vmatpush.msra.mxu1 %v1937_v20  ;;  %v4619_v19 = vadd.f32 %v4487_v61, %v875_v27  ;;  %vm878_vm15 = vweird.f32 %v4487_v61  ;;  %2994 = vrcp.f32 %v4579_v29  ;;  %v1933_v34 = vld [vmem:[%s5911_s3 + $0x18] sm:$0xff]  ;;  %v4634_v27 = vld [vmem:[%s5911_s3 + $0x20] sm:$0xff]  ;;  %2066 = vmatpush.msra.mxu2 %v4616_v13 }
 0x215   : > { %v1161_v48 = vmul.f32 %v4048_v3, %v619_v45  ;;  %v1935_v3 = vld [vmem:[%s5911_s3 + $0x30] sm:$0xff]  ;;  %vm1045_vm0 = vweird.f32 %v4375_v22  ;;  %v1049_v62 = vand.u32 2147483647, %v4375_v22  ;;  %v638_v28 = vadd.f32 %v4503_v37, %v637_v23  ;;  %v4640_v45 = vpop.eup %2992  ;;  %vm4665_vm1 = vmor %vm877_vm5, %vm878_vm15  ;;  %2839 = vmatpush.msrb.mxu3 %v1937_v20 }
 0x216   : > { %vm4636_vm2 = vcmp.eq.f32.partialorder %v881_v11, 8.507059e+37  ;;  %vm4646_vm12 = vmor %vm1045_vm0, %vm1046_vm8  ;;  %vm639_vm14 = vweird.f32 %v4418_v6  ;;  %vm4651_vm4 = vcmp.eq.f32.partialorder %v643_v36, 8.507059e+37  ;;  %v646_v11 = vor.u32 1.1754944e-38, %v645_v57  ;;  %2001 = vmatpush.msra.mxu1 %v1935_v3  ;;  %2067 = vmatpush.msra.mxu2 %v4634_v27 }
 0x217   : > { %1315 = vperm.xlu2 %2900, %v1161_v48   ;;  %v1069_v48 = vmul.f32 %v4594_v52, %v4516_v14  ;;  %v1048_v30 = vsel %vm4646_vm12, %v4498_v31, %v1044_v10  ;;  %v651_v56 = vmul.f32 %v4559_v26, %v650_v40  ;;  %v917_v57 = vmul.f32 %v4550_v59, %v916_v41  ;;  %vm4678_vm11 = vmor %vm639_vm14, %vm640_vm9 }
 0x218   : > { %vm919_vm6 = vweird.f32 %v4170_v49  ;;  %v1052_v23 = vor.u32 1.1754944e-38, %v1051_v46  ;;  %2002 = vmatpush.msra.mxu1 %v1933_v34  ;;  %v925_v10 = vand.u32 2147483648, %v4170_v49  ;;  %vm1050_vm7 = vcmp.eq.f32.partialorder %v1049_v62, 8.507059e+37  ;;  %2840 = vmatpush.msrb.mxu3 %v1935_v3  ;;  %v4698_v62 = vld [vmem:[%s5910_s2 + $0xc] ss:$0 sm:$0xff] }
 0x219   : > { %v356_v8 = vpop.xlane.xlu1 %355  ;;  %1637 = vperm.xlu1 %2898, %v4435_v15   ;;  %v880_v20 = vsel %vm4665_vm1, %v4487_v61, %v4619_v19  ;;  %v691_v40 = vmul.f32 %v4640_v45, %v4562_v58  ;;  %v1070_v46 = vsub.f32 1.0, %v1069_v48  ;;  %vm920_vm5 = vweird.f32 %v4550_v59  ;;  %v1931_v61 = vld [vmem:[%s5911_s3] sm:$0xff]  ;;  %v4711_v3 = vld [vmem:[%s5911_s3 + $0x8] sm:$0xff] }
 0x21a   : > { %v4672_v15 = vmul.f32 %v3487_v42, %v356_v8  ;;  %v642_v8 = vsel %vm4678_vm11, %v4503_v37, %v638_v28  ;;  %v4700_v41 = vsel %vm1050_vm7, %v1052_v23, %v1048_v30  ;;  %v4703_v37 = vpop.eup %2994  ;;  %v652_v19 = vadd.f32 %v4559_v26, %v651_v56  ;;  %2841 = vmatpush.msrb.mxu3 %v1933_v34  ;;  %vm4734_vm3 = vmor %vm919_vm6, %vm920_vm5 }
 0x21b   : > { %vm654_vm10 = vweird.f32 %v4559_v26  ;;  %v657_v30 = vand.u32 2147483647, %v4472_v50  ;;  %v4717_v28 = vadd.f32 %v4550_v59, %v917_v57  ;;  %v647_v48 = vsel %vm4651_vm4, %v646_v11, %v642_v8  ;;  %2003 = vmatpush.msra.mxu1 %v1931_v61  ;;  %2068 = vmatpush.msra.mxu2 %v4711_v3 }
 0x21c   : > { %6148 = vst [vmem:[#allocation56_spill] sm:$0xff] %v4672_v15  ;;  %2996 = vrcp.f32 %v4672_v15  ;;  %vm653_vm13 = vweird.f32 %v4472_v50  ;;  %v4724_v36 = vor.u32 1.1754944e-38, %v925_v10  ;;  %v1192_v57 = vmul.f32 %v3974_v38, %v4700_v41  ;;  %2842 = vmatpush.msrb.mxu3 %v1931_v61 }
 0x21d   : > { %2998 = vrcp.f32 %v4254_v16  ;;  %v659_v34 = vand.u32 2147483648, %v4472_v50  ;;  %v692_v23 = vsub.f32 1.0, %v691_v40  ;;  %v4740_v11 = vmul.f32 %v4557_v5, %v4455_v33  ;;  %vm4748_vm8 = vmor %vm653_vm13, %vm654_vm10 }
 0x21e   : > { %v1083_v38 = vmul.f32 %v4703_v37, %v4579_v29  ;;  %v4755_v8 = vsel %vm4636_vm2, %v4586_v43, %v880_v20  ;;  %vm4763_vm9 = vcmp.eq.f32.partialorder %v657_v30, 8.507059e+37  ;;  %v6158_v20 = vld [vmem:[#allocation17_spill] sm:$0xff]  ;;  %2843 = vmatpush.msra.mxu3 %v4605_v35  ;;  %vm1074_vm15 = vweird.f32 %v4594_v52  ;;  %v4794_v35 = vld [vmem:[%s5910_s2 + $0x10] ss:$0 sm:$0xff] }
 0x21f   : > { %v1603_v56 = vpop.permute.xlu0 %1602  ;;  %1320 = vperm.xlu2 %2900, %v4589_v21   ;;  %6153 = vst [vmem:[#allocation57_spill] sm:$0xff] %v4740_v11  ;;  %v1071_v21 = vmul.f32 %v4594_v52, %v1070_v46  ;;  %v1163_v46 = vmul.f32 %v4207_v17, %v647_v48  ;;  %v660_v30 = vor.u32 1.1754944e-38, %v659_v34  ;;  %v693_v10 = vmul.f32 %v4640_v45, %v692_v23 }
 0x220   : > { %v1681_v31 = vmul.f32 %v4698_v62, %v1603_v56  ;;  %v656_v56 = vsel %vm4748_vm8, %v4559_v26, %v652_v19  ;;  %v1079_v26 = vand.u32 2147483648, %v4516_v14  ;;  %2844 = vmatpush.msra.mxu3 %v4616_v13  ;;  %vm1073_vm0 = vweird.f32 %v4516_v14  ;;  %v1819_v13 = vpop.f32.mrf.mxu0 }
 0x221   : > { %v4757_v40 = vpop.xlane.xlu1 %427  ;;  %1642 = vperm.xlu1 %2898, %v1192_v57   ;;  %v1077_v57 = vand.u32 2147483647, %v4516_v14  ;;  %v1072_v11 = vadd.f32 %v4594_v52, %v1071_v21  ;;  %v4799_v23 = vsel %vm4763_vm9, %v660_v30, %v656_v56  ;;  %v685_v30 = vand.u32 2147483647, %v4672_v15  ;;  %vm4818_vm14 = vmor %vm1073_vm0, %vm1074_vm15 }
 0x222   : > { %v4771_v25 = vpop.eup %2996  ;;  %v1697_v61 = vadd.f32 %v1681_v31, %v6158_v20  ;;  %3000 = vrcp.f32 %v4757_v40  ;;  %v4775_v48 = vpop.permute.xlu2 %1285  ;;  %v1084_v31 = vsub.f32 1.0, %v1083_v38  ;;  %v687_v38 = vand.u32 2147483648, %v4672_v15  ;;  %2845 = vmatpush.msra.mxu3 %v4634_v27 }
 0x223   : > { %3002 = vrcp.f32 %v4552_v51  ;;  %v677_v19 = vmul.f32 %v4771_v25, %v4672_v15  ;;  %v4784_v43 = vpop.eup %2998  ;;  %vm4808_vm2 = vcmp.eq.f32.partialorder %v1077_v57, 8.507059e+37  ;;  %vm682_vm12 = vweird.f32 %v4771_v25 }
 0x224   : > { %v1731_v20 = vadd.f32 %v4161_v54, %v1697_v61  ;;  %3004 = vrcp.f32 %v4622_v44  ;;  %v4804_v54 = vld [vmem:[%s5910_s2 + $0xa] ss:$0 sm:$0xff]  ;;  %v4823_v57 = vadd.f32 %v4640_v45, %v693_v10  ;;  %v1085_v27 = vmul.f32 %v4703_v37, %v1084_v31  ;;  %2846 = vmatpush.msra.mxu3 %v4711_v3 }
 0x225   : > { %v678_v34 = vsub.f32 1.0, %v677_v19  ;;  %v1080_v19 = vor.u32 1.1754944e-38, %v1079_v26  ;;  %v1820_v31 = vadd.f32 %v4794_v35, %v1819_v13  ;;  %vm681_vm4 = vweird.f32 %v4672_v15 }
 0x226   : > { %v1867_v21 = vadd.f32 %v1731_v20, %v4401_v12  ;;  %v1076_v20 = vsel %vm4818_vm14, %v4594_v52, %v1072_v11  ;;  %vm683_vm1 = vmor %vm681_vm4, %vm682_vm12  ;;  %v688_v11 = vor.u32 1.1754944e-38, %v687_v38  ;;  %vm1088_vm6 = vweird.f32 %v4703_v37 }
 0x227   : > { %v1271_v60 = vpop.permute.xlu0 %1270  ;;  %1325 = vperm.xlu2 %2900, %v1163_v46   ;;  %v679_v56 = vmul.f32 %v4771_v25, %v678_v34  ;;  %v1093_v34 = vand.u32 2147483648, %v4579_v29  ;;  %vm696_vm11 = vweird.f32 %v4640_v45  ;;  %vm686_vm7 = vcmp.eq.f32.partialorder %v685_v30, 8.507059e+37 }
 0x228   : > { %v4825_v26 = vpop.eup %3000  ;;  %v1349_v46 = vmul.f32 %v4804_v54, %v1271_v60  ;;  %v911_v15 = vand.u32 2147483648, %v4757_v40  ;;  %v1086_v38 = vadd.f32 %v4703_v37, %v1085_v27  ;;  %vm1087_vm10 = vweird.f32 %v4579_v29 }
 0x229   : > { %v4834_v14 = vpop.eup %3002  ;;  %v901_v10 = vmul.f32 %v4825_v26, %v4757_v40  ;;  %v4838_v33 = vpop.xlane.xlu1 %475  ;;  %1647 = vperm.xlu1 %2898, %v4573_v55   ;;  %v680_v60 = vadd.f32 %v4771_v25, %v679_v56  ;;  %vm906_vm5 = vweird.f32 %v4825_v26  ;;  %vm905_vm13 = vweird.f32 %v4757_v40  ;;  %vm4878_vm8 = vmor %vm1087_vm10, %vm1088_vm6 }
 0x22a   : > { %v1365_v52 = vadd.f32 %v1349_v46, %v4365_v9  ;;  %3006 = vrcp.f32 %v4838_v33  ;;  %v4846_v3 = vpop.permute.xlu2 %1290  ;;  %v4852_v55 = vpop.eup %3004  ;;  %v4857_v9 = vsel %vm4808_vm2, %v1080_v19, %v1076_v20  ;;  %vm1939_vm9 = vcmask 261120   ;;  %vm907_vm15 = vmor %vm905_vm13, %vm906_vm5 }
 0x22b   : > { %v684_v13 = vsel %vm683_vm1, %v4771_v25, %v680_v60  ;;  %v902_v56 = vsub.f32 1.0, %v901_v10  ;;  %v909_v25 = vand.u32 2147483647, %v4757_v40  ;;  %v4868_v61 = vmul.f32 %v4852_v55, %v4622_v44 }
 0x22c   : > { %v1399_v12 = vadd.f32 %v4399_v32, %v1365_v52  ;;  %v689_v46 = vsel %vm686_vm7, %v688_v11, %v684_v13  ;;  %v1091_v32 = vand.u32 2147483647, %v4579_v29  ;;  %v1194_v27 = vmul.f32 %v4138_v1, %v4857_v9 }
 0x22d   : > { %v1166_v5 = vmul.f32 %v4459_v47, %v689_v46  ;;  %v903_v50 = vmul.f32 %v4825_v26, %v902_v56  ;;  %v912_v1 = vor.u32 1.1754944e-38, %v911_v15  ;;  %vm910_vm0 = vcmp.eq.f32.partialorder %v909_v25, 8.507059e+37 }
 0x22e   : > { %v1883_v19 = vadd.f32 %v1867_v21, %v1399_v12  ;;  %v1094_v21 = vor.u32 1.1754944e-38, %v1093_v34  ;;  %v1090_v34 = vsel %vm4878_vm8, %v4703_v37, %v1086_v38  ;;  %v6169_v12 = vld [vmem:[#allocation18_spill] sm:$0xff]  ;;  %vm1092_vm12 = vcmp.eq.f32.partialorder %v1091_v32, 8.507059e+37 }
 0x22f   : > { %v1608_v30 = vpop.permute.xlu0 %1607  ;;  %1340 = vperm.xlu2 %2900, %v1166_v5   ;;  %v904_v20 = vadd.f32 %v4825_v26, %v903_v50  ;;  %vm695_vm14 = vweird.f32 %v4562_v58  ;;  %v1164_v32 = vmul.f32 %v4297_v4, %v4799_v23  ;;  %vm1129_vm6 = vweird.f32 %v4838_v33 }
 0x230   : > { %v4882_v60 = vpop.eup %3006  ;;  %v1899_v52 = vadd.f32 %v1883_v19, %v1820_v31  ;;  %v1682_v11 = vmul.f32 %v4698_v62, %v1608_v30  ;;  %v6165_v31 = vand.u32 2147483647, %v4170_v49  ;;  %v4917_v30 = vsel %vm1092_vm12, %v1094_v21, %v1090_v34  ;;  %vm4926_vm4 = vmor %vm695_vm14, %vm696_vm11 }
 0x231   : > { %v1125_v50 = vmul.f32 %v4882_v60, %v4838_v33  ;;  %v4889_v5 = vpop.xlane.xlu1 %469  ;;  %1652 = vperm.xlu1 %2898, %v1194_v27   ;;  %v908_v13 = vsel %vm907_vm15, %v4825_v26, %v904_v20  ;;  %v699_v27 = vand.u32 2147483647, %v4562_v58  ;;  %v701_v20 = vand.u32 2147483648, %v4562_v58 }
 0x232   : > { %vm4897_vm2 = vcmp.eq.f32.partialorder %v6165_v31, 8.507059e+37  ;;  %v4901_v15 = vmax.f32 %v1899_v52, 0.0  ;;  %v1698_v46 = vadd.f32 %v1682_v11, %v6169_v12  ;;  %3008 = vrcp.f32 %v4889_v5  ;;  %v4905_v19 = vpop.permute.xlu2 %1627 }
 0x233   : > { %v4907_v26 = vsel %vm910_vm0, %v912_v1, %v908_v13  ;;  %v1126_v25 = vsub.f32 1.0, %v1125_v50  ;;  %vm1130_vm1 = vweird.f32 %v4882_v60  ;;  %v888_v21 = vsub.f32 1.0, %v4868_v61  ;;  %v1822_v1 = vpop.f32.mrf.mxu0 }
 0x234   : > { %6168 = vst [vmem:[#allocation17_spill] sm:$0xff] %v4901_v15  ;;  %v1182_v37 = vmul.f32 %v4459_v47, %v4907_v26  ;;  %v1732_v38 = vadd.f32 %v4341_v53, %v1698_v46  ;;  %2785 = vmatmul.msk.f32.vlgmr.msra.gmra.mxu1 %vm1939_vm9, %v4901_v15  ;;  %2801 = vmatmul.msk.f32.vlgmr.msra.gmra.mxu2 %vm1939_vm9, %v4901_v15  ;;  %v1135_v50 = vand.u32 2147483648, %v4838_v33  ;;  %v1133_v31 = vand.u32 2147483647, %v4838_v33  ;;  %vm4956_vm11 = vmor %vm1129_vm6, %vm1130_vm1 }
 0x235   : > { %v1127_v10 = vmul.f32 %v4882_v60, %v1126_v25  ;;  %v1139_v52 = vmul.f32 %v4834_v14, %v4552_v51  ;;  %v698_v23 = vsel %vm4926_vm4, %v4640_v45, %v4823_v57  ;;  %v1195_v34 = vmul.f32 %v4207_v17, %v4917_v30 }
 0x236   : > { %1506 = vperm.xlu0 %2899, %v1182_v37   ;;  %v1868_v11 = vadd.f32 %v1732_v38, %v4474_v18  ;;  %v4949_v12 = vmul.f32 %v4784_v43, %v4254_v16  ;;  %v1180_v57 = vmul.f32 %v4297_v4, %v4755_v8  ;;  %v702_v46 = vor.u32 1.1754944e-38, %v701_v20 }
 0x237   : > { %v1276_v13 = vpop.permute.xlu0 %1275  ;;  %1330 = vperm.xlu2 %2900, %v1164_v32   ;;  %v1128_v61 = vadd.f32 %v4882_v60, %v1127_v10  ;;  %vm700_vm7 = vcmp.eq.f32.partialorder %v699_v27, 8.507059e+37  ;;  %v889_v38 = vmul.f32 %v4852_v55, %v888_v21  ;;  %v1136_v53 = vor.u32 1.1754944e-38, %v1135_v50 }
 0x238   : > { %v4945_v18 = vpop.eup %3008  ;;  %v1350_v45 = vmul.f32 %v4804_v54, %v1276_v13  ;;  %v703_v32 = vsel %vm700_vm7, %v702_v46, %v698_v23  ;;  %v6174_v13 = vsel %vm4734_vm3, %v4550_v59, %v4717_v28  ;;  %vm1134_vm5 = vcmp.eq.f32.partialorder %v1133_v31, 8.507059e+37  ;;  %v4987_v28 = vld [vmem:[%s3256_s9 + $0x78] sm:$0xff] }
 0x239   : > { %v1097_v25 = vmul.f32 %v4945_v18, %v4889_v5  ;;  %1657 = vperm.xlu1 %2898, %v1195_v34   ;;  %v1132_v37 = vsel %vm4956_vm11, %v4882_v60, %v1128_v61  ;;  %v4977_v27 = vsel %vm4897_vm2, %v4724_v36, %v6174_v13  ;;  %v1140_v60 = vsub.f32 1.0, %v1139_v52 }
 0x23a   : > { %v1366_v20 = vadd.f32 %v1350_v45, %v4414_v24  ;;  %v4967_v10 = vpop.permute.xlu2 %1300  ;;  %vm891_vm10 = vweird.f32 %v4622_v44  ;;  %v1823_v24 = vadd.f32 %v4794_v35, %v1822_v1  ;;  %v4982_v23 = vsel %vm1134_vm5, %v1136_v53, %v1132_v37 }
 0x23b   : > { %v1098_v34 = vsub.f32 1.0, %v1097_v25  ;;  %vm892_vm13 = vweird.f32 %v4852_v55  ;;  %v1167_v36 = vmul.f32 %v4987_v28, %v703_v32  ;;  %vm1102_vm3 = vweird.f32 %v4945_v18  ;;  %v5010_v46 = vpop.f32.mrf.mxu0 }
 0x23c   : > { %v1400_v21 = vadd.f32 %v4430_v0, %v1366_v20  ;;  %v890_v22 = vadd.f32 %v4852_v55, %v889_v38  ;;  %v1352_v56 = vmul.f32 %v4804_v54, %v4775_v48  ;;  %v1107_v0 = vand.u32 2147483648, %v4889_v5  ;;  %vm5005_vm15 = vmor %vm891_vm10, %vm892_vm13 }
 0x23d   : > { %v1099_v59 = vmul.f32 %v4945_v18, %v1098_v34  ;;  %v897_v1 = vand.u32 2147483648, %v4622_v44  ;;  %v1198_v61 = vmul.f32 %v4459_v47, %v4982_v23  ;;  %vm1101_vm8 = vweird.f32 %v4889_v5 }
 0x23e   : > { %1496 = vperm.xlu0 %2899, %v1180_v57   ;;  %v1884_v52 = vadd.f32 %v1868_v11, %v1400_v21  ;;  %v1105_v45 = vand.u32 2147483647, %v4889_v5  ;;  %v1112_v11 = vsub.f32 1.0, %v4949_v12  ;;  %vm5015_vm0 = vmor %vm1101_vm8, %vm1102_vm3  ;;  %v895_v25 = vand.u32 2147483647, %v4622_v44 }
 0x23f   : > { %v1618_v50 = vpop.permute.xlu0 %1617  ;;  %1345 = vperm.xlu2 %2900, %v1167_v36   ;;  %v1100_v31 = vadd.f32 %v4945_v18, %v1099_v59  ;;  %v1141_v37 = vmul.f32 %v4834_v14, %v1140_v60  ;;  %v1183_v38 = vmul.f32 %v4987_v28, %v4977_v27  ;;  %v894_v20 = vsel %vm5005_vm15, %v4852_v55, %v890_v22 }
 0x240   : > { %v1900_v57 = vadd.f32 %v1884_v52, %v1823_v24  ;;  %v1684_v47 = vmul.f32 %v4698_v62, %v1618_v50  ;;  %v1368_v32 = vadd.f32 %v1352_v56, %v4439_v63  ;;  %v1108_v60 = vor.u32 1.1754944e-38, %v1107_v0  ;;  %v6182_v56 = vld [vmem:[#allocation54_spill] sm:$0xff]  ;;  %v6184_v50 = vld [vmem:[#allocation21_spill] sm:$0xff] }
 0x241   : > { %1672 = vperm.xlu1 %2898, %v1198_v61   ;;  %v1104_v12 = vsel %vm5015_vm0, %v4945_v18, %v1100_v31  ;;  %vm1106_vm2 = vcmp.eq.f32.partialorder %v1105_v45, 8.507059e+37  ;;  %v898_v59 = vor.u32 1.1754944e-38, %v897_v1  ;;  %v1149_v36 = vand.u32 2147483648, %v4552_v51 }
 0x242   : > { %v5030_v53 = vmax.f32 %v1900_v57, 0.0  ;;  %v1700_v13 = vadd.f32 %v1684_v47, %v4184_v39  ;;  %v1306_v34 = vpop.permute.xlu2 %1305  ;;  %v5043_v39 = vsel %vm1106_vm2, %v1108_v60, %v1104_v12  ;;  %vm896_vm12 = vcmp.eq.f32.partialorder %v895_v25, 8.507059e+37  ;;  %v5066_v57 = vld [vmem:[%s5910_s2 + $0x8] ss:$0 sm:$0xff]  ;;  %v6185_v47 = vld [vmem:[#allocation6_spill] sm:$0xff] }
 0x243   : > { %v1356_v24 = vmul.f32 %v4804_v54, %v1306_v34  ;;  %v353_v21 = vpop.xlane.xlu1 %352  ;;  %v899_v55 = vsel %vm896_vm12, %v898_v59, %v894_v20  ;;  %v1142_v22 = vadd.f32 %v4834_v14, %v1141_v37  ;;  %vm1144_vm14 = vweird.f32 %v4834_v14  ;;  %v6186_v25 = vld [vmem:[#allocation46_spill] sm:$0xff]  ;;  %v5073_v12 = vpop.f32.mrf.mxu0  ;;  %v6187_v20 = vld [vmem:[#allocation51_spill] sm:$0xff] }
 0x244   : > { %6179 = vst [vmem:[#allocation18_spill] sm:$0xff] %v5030_v53  ;;  %v1734_v18 = vadd.f32 %v4353_v2, %v1700_v13  ;;  %v5037_v52 = vmul.f32 %v3487_v42, %v353_v21  ;;  %2786 = vmatmul.msk.f32.gmra.mxu1 %vm1939_vm9, %v5030_v53  ;;  %2802 = vmatmul.msk.f32.gmra.mxu2 %vm1939_vm9, %v5030_v53  ;;  %v6181_v2 = vld [vmem:[#allocation15_spill] sm:$0xff]  ;;  %vm1143_vm4 = vweird.f32 %v4552_v51  ;;  %v1147_v45 = vand.u32 2147483647, %v4552_v51 }
 0x245   : > { %v1372_v63 = vadd.f32 %v1356_v24, %v4469_v7  ;;  %v1402_v42 = vadd.f32 %v6181_v2, %v1368_v32  ;;  %v1196_v7 = vmul.f32 %v4297_v4, %v5043_v39  ;;  %v1421_v17 = vmul.f32 %v5066_v57, %v6185_v47  ;;  %vm1145_vm1 = vmor %vm1143_vm4, %vm1144_vm14  ;;  %v6188_v32 = vld [vmem:[#allocation47_spill] sm:$0xff]  ;;  %v6189_v24 = vld [vmem:[#allocation13_spill] sm:$0xff] }
 0x246   : > { %6180 = vst [vmem:[#allocation58_spill] sm:$0xff] %v5037_v52  ;;  %1511 = vperm.xlu0 %2899, %v1183_v38   ;;  %3010 = vrcp.f32 %v5037_v52  ;;  %v1870_v0 = vadd.f32 %v1734_v18, %v6182_v56  ;;  %v5052_v1 = vmul.f32 %v899_v55, %v5037_v52  ;;  %v1113_v38 = vmul.f32 %v4784_v43, %v1112_v11 }
 0x247   : > { %v5055_v61 = vadd.f32 %v6184_v50, %v1372_v63  ;;  %v1457_v31 = vpop.permute.xlu0 %1456  ;;  %v1146_v4 = vsel %vm1145_vm1, %v4834_v14, %v1142_v22  ;;  %v1553_v13 = vmul.f32 %v6188_v32, %v6187_v20  ;;  %v1150_v60 = vor.u32 1.1754944e-38, %v1149_v36 }
 0x248   : > { %6183 = vst [vmem:[#allocation15_spill] sm:$0xff] %v5052_v1  ;;  %v5061_v48 = vadd.f32 %v1870_v0, %v1402_v42  ;;  %v1519_v37 = vmul.f32 %v6186_v25, %v1457_v31  ;;  %v1181_v21 = vmul.f32 %v6189_v24, %v899_v55  ;;  %vm1148_vm6 = vcmp.eq.f32.partialorder %v1147_v45, 8.507059e+37  ;;  %v6198_v1 = vld [vmem:[#allocation25_spill] sm:$0xff] }
 0x249   : > { %1662 = vperm.xlu1 %2898, %v1196_v7   ;;  %v5080_v63 = vsel %vm1148_vm6, %v1150_v60, %v1146_v4  ;;  %v1114_v14 = vadd.f32 %v4784_v43, %v1113_v38  ;;  %vm1116_vm11 = vweird.f32 %v4784_v43  ;;  %v1121_v22 = vand.u32 2147483648, %v4254_v16  ;;  %v6191_v38 = vld [vmem:[#allocation10_spill] sm:$0xff]  ;;  %v5108_v60 = vld [vmem:[%s5910_s2 + $0x9] ss:$0 sm:$0xff] }
 0x24a   : > { %v1535_v34 = vadd.f32 %v1519_v37, %v1421_v17  ;;  %v1199_v36 = vmul.f32 %v4987_v28, %v5080_v63  ;;  %vm1115_vm7 = vweird.f32 %v4254_v16  ;;  %v1119_v42 = vand.u32 2147483647, %v4254_v16  ;;  %v6192_v4 = vld [vmem:[#allocation38_spill] sm:$0xff] }
 0x24b   : > { %v673_v56 = vand.u32 2147483648, %v5037_v52  ;;  %vm1117_vm5 = vmor %vm1115_vm7, %vm1116_vm11  ;;  %v671_v50 = vand.u32 2147483647, %v5037_v52  ;;  %v1122_v7 = vor.u32 1.1754944e-38, %v1121_v22  ;;  %v5095_v45 = vpop.f32.mrf.mxu0  ;;  %vm667_vm13 = vweird.f32 %v5037_v52 }
 0x24c   : > { %v3011_v59 = vpop.eup %3010  ;;  %v5078_v18 = vadd.f32 %v1553_v13, %v1535_v34  ;;  %v1118_v31 = vsel %vm1117_vm5, %v4784_v43, %v1114_v14  ;;  %vm1120_vm3 = vcmp.eq.f32.partialorder %v1119_v42, 8.507059e+37  ;;  %v1238_v20 = vmul.f32 %v6192_v4, %v6191_v38  ;;  %v5116_v14 = vld [vmem:[%s5910_s2 + $0xf] ss:$0 sm:$0xff] }
 0x24d   : > { %v663_v11 = vmul.f32 %v3011_v59, %v5037_v52  ;;  %vm668_vm10 = vweird.f32 %v3011_v59  ;;  %v674_v28 = vor.u32 1.1754944e-38, %v673_v56  ;;  %v5098_v25 = vsel %vm1120_vm3, %v1122_v7, %v1118_v31  ;;  %v5128_v7 = vld [vmem:[%s5910_s2 + $0xb] ss:$0 sm:$0xff] }
 0x24e   : > { %1501 = vperm.xlu0 %2899, %v1181_v21   ;;  %vm669_vm8 = vmor %vm667_vm13, %vm668_vm10  ;;  %6190 = vst [vmem:[#allocation54_spill] sm:$0xff] %v5098_v25  ;;  %vm672_vm15 = vcmp.eq.f32.partialorder %v671_v50, 8.507059e+37  ;;  %v1197_v34 = vmul.f32 %v6189_v24, %v5098_v25  ;;  %v6193_v21 = vld [vmem:[#allocation11_spill] sm:$0xff]  ;;  %v1721_v22 = vmul.f32 %v5116_v14, %v1238_v20  ;;  %v6196_v50 = vld [vmem:[#allocation5_spill] sm:$0xff]  ;;  %vm2439_vm0 = vcmask 7168  }
 0x24f   : > { %v5086_v2 = vpop.permute.xlu0 %1295  ;;  %v664_v55 = vsub.f32 1.0, %v663_v11  ;;  %v1589_v11 = vmul.f32 %v5108_v60, %v6193_v21  ;;  %v1419_v31 = vmul.f32 %v5066_v57, %v6196_v50  ;;  %v6197_v21 = vld [vmem:[#allocation7_spill] sm:$0xff] }
 0x251   : > { %1677 = vperm.xlu1 %2898, %v1199_v36   ;;  %v665_v0 = vmul.f32 %v3011_v59, %v664_v55  ;;  %v6194_v36 = vld [vmem:[#allocation32_spill] sm:$0xff]  ;;  %v6195_v55 = vld [vmem:[#allocation27_spill] sm:$0xff] }
 0x252   : > { %v1218_v42 = vmul.f32 %v6195_v55, %v6194_v36 }
 0x253   : > { %v666_v17 = vadd.f32 %v3011_v59, %v665_v0 }
 0x255   : > { %v670_v37 = vsel %vm669_vm8, %v3011_v59, %v666_v17 }
 0x256   : > { %v675_v32 = vsel %vm672_vm15, %v674_v28, %v670_v37  ;;  %v5131_v28 = vpop.f32.mrf.mxu0  ;;  %v5136_v37 = vld [vmem:[%s5910_s2 + $0xe] ss:$0 sm:$0xff] }
 0x257   : > { %v1633_v13 = vpop.permute.xlu0 %1632  ;;  %v1165_v43 = vmul.f32 %v6189_v24, %v675_v32  ;;  %v1551_v20 = vmul.f32 %v5136_v37, %v1218_v42  ;;  %v1202_v42 = vmul.f32 %v6198_v1, %v6194_v36 }
 0x258   : > { %v1687_v59 = vmul.f32 %v4698_v62, %v1633_v13 }
 0x259   : > { %1335 = vperm.xlu2 %2900, %v1165_v43   ;;  %1667 = vperm.xlu1 %2898, %v1197_v34   ;;  %v1234_v43 = vmul.f32 %v6195_v55, %v6196_v50  ;;  %v5152_v55 = vld [vmem:[%s5910_s2 + $0x7] ss:$0 sm:$0xff] }
 0x25a   : > { %v1703_v24 = vadd.f32 %v1687_v59, %v1589_v11  ;;  %v1585_v11 = vmul.f32 %v5108_v60, %v6197_v21  ;;  %v1253_v50 = vmul.f32 %v5152_v55, %v6194_v36  ;;  %v5167_v21 = vpop.permute.xlu2 %1310  ;;  %v6199_v36 = vld [vmem:[#allocation40_spill] sm:$0xff] }
 0x25b   : > { %v1447_v56 = vpop.permute.xlu1 %1446 }
 0x25c   : > { %v5121_v0 = vadd.f32 %v1721_v22, %v1703_v24  ;;  %v1517_v17 = vmul.f32 %v5128_v7, %v1447_v56  ;;  %v1717_v22 = vmul.f32 %v5116_v14, %v1234_v43 }
 0x25e   : > { %v1533_v32 = vadd.f32 %v1517_v17, %v1419_v31  ;;  %v5145_v56 = vpop.f32.mrf.mxu0 }
 0x260   : > { %v1567_v13 = vadd.f32 %v1551_v20, %v1533_v32  ;;  %v5160_v32 = vld [vmem:[%s5910_s2 + $0xd] ss:$0 sm:$0xff] }
 0x261   : > { %v1385_v43 = vmul.f32 %v5160_v32, %v1202_v42 }
 0x263   : > { %v1613_v34 = vpop.permute.xlu1 %1612 }
 0x264   : > { %v1683_v59 = vmul.f32 %v4698_v62, %v1613_v34 }
 0x266   : > { %v1699_v24 = vadd.f32 %v1683_v59, %v1585_v11  ;;  %v5165_v34 = vpop.f32.mrf.mxu0  ;;  %v1236_v11 = vmul.f32 %v6199_v36, %v6185_v47  ;;  %v1353_v59 = vmul.f32 %v4804_v54, %v4846_v3  ;;  %v1829_v3 = vadd.f32 %v4794_v35, %v5073_v12  ;;  %v1472_v36 = vpop.permute.xlu0 %1471  ;;  %v6206_v12 = vld [vmem:[#allocation12_spill] sm:$0xff] }
 0x268   : > { %v1733_v16 = vadd.f32 %v1717_v22, %v1699_v24  ;;  %v6200_v24 = vld [vmem:[#allocation8_spill] sm:$0xff]  ;;  %v1719_v25 = vmul.f32 %v5116_v14, %v1236_v11  ;;  %v6205_v11 = vld [vmem:[#allocation31_spill] sm:$0xff] }
 0x26a   : > { %v1869_v31 = vadd.f32 %v1733_v16, %v1567_v13  ;;  %v1826_v16 = vadd.f32 %v4794_v35, %v5010_v46 }
 0x26b   : > { %v1281_v17 = vpop.permute.xlu1 %1280 }
 0x26c   : > { %v1351_v20 = vmul.f32 %v4804_v54, %v1281_v17  ;;  %v1587_v17 = vmul.f32 %v5108_v60, %v6200_v24 }
 0x26e   : > { %v1367_v1 = vadd.f32 %v1351_v20, %v1253_v50  ;;  %v6201_v50 = vld [vmem:[#allocation23_spill] sm:$0xff]  ;;  %v6202_v20 = vld [vmem:[#allocation24_spill] sm:$0xff] }
 0x26f   : > { %v1204_v53 = vmul.f32 %v6202_v20, %v6201_v50  ;;  %v1255_v46 = vmul.f32 %v5152_v55, %v6201_v50  ;;  %v1686_v20 = vmul.f32 %v4698_v62, %v4905_v19  ;;  %v1902_v19 = vadd.f32 %v5061_v48, %v1829_v3 }
 0x270   : > { %v1401_v13 = vadd.f32 %v1385_v43, %v1367_v1 }
 0x271   : > { %v1369_v47 = vadd.f32 %v1353_v59, %v1255_v46  ;;  %v1387_v24 = vmul.f32 %v5160_v32, %v1204_v53 }
 0x272   : > { %v1885_v22 = vadd.f32 %v1869_v31, %v1401_v13 }
 0x273   : > { %v1623_v42 = vpop.permute.xlu1 %1622  ;;  %v1403_v50 = vadd.f32 %v1387_v24, %v1369_v47 }
 0x274   : > { %v1901_v43 = vadd.f32 %v1885_v22, %v1826_v16  ;;  %v1685_v1 = vmul.f32 %v4698_v62, %v1623_v42  ;;  %v6204_v16 = vld [vmem:[#allocation9_spill] sm:$0xff]  ;;  %v1588_v22 = vmul.f32 %v5108_v60, %v6206_v12  ;;  %v6207_v42 = vld [vmem:[#allocation20_spill] sm:$0xff] }
 0x275   : > { %v1237_v59 = vmul.f32 %v6205_v11, %v6204_v16  ;;  %v1221_v53 = vmul.f32 %v6205_v11, %v6207_v42  ;;  %v1422_v12 = vmul.f32 %v5066_v57, %v6204_v16  ;;  %v1256_v47 = vmul.f32 %v5152_v55, %v6207_v42 }
 0x276   : > { %v5183_v31 = vmax.f32 %v1901_v43, 0.0  ;;  %v1701_v13 = vadd.f32 %v1685_v1, %v1587_v17  ;;  %v5196_v17 = vpop.permute.xlu2 %1315  ;;  %v5204_v43 = vpop.f32.mrf.mxu0  ;;  %v6208_v1 = vld [vmem:[#allocation44_spill] sm:$0xff]  ;;  %v1702_v15 = vadd.f32 %v1686_v20, %v1588_v22  ;;  %v1832_v11 = vadd.f32 %v4794_v35, %v5095_v45 }
 0x278   : > { %6203 = vst [vmem:[#allocation21_spill] sm:$0xff] %v5183_v31  ;;  %v1735_v52 = vadd.f32 %v1719_v25, %v1701_v13  ;;  %2787 = vmatmul.msk.f32.gmra.mxu1 %vm1939_vm9, %v5183_v31  ;;  %2803 = vmatmul.msk.f32.gmra.mxu2 %vm1939_vm9, %v5183_v31  ;;  %v1354_v25 = vmul.f32 %v4804_v54, %v5086_v2 }
 0x279   : > { %v1205_v13 = vmul.f32 %v6208_v1, %v6207_v42  ;;  %v1720_v2 = vmul.f32 %v5116_v14, %v1237_v59  ;;  %v6210_v59 = vld [vmem:[#allocation26_spill] sm:$0xff] }
 0x27a   : > { %v1871_v46 = vadd.f32 %v1735_v52, %v5078_v18  ;;  %v1554_v52 = vmul.f32 %v5136_v37, %v1221_v53  ;;  %v5215_v18 = vmax.f32 %v1902_v19, 0.0  ;;  %v1370_v3 = vadd.f32 %v1354_v25, %v1256_v47 }
 0x27b   : > { %v1462_v31 = vpop.permute.xlu1 %1461  ;;  %v1736_v16 = vadd.f32 %v1720_v2, %v1702_v15  ;;  %v1388_v20 = vmul.f32 %v5160_v32, %v1205_v13  ;;  %v1222_v42 = vmul.f32 %v6192_v4, %v6210_v59  ;;  %v1355_v53 = vmul.f32 %v4804_v54, %v4967_v10  ;;  %v6211_v13 = vld [vmem:[#allocation45_spill] sm:$0xff] }
 0x27c   : > { %v1887_v24 = vadd.f32 %v1871_v46, %v1403_v50  ;;  %v1520_v48 = vmul.f32 %v5128_v7, %v1462_v31  ;;  %6209 = vst [vmem:[#allocation6_spill] sm:$0xff] %v5215_v18  ;;  %v1477_v31 = vpop.permute.xlu0 %1476  ;;  %v1423_v25 = vmul.f32 %v5066_v57, %v6191_v38  ;;  %v1257_v47 = vmul.f32 %v5152_v55, %v6210_v59 }
 0x27d   : > { %v1404_v50 = vadd.f32 %v1388_v20, %v1370_v3  ;;  %v1555_v10 = vmul.f32 %v5136_v37, %v1222_v42  ;;  %v6213_v20 = vld [vmem:[#allocation14_spill] sm:$0xff] }
 0x27e   : > { %v1536_v1 = vadd.f32 %v1520_v48, %v1422_v12  ;;  %v1903_v45 = vadd.f32 %v1887_v24, %v1832_v11  ;;  %v5228_v15 = vpop.permute.xlu2 %1320  ;;  %v1206_v12 = vmul.f32 %v6211_v13, %v6210_v59  ;;  %v5237_v2 = vpop.f32.mrf.mxu0  ;;  %v1371_v24 = vadd.f32 %v1355_v53, %v1257_v47  ;;  %v6214_v53 = vld [vmem:[#allocation35_spill] sm:$0xff]  ;;  %v6216_v47 = vld [vmem:[#allocation36_spill] sm:$0xff] }
 0x280   : > { %v1570_v22 = vadd.f32 %v1554_v52, %v1536_v1  ;;  %2788 = vmatmul.msk.f32.gmra.mxu1 %vm1939_vm9, %v5215_v18  ;;  %2804 = vmatmul.msk.f32.gmra.mxu2 %vm1939_vm9, %v5215_v18  ;;  %v1835_v52 = vadd.f32 %v4794_v35, %v5131_v28  ;;  %v5242_v3 = vmax.f32 %v1903_v45, 0.0  ;;  %v1389_v11 = vmul.f32 %v5160_v32, %v1206_v12 }
 0x281   : > { %v1522_v1 = vmul.f32 %v5128_v7, %v1472_v36 }
 0x282   : > { %v1872_v19 = vadd.f32 %v1736_v16, %v1570_v22  ;;  %6212 = vst [vmem:[#allocation46_spill] sm:$0xff] %v5242_v3  ;;  %v1424_v22 = vmul.f32 %v5066_v57, %v6213_v20  ;;  %v1405_v59 = vadd.f32 %v1389_v11, %v1371_v24  ;;  %v6219_v11 = vld [vmem:[#allocation29_spill] sm:$0xff] }
 0x283   : > { %v1467_v46 = vpop.permute.xlu1 %1466 }
 0x284   : > { %v1888_v48 = vadd.f32 %v1872_v19, %v1404_v50  ;;  %v1521_v4 = vmul.f32 %v5128_v7, %v1467_v46  ;;  %v1239_v50 = vmul.f32 %v6214_v53, %v6213_v20  ;;  %v1482_v45 = vpop.permute.xlu0 %1481  ;;  %v1538_v36 = vadd.f32 %v1522_v1, %v1424_v22  ;;  %v6215_v46 = vld [vmem:[#allocation19_spill] sm:$0xff] }
 0x285   : > { %v1590_v13 = vmul.f32 %v5108_v60, %v6215_v46  ;;  %v6220_v1 = vld [vmem:[#allocation43_spill] sm:$0xff]  ;;  %v1523_v22 = vmul.f32 %v5128_v7, %v1477_v31  ;;  %v1357_v53 = vmul.f32 %v4804_v54, %v5167_v21  ;;  %v6223_v21 = vld [vmem:[#allocation52_spill] sm:$0xff] }
 0x286   : > { %v1537_v38 = vadd.f32 %v1521_v4, %v1423_v25  ;;  %v1904_v42 = vadd.f32 %v1888_v48, %v1835_v52  ;;  %v1556_v4 = vmul.f32 %v5136_v37, %v6216_v47  ;;  %v1722_v24 = vmul.f32 %v5116_v14, %v1239_v50 }
 0x288   : > { %v1571_v16 = vadd.f32 %v1555_v10, %v1537_v38  ;;  %2789 = vmatmul.msk.f32.gmra.mxu1 %vm1939_vm9, %v5242_v3  ;;  %2805 = vmatmul.msk.f32.gmra.mxu2 %vm1939_vm9, %v5242_v3  ;;  %v5260_v10 = vpop.permute.xlu2 %1325  ;;  %v5264_v48 = vmax.f32 %v1904_v42, 0.0  ;;  %v5267_v38 = vpop.f32.mrf.mxu0  ;;  %v1572_v20 = vadd.f32 %v1556_v4, %v1538_v36  ;;  %v6221_v42 = vld [vmem:[#allocation30_spill] sm:$0xff]  ;;  %v1259_v36 = vmul.f32 %v5152_v55, %v6219_v11  ;;  %v6222_v4 = vld [vmem:[#allocation49_spill] sm:$0xff] }
 0x289   : > { %6218 = vst [vmem:[#allocation47_spill] sm:$0xff] %v5267_v38  ;;  %v1425_v50 = vmul.f32 %v5066_v57, %v6221_v42  ;;  %v6234_v3 = vld [vmem:[#allocation33_spill] sm:$0xff]  ;;  %v6237_v38 = vld [vmem:[#allocation48_spill] sm:$0xff] }
 0x28a   : > { %v1873_v28 = vadd.f32 %v5121_v0, %v1571_v16  ;;  %v1838_v0 = vadd.f32 %v4794_v35, %v5145_v56  ;;  %6217 = vst [vmem:[#allocation51_spill] sm:$0xff] %v5264_v48  ;;  %v1208_v16 = vmul.f32 %v6220_v1, %v6219_v11  ;;  %v1224_v56 = vmul.f32 %v4700_v41, %v6219_v11 }
 0x28b   : > { %v1638_v19 = vpop.permute.xlu1 %1637 }
 0x28c   : > { %v1889_v25 = vadd.f32 %v1873_v28, %v1405_v59  ;;  %v1688_v12 = vmul.f32 %v4698_v62, %v1638_v19  ;;  %v1240_v28 = vmul.f32 %v4700_v41, %v6221_v42  ;;  %v1391_v46 = vmul.f32 %v5160_v32, %v1208_v16  ;;  %v1487_v11 = vpop.permute.xlu0 %1486  ;;  %v6226_v42 = vld [vmem:[#allocation42_spill] sm:$0xff] }
 0x28d   : > { %v1591_v41 = vmul.f32 %v5108_v60, %v6222_v4 }
 0x28e   : > { %v1704_v52 = vadd.f32 %v1688_v12, %v1590_v13  ;;  %v1905_v31 = vadd.f32 %v1889_v25, %v1838_v0  ;;  %v1539_v12 = vadd.f32 %v1523_v22, %v1425_v50  ;;  %v1557_v25 = vmul.f32 %v5136_v37, %v1224_v56  ;;  %v6224_v0 = vld [vmem:[#allocation28_spill] sm:$0xff] }
 0x28f   : > { %v1426_v1 = vmul.f32 %v5066_v57, %v6224_v0  ;;  %v1723_v16 = vmul.f32 %v5116_v14, %v1240_v28  ;;  %v6227_v50 = vld [vmem:[#allocation16_spill] sm:$0xff]  ;;  %v5307_v56 = vmul.f32 %v5152_v55, %v6226_v42 }
 0x290   : > { %v1738_v59 = vadd.f32 %v1722_v24, %v1704_v52  ;;  %2790 = vmatmul.msk.f32.gmra.mxu1 %vm1939_vm9, %v5264_v48  ;;  %2806 = vmatmul.msk.f32.gmra.mxu2 %vm1939_vm9, %v5264_v48  ;;  %v1211_v52 = vmul.f32 %v6223_v21, %v4418_v6  ;;  %v5299_v22 = vmax.f32 %v1905_v31, 0.0  ;;  %v6229_v21 = vld [vmem:[#allocation34_spill] sm:$0xff]  ;;  %v1524_v31 = vmul.f32 %v5128_v7, %v1482_v45  ;;  %v6235_v45 = vld [vmem:[#allocation55_spill] sm:$0xff] }
 0x291   : > { %v5311_v28 = vmul.f32 %v5066_v57, %v6229_v21  ;;  %v5326_v48 = vmul.f32 %v4977_v27, %v4562_v58  ;;  %v5341_v27 = vmul.f32 %v5152_v55, %v4418_v6 }
 0x292   : > { %v1874_v19 = vadd.f32 %v1738_v59, %v1572_v20  ;;  %v1373_v20 = vadd.f32 %v1357_v53, %v1259_v36  ;;  %6225 = vst [vmem:[#allocation13_spill] sm:$0xff] %v5299_v22  ;;  %v5313_v53 = vpop.permute.xlu2 %1340 }
 0x293   : > { %v1643_v13 = vpop.permute.xlu1 %1642  ;;  %6230 = vst [vmem:[#allocation10_spill] sm:$0xff] %v5313_v53 }
 0x294   : > { %v1890_v47 = vadd.f32 %v1874_v19, %v5055_v61  ;;  %v1689_v24 = vmul.f32 %v4698_v62, %v1643_v13  ;;  %v1841_v61 = vadd.f32 %v4794_v35, %v5165_v34  ;;  %v1210_v19 = vmul.f32 %v6227_v50, %v6226_v42  ;;  %v6228_v13 = vld [vmem:[#allocation39_spill] sm:$0xff]  ;;  %6233 = vst [vmem:[#allocation11_spill] sm:$0xff] %v5326_v48 }
 0x295   : > { %v1427_v4 = vmul.f32 %v5066_v57, %v6228_v13  ;;  %v1573_v34 = vadd.f32 %v1557_v25, %v1539_v12  ;;  %v1592_v12 = vmul.f32 %v5108_v60, %v6234_v3  ;;  %v1241_v25 = vmul.f32 %v6235_v45, %v6224_v0 }
 0x296   : > { %v1705_v59 = vadd.f32 %v1689_v24, %v1591_v41  ;;  %v5320_v41 = vpop.f32.mrf.mxu0  ;;  %v6232_v24 = vld [vmem:[#allocation50_spill] sm:$0xff]  ;;  %v5344_v3 = vmul.f32 %v5160_v32, %v1211_v52  ;;  %v5358_v52 = vmul.f32 %v5066_v57, %v4170_v49 }
 0x297   : > { %6231 = vst [vmem:[#allocation38_spill] sm:$0xff] %v5320_v41  ;;  %v1212_v50 = vmul.f32 %v4755_v8, %v6232_v24  ;;  %v6236_v41 = vld [vmem:[#allocation22_spill] sm:$0xff]  ;;  %v5337_v8 = vmul.f32 %v5160_v32, %v1210_v19  ;;  %v1724_v19 = vmul.f32 %v5116_v14, %v1241_v25  ;;  %v1226_v25 = vmul.f32 %v4857_v9, %v6226_v42 }
 0x298   : > { %v1739_v36 = vadd.f32 %v1723_v16, %v1705_v59  ;;  %2791 = vmatmul.msk.f32.gmra.mxu1 %vm1939_vm9, %v5299_v22  ;;  %2807 = vmatmul.msk.f32.gmra.mxu2 %vm1939_vm9, %v5299_v22  ;;  %v1407_v16 = vadd.f32 %v1391_v46, %v1373_v20  ;;  %v1358_v59 = vmul.f32 %v4804_v54, %v5196_v17 }
 0x299   : > { %v1906_v22 = vadd.f32 %v1890_v47, %v1841_v61  ;;  %v1209_v53 = vmul.f32 %v6237_v38, %v6236_v41  ;;  %v1540_v46 = vadd.f32 %v1524_v31, %v1426_v1  ;;  %v1260_v17 = vmul.f32 %v5152_v55, %v6236_v41  ;;  %v6238_v61 = vld [vmem:[#allocation57_spill] sm:$0xff] }
 0x29a   : > { %v1875_v18 = vadd.f32 %v1739_v36, %v1573_v34  ;;  %v1558_v38 = vmul.f32 %v5136_v37, %v6238_v61  ;;  %v6239_v34 = vld [vmem:[#allocation37_spill] sm:$0xff]  ;;  %v1844_v31 = vadd.f32 %v4794_v35, %v5204_v43  ;;  %v5372_v61 = vmul.f32 %v5160_v32, %v1212_v50 }
 0x29b   : > { %v1648_v0 = vpop.permute.xlu1 %1647  ;;  %v5354_v36 = vmul.f32 %v5066_v57, %v6239_v34  ;;  %v1374_v1 = vadd.f32 %v1358_v59, %v1260_v17  ;;  %v1392_v45 = vmul.f32 %v5160_v32, %v1209_v53  ;;  %v1525_v17 = vmul.f32 %v5128_v7, %v1487_v11  ;;  %v1331_v53 = vpop.permute.xlu2 %1330 }
 0x29c   : > { %v1891_v47 = vadd.f32 %v1875_v18, %v1407_v16  ;;  %v1690_v20 = vmul.f32 %v4698_v62, %v1648_v0  ;;  %v5362_v18 = vmax.f32 %v1906_v22, 0.0  ;;  %v1492_v16 = vpop.permute.xlu0 %1491  ;;  %v5369_v0 = vmul.f32 %v5152_v55, %v6232_v24  ;;  %v6240_v22 = vld [vmem:[#allocation56_spill] sm:$0xff] }
 0x29d   : > { %v1574_v59 = vadd.f32 %v1558_v38, %v1540_v46  ;;  %v1214_v42 = vmul.f32 %v4907_v26, %v6240_v22  ;;  %v1242_v50 = vmul.f32 %v4857_v9, %v6228_v13  ;;  %v5389_v11 = vmul.f32 %v5108_v60, %v4552_v51  ;;  %v6241_v9 = vld [vmem:[#allocation53_spill] sm:$0xff] }
 0x29e   : > { %v1706_v41 = vadd.f32 %v1690_v20, %v1592_v12  ;;  %v5383_v12 = vmul.f32 %v5152_v55, %v4562_v58  ;;  %v1408_v46 = vadd.f32 %v1392_v45, %v1374_v1  ;;  %v1359_v20 = vmul.f32 %v4804_v54, %v5228_v15 }
 0x29f   : > { %v1907_v38 = vadd.f32 %v1891_v47, %v1844_v31  ;;  %v1227_v26 = vmul.f32 %v4917_v30, %v4418_v6  ;;  %v5399_v48 = vmul.f32 %v5152_v55, %v6240_v22  ;;  %v1593_v13 = vmul.f32 %v5108_v60, %v6241_v9 }
 0x2a0   : > { %v1740_v43 = vadd.f32 %v1724_v19, %v1706_v41  ;;  %2792 = vmatmul.msk.f32.gmra.mxu1 %vm1939_vm9, %v5362_v18  ;;  %2808 = vmatmul.msk.f32.gmra.mxu2 %vm1939_vm9, %v5362_v18  ;;  %v5393_v41 = vpop.f32.mrf.mxu0  ;;  %v1231_v1 = vmul.f32 %v5080_v63, %v4562_v58  ;;  %v1541_v45 = vadd.f32 %v1525_v17, %v1427_v4 }
 0x2a1   : > { %v1559_v15 = vmul.f32 %v5136_v37, %v1226_v25  ;;  %v1594_v6 = vmul.f32 %v5108_v60, %v4579_v29  ;;  %v5414_v9 = vmul.f32 %v5066_v57, %v4622_v44  ;;  %v1375_v58 = vadd.f32 %v1359_v20, %v5307_v56 }
 0x2a2   : > { %v1876_v19 = vadd.f32 %v1740_v43, %v1574_v59  ;;  %v1725_v59 = vmul.f32 %v5116_v14, %v1242_v50  ;;  %v1243_v43 = vmul.f32 %v4917_v30, %v6229_v21  ;;  %v1847_v4 = vadd.f32 %v4794_v35, %v5237_v2 }
 0x2a3   : > { %v1653_v51 = vpop.permute.xlu1 %1652  ;;  %v5419_v25 = vmax.f32 %v1907_v38, 0.0  ;;  %v1560_v17 = vmul.f32 %v5136_v37, %v1227_v26  ;;  %v5424_v29 = vmul.f32 %v5066_v57, %v4757_v40  ;;  %v5427_v30 = vmul.f32 %v5136_v37, %v1231_v1 }
 0x2a4   : > { %v1892_v47 = vadd.f32 %v1876_v19, %v1408_v46  ;;  %v1691_v31 = vmul.f32 %v4698_v62, %v1653_v51  ;;  %v5431_v21 = vmul.f32 %v5080_v63, %v4170_v49  ;;  %v1575_v56 = vadd.f32 %v1559_v15, %v1541_v45  ;;  %v5463_v15 = vld [vmem:[%s5910_s2 + $0xc] ss:$0 sm:$0xff] }
 0x2a5   : > { %v1526_v2 = vmul.f32 %v5128_v7, %v1492_v16  ;;  %v1397_v57 = vmul.f32 %v5160_v32, %v1214_v42  ;;  %v1230_v20 = vmul.f32 %v4982_v23, %v6240_v22  ;;  %v1726_v38 = vmul.f32 %v5116_v14, %v1243_v43 }
 0x2a6   : > { %v1707_v62 = vadd.f32 %v1691_v31, %v1593_v13  ;;  %v1597_v49 = vmul.f32 %v5108_v60, %v4838_v33  ;;  %v1409_v63 = vadd.f32 %v5337_v8, %v1375_v58  ;;  %v1360_v16 = vmul.f32 %v4804_v54, %v5260_v10  ;;  %v1346_v13 = vpop.permute.xlu2 %1345  ;;  %v6242_v33 = vld [vmem:[#allocation17_spill] sm:$0xff]  ;;  %v6244_v58 = vld [vmem:[#allocation47_spill] sm:$0xff] }
 0x2a7   : > { %v1908_v19 = vadd.f32 %v1892_v47, %v1847_v4  ;;  %v1228_v42 = vmul.f32 %v5043_v39, %v6232_v24  ;;  %v1246_v22 = vmul.f32 %v4982_v23, %v4757_v40  ;;  %v5453_v1 = vmul.f32 %v5108_v60, %v4889_v5  ;;  %v6243_v5 = vld [vmem:[#allocation10_spill] sm:$0xff] }
 0x2a8   : > { %v1507_v50 = vpop.permute.xlu0 %1506  ;;  %v1741_v46 = vadd.f32 %v1725_v59, %v1707_v62  ;;  %2793 = vmatmul.msk.f32.gmra.mxu1 %vm1939_vm9, %v5419_v25  ;;  %2809 = vmatmul.msk.f32.gmra.mxu2 %vm1939_vm9, %v5419_v25  ;;  %v5457_v8 = vsel %vm1939_vm9, %v6242_v33, inf  ;;  %v1542_v10 = vadd.f32 %v1526_v2, %v5311_v28  ;;  %v5466_v47 = vpop.f32.mrf.mxu0  ;;  %v5470_v40 = vsel %vm1939_vm9, %v6242_v33, -inf }
 0x2a9   : > { %v1363_v23 = vmul.f32 %v4804_v54, %v6243_v5  ;;  %v1361_v31 = vmul.f32 %v4804_v54, %v1331_v53  ;;  %v1563_v28 = vmul.f32 %v5136_v37, %v1230_v20  ;;  %v1244_v59 = vmul.f32 %v5043_v39, %v6239_v34  ;;  %v6245_v54 = vld [vmem:[#allocation58_spill] sm:$0xff] }
 0x2aa   : > { %v1877_v26 = vadd.f32 %v1741_v46, %v1575_v56  ;;  %v1376_v43 = vadd.f32 %v1360_v16, %v5341_v27  ;;  %v1850_v4 = vadd.f32 %v4794_v35, %v6244_v58  ;;  %v5481_v62 = vmax.f32 %v1908_v19, 0.0  ;;  %v6246_v53 = vld [vmem:[#allocation54_spill] sm:$0xff] }
 0x2ab   : > { %v1658_v51 = vpop.permute.xlu1 %1657  ;;  %v5484_v2 = vmul.f32 %v5136_v37, %v1228_v42  ;;  %v1229_v20 = vmul.f32 %v6246_v53, %v6245_v54  ;;  %v1576_v27 = vadd.f32 %v1560_v17, %v1542_v10  ;;  %v1529_v34 = vmul.f32 %v5128_v7, %v1507_v50  ;;  %v6248_v42 = vld [vmem:[#allocation38_spill] sm:$0xff] }
 0x2ac   : > { %v1893_v45 = vadd.f32 %v1877_v26, %v1409_v63  ;;  %v1692_v24 = vmul.f32 %v5463_v15, %v1658_v51  ;;  %v1729_v63 = vmul.f32 %v5116_v14, %v1246_v22  ;;  %v6247_v26 = vld [vmem:[#allocation18_spill] sm:$0xff]  ;;  %v1379_v16 = vadd.f32 %v1363_v23, %v5399_v48 }
 0x2ad   : > { %v5491_v39 = vsel %vm1939_vm9, %v6247_v26, inf  ;;  %v1377_v19 = vadd.f32 %v1361_v31, %v5369_v0  ;;  %v1264_v17 = vmul.f32 %v5152_v55, %v6245_v54  ;;  %v5507_v50 = vmul.f32 %v5116_v14, %v1244_v59  ;;  %v5513_v51 = vld [vmem:[%s5910_s2 + $0x10] ss:$0 sm:$0xff]  ;;  %v6249_v0 = vld [vmem:[#allocation15_spill] sm:$0xff] }
 0x2ae   : > { %v1708_v56 = vadd.f32 %v1692_v24, %v1594_v6  ;;  %v5500_v6 = vsel %vm1939_vm9, %v6247_v26, -inf  ;;  %v1853_v22 = vadd.f32 %v5513_v51, %v6248_v42  ;;  %v1909_v10 = vadd.f32 %v1893_v45, %v1850_v4  ;;  %v6250_v31 = vld [vmem:[#allocation6_spill] sm:$0xff]  ;;  %v6252_v42 = vld [vmem:[#allocation51_spill] sm:$0xff] }
 0x2af   : > { %v1396_v5 = vmul.f32 %v5160_v32, %v6249_v0  ;;  %v5520_v23 = vmul.f32 %v5136_v37, %v1229_v20  ;;  %v5526_v59 = vsel %vm1939_vm9, %v6250_v31, -inf  ;;  %v5532_v54 = vadd.f32 %v5372_v61, %v1377_v19  ;;  %v3106_v20 = vld [vmem:[%s5910_s2 + $0xa] ss:$0 sm:$0xff] }
 0x2b0   : > { %v1497_v46 = vpop.permute.xlu0 %1496  ;;  %v1742_v35 = vadd.f32 %v1726_v38, %v1708_v56  ;;  %2794 = vmatmul.msk.f32.gmra.mxu1 %vm1939_vm9, %v5481_v62  ;;  %2810 = vmatmul.msk.f32.gmra.mxu2 %vm1939_vm9, %v5481_v62  ;;  %v1410_v38 = vadd.f32 %v5344_v3, %v1376_v43  ;;  %v2161_v3 = vsel %vm1939_vm9, %v6250_v31, inf  ;;  %v1545_v43 = vadd.f32 %v1529_v34, %v5424_v29 }
 0x2b1   : > { %v1527_v45 = vmul.f32 %v5128_v7, %v1497_v46  ;;  %v1413_v56 = vadd.f32 %v1397_v57, %v1379_v16  ;;  %v5536_v37 = vadd.f32 %v5513_v51, %v5393_v41  ;;  %v1861_v46 = vpop.f32.mrf.mxu0  ;;  %v5545_v16 = vmul.f32 %v3106_v20, %v1346_v13 }
 0x2b2   : > { %v1878_v48 = vadd.f32 %v1742_v35, %v1576_v27  ;;  %v5541_v35 = vmax.f32 %v1909_v10, 0.0  ;;  %v2164_v41 = vsel %vm1939_vm9, %v6252_v42, inf }
 0x2b3   : > { %v1673_v24 = vpop.permute.xlu1 %1672  ;;  %v1336_v55 = vpop.permute.xlu2 %1335  ;;  %v1543_v10 = vadd.f32 %v1527_v45, %v5354_v36 }
 0x2b4   : > { %v1894_v58 = vadd.f32 %v1878_v48, %v1410_v38  ;;  %v1695_v4 = vmul.f32 %v5463_v15, %v1673_v24  ;;  %v1362_v27 = vmul.f32 %v3106_v20, %v1336_v55  ;;  %v6251_v38 = vld [vmem:[#allocation46_spill] sm:$0xff]  ;;  %v1579_v24 = vadd.f32 %v1563_v28, %v1545_v43 }
 0x2b5   : > { %v2162_v57 = vsel %vm1939_vm9, %v6251_v38, inf  ;;  %v2122_v48 = vsel %vm1939_vm9, %v6251_v38, -inf  ;;  %v2165_v43 = vmin.f32 %v5491_v39, %v2164_v41 }
 0x2b6   : > { %v1910_v29 = vadd.f32 %v1894_v58, %v1853_v22  ;;  %v1711_v34 = vadd.f32 %v1695_v4, %v1597_v49  ;;  %v1378_v61 = vadd.f32 %v1362_v27, %v1264_v17  ;;  %v6253_v49 = vld [vmem:[#allocation21_spill] sm:$0xff]  ;;  %v1862_v22 = vadd.f32 %v5513_v51, %v1861_v46 }
 0x2b7   : > { %v2160_v13 = vsel %vm1939_vm9, %v6253_v49, inf  ;;  %v2163_v55 = vmin.f32 %v5457_v8, %v2162_v57  ;;  %v2120_v28 = vsel %vm1939_vm9, %v6253_v49, -inf  ;;  %v2123_v58 = vmax.f32 %v5470_v40, %v2122_v48  ;;  %v6254_v4 = vld [vmem:[#allocation13_spill] sm:$0xff] }
 0x2b8   : > { %v1512_v19 = vpop.permute.xlu0 %1511  ;;  %v1745_v0 = vadd.f32 %v1729_v63, %v1711_v34  ;;  %2795 = vmatmul.msk.f32.gmra.mxu1 %vm1939_vm9, %v5541_v35  ;;  %2811 = vmatmul.msk.f32.gmra.mxu2 %vm1939_vm9, %v5541_v35  ;;  %v5558_v17 = vadd.f32 %v1396_v5, %v1378_v61  ;;  %v5564_v36 = vmax.f32 %v1910_v29, 0.0  ;;  %v2166_v20 = vsel %vm1939_vm9, %v6254_v4, inf }
 0x2b9   : > { %v2168_v5 = vsel %vm1939_vm9, %v5362_v18, inf  ;;  %v2170_v8 = vsel %vm1939_vm9, %v5419_v25, inf  ;;  %v2172_v27 = vsel %vm1939_vm9, %v5481_v62, inf  ;;  %v1577_v29 = vadd.f32 %v5484_v2, %v1543_v10 }
 0x2ba   : > { %v1881_v63 = vadd.f32 %v1745_v0, %v1579_v24  ;;  %v2124_v40 = vsel %vm1939_vm9, %v6252_v42, -inf  ;;  %v2167_v46 = vmin.f32 %v2160_v13, %v2166_v20  ;;  %v2169_v57 = vmin.f32 %v2161_v3, %v2168_v5 }
 0x2bb   : > { %v1663_v45 = vpop.permute.xlu1 %1662  ;;  %v5580_v61 = vmin.f32 %v2163_v55, %v2170_v8  ;;  %v5582_v41 = vmin.f32 %v2165_v43, %v2172_v27  ;;  %v2174_v0 = vsel %vm1939_vm9, %v5541_v35, inf  ;;  %v2176_v2 = vsel %vm1939_vm9, %v5564_v36, inf }
 0x2bc   : > { %v1897_v34 = vadd.f32 %v1881_v63, %v1413_v56  ;;  %v1693_v39 = vmul.f32 %v5463_v15, %v1663_v45  ;;  %v1530_v56 = vmul.f32 %v5128_v7, %v1512_v19  ;;  %v5590_v63 = vmin.f32 %v2167_v46, %v2174_v0 }
 0x2bd   : > { %v5592_v13 = vmin.f32 %v2169_v57, %v2176_v2  ;;  %v2126_v3 = vsel %vm1939_vm9, %v6254_v4, -inf  ;;  %v2125_v43 = vmax.f32 %v5500_v6, %v2124_v40  ;;  %v2128_v45 = vsel %vm1939_vm9, %v5362_v18, -inf  ;;  %v6255_v2 = vld [vmem:[#allocation11_spill] sm:$0xff] }
 0x2be   : > { %v1913_v48 = vadd.f32 %v1897_v34, %v1862_v22  ;;  %v1709_v24 = vadd.f32 %v1693_v39, %v5453_v1  ;;  %v2127_v19 = vmax.f32 %v2120_v28, %v2126_v3  ;;  %v2130_v20 = vsel %vm1939_vm9, %v5419_v25, -inf }
 0x2bf   : > { %v2134_v6 = vsel %vm1939_vm9, %v5541_v35, -inf  ;;  %v2129_v34 = vmax.f32 %v5526_v59, %v2128_v45  ;;  %v2131_v39 = vmax.f32 %v2123_v58, %v2130_v20  ;;  %v2136_v0 = vsel %vm1939_vm9, %v5564_v36, -inf }
 0x2c0   : > { %v1502_v10 = vpop.permute.xlu0 %1501  ;;  %v5596_v55 = vmax.f32 %v1913_v48, 0.0  ;;  %v1743_v1 = vadd.f32 %v5507_v50, %v1709_v24  ;;  %2796 = vmatmul.msk.f32.gmra.mxu1 %vm1939_vm9, %v5564_v36  ;;  %2812 = vmatmul.msk.f32.gmra.mxu2 %vm1939_vm9, %v5564_v36  ;;  %v2132_v50 = vsel %vm1939_vm9, %v5481_v62, -inf  ;;  %v1380_v48 = vadd.f32 %v5545_v16, %v5383_v12 }
 0x2c1   : > { %v1528_v22 = vmul.f32 %v5128_v7, %v1502_v10  ;;  %v2133_v40 = vmax.f32 %v2125_v43, %v2132_v50  ;;  %v2135_v24 = vmax.f32 %v2127_v19, %v2134_v6  ;;  %v1864_v10 = vpop.f32.mrf.mxu3 }
 0x2c2   : > { %v1879_v5 = vadd.f32 %v1743_v1, %v1577_v29  ;;  %2799 = vmatmul.msk.f32.vlgmr.msrb.gmra.mxu3 %vm1939_vm9, %v5596_v55  ;;  %v2182_v28 = vsel %vm1939_vm9, %v5596_v55, inf  ;;  %v1546_v29 = vadd.f32 %v1530_v56, %v5358_v52  ;;  %v2142_v59 = vsel %vm1939_vm9, %v5596_v55, -inf }
 0x2c3   : > { %v1544_v7 = vadd.f32 %v1528_v22, %v5414_v9  ;;  %v1678_v8 = vpop.permute.xlu1 %1677  ;;  %v2183_v27 = vmin.f32 %v5590_v63, %v2182_v28  ;;  %v1398_v56 = vmul.f32 %v5160_v32, %v6255_v2  ;;  %v2143_v12 = vmax.f32 %v2135_v24, %v2142_v59  ;;  %v2005_v59 = vpop.f32.mrf.mxu1 }
 0x2c4   : > { %v1895_v9 = vadd.f32 %v1879_v5, %v5532_v54  ;;  %v1696_v57 = vmul.f32 %v5463_v15, %v1678_v8  ;;  %v1730_v54 = vmul.f32 %v5116_v14, %v5431_v21  ;;  %v1580_v16 = vadd.f32 %v5427_v30, %v1546_v29 }
 0x2c5   : > { %v1578_v46 = vadd.f32 %v5520_v23, %v1544_v7  ;;  %v2137_v23 = vmax.f32 %v2129_v34, %v2136_v0  ;;  %v1414_v1 = vadd.f32 %v1398_v56, %v1380_v48 }
 0x2c6   : > { %v1911_v58 = vadd.f32 %v1895_v9, %v5536_v37  ;;  %v1712_v52 = vadd.f32 %v1696_v57, %v5389_v11  ;;  %v1245_v37 = vmul.f32 %v6246_v53, %v4622_v44  ;;  %v1865_v11 = vadd.f32 %v5513_v51, %v1864_v10  ;;  %v6256_v53 = vld [vmem:[#allocation41_spill] sm:$0xff] }
 0x2c7   : > { %v1596_v45 = vmul.f32 %v5108_v60, %v6256_v53 }
 0x2c8   : > { %v5637_v63 = vmax.f32 %v1911_v58, 0.0  ;;  %v1746_v3 = vadd.f32 %v1730_v54, %v1712_v52  ;;  %v1728_v5 = vmul.f32 %v5116_v14, %v1245_v37  ;;  %v1859_v14 = vadd.f32 %v5513_v51, %v5466_v47 }
 0x2ca   : > { %2797 = vmatmul.msk.f32.gmra.mxu1 %vm1939_vm9, %v5637_v63  ;;  %2813 = vmatmul.msk.f32.gmra.mxu2 %vm1939_vm9, %v5637_v63  ;;  %v1882_v32 = vadd.f32 %v1746_v3, %v1580_v16  ;;  %v2178_v21 = vsel %vm1939_vm9, %v5637_v63, inf  ;;  %v2138_v30 = vsel %vm1939_vm9, %v5637_v63, -inf }
 0x2cb   : > { %v1668_v22 = vpop.permute.xlu1 %1667  ;;  %v2179_v19 = vmin.f32 %v5580_v61, %v2178_v21  ;;  %v2139_v43 = vmax.f32 %v2131_v39, %v2138_v30  ;;  %v2008_v58 = vpop.f32.mrf.mxu1 }
 0x2cc   : > { %v1898_v44 = vadd.f32 %v1882_v32, %v1414_v1  ;;  %v1694_v20 = vmul.f32 %v5463_v15, %v1668_v22 }
 0x2ce   : > { %v1914_v50 = vadd.f32 %v1898_v44, %v1865_v11  ;;  %v1710_v7 = vadd.f32 %v1694_v20, %v1596_v45 }
 0x2d0   : > { %v5655_v28 = vmax.f32 %v1914_v50, 0.0  ;;  %v1744_v6 = vadd.f32 %v1728_v5, %v1710_v7  ;;  %v5687_v50 = vld [vmem:[%s5910_s2 + $0x11] ss:$0 sm:$0xff] }
 0x2d2   : > { %v1880_v8 = vadd.f32 %v1744_v6, %v1578_v46  ;;  %2800 = vmatmul.msk.f32.gmra.mxu3 %vm1939_vm9, %v5655_v28  ;;  %v2184_v61 = vsel %vm1939_vm9, %v5655_v28, inf  ;;  %v2144_v34 = vsel %vm1939_vm9, %v5655_v28, -inf }
 0x2d3   : > { %v2185_v60 = vmin.f32 %v5592_v13, %v2184_v61  ;;  %v2145_v15 = vmax.f32 %v2137_v23, %v2144_v34 }
 0x2d4   : > { %v1896_v39 = vadd.f32 %v1880_v8, %v5558_v17 }
 0x2d5   : > { %v2187_v29 = vmin.f32 %v2183_v27, %v2185_v60  ;;  %v2147_v9 = vmax.f32 %v2143_v12, %v2145_v15 }
 0x2d6   : > { %v1912_v46 = vadd.f32 %v1896_v39, %v1859_v14 }
 0x2d8   : > { %v5667_v57 = vmax.f32 %v1912_v46, 0.0  ;;  %v5703_v46 = vld [vmem:[%s5910_s2 + $0x13] ss:$0 sm:$0xff] }
 0x2da   : > { %2798 = vmatmul.msk.f32.gmra.mxu1 %vm1939_vm9, %v5667_v57  ;;  %2814 = vmatmul.msk.f32.gmra.mxu2 %vm1939_vm9, %v5667_v57  ;;  %v2180_v13 = vsel %vm1939_vm9, %v5667_v57, inf  ;;  %v2140_v48 = vsel %vm1939_vm9, %v5667_v57, -inf }
 0x2db   : > { %2815 = vmatmul.msk.f32.vlgmr.msra.gmra.mxu3 %vm1939_vm9, %v5596_v55  ;;  %v2181_v47 = vmin.f32 %v5582_v41, %v2180_v13  ;;  %v2141_v51 = vmax.f32 %v2133_v40, %v2140_v48 }
 0x2dd   : > { %v2186_v17 = vmin.f32 %v2179_v19, %v2181_v47  ;;  %v2146_v27 = vmax.f32 %v2139_v43, %v2141_v51 }
 0x2df   : > { %v2188_v24 = vmin.f32 %v2186_v17, %v2187_v29  ;;  %v2148_v0 = vmax.f32 %v2146_v27, %v2147_v9 }
 0x2e1   : > { %2189 = vmin.xlane.f32.xlu1 %v2188_v24  ;;  %2149 = vmax.xlane.f32.xlu0 %v2148_v0 }
 0x2e3   : > { %2816 = vmatmul.msk.f32.gmra.mxu3 %vm1939_vm9, %v5655_v28 }
 0x2f5   : > { %v2011_v52 = vpop.f32.mrf.mxu1 }
 0x2fd   : > { %v2014_v1 = vpop.f32.mrf.mxu1 }
 0x305   : > { %v2017_v30 = vpop.f32.mrf.mxu1 }
 0x30d   : > { %v2020_v22 = vpop.f32.mrf.mxu1 }
 0x315   : > { %v2023_v19 = vpop.f32.mrf.mxu1 }
 0x31d   : > { %v2026_v43 = vpop.f32.mrf.mxu1 }
 0x325   : > { %v2029_v44 = vpop.f32.mrf.mxu1 }
 0x32d   : > { %v2032_v45 = vpop.f32.mrf.mxu1 }
 0x335   : > { %v2035_v6 = vpop.f32.mrf.mxu1 }
 0x33d   : > { %v2038_v47 = vpop.f32.mrf.mxu1 }
 0x354   : > { %v2190_v54 = vpop.xlane.xlu1 %2189  ;;  %v2150_v23 = vpop.xlane.xlu0 %2149 }
 0x355   : > { %v2191_v2 = vrot.slane %v2190_v54, 4  ;;  %v2151_v56 = vrot.slane %v2150_v23, 4 }
 0x357   : > { %v2192_v10 = vmin.f32 %v2190_v54, %v2191_v2  ;;  %v2152_v12 = vmax.f32 %v2150_v23, %v2151_v56 }
 0x359   : > { %v2193_v41 = vrot.slane %v2192_v10, 2  ;;  %v2153_v40 = vrot.slane %v2152_v12, 2 }
 0x35b   : > { %v2154_v16 = vmax.f32 %v2152_v12, %v2153_v40  ;;  %v2194_v3 = vmin.f32 %v2192_v10, %v2193_v41 }
 0x35d   : > { %v2155_v37 = vrot.slane %v2154_v16, 1  ;;  %v2195_v11 = vrot.slane %v2194_v3, 1 }
 0x35f   : > { %v2156_v32 = vmax.f32 %v2154_v16, %v2155_v37  ;;  %v2196_v21 = vmin.f32 %v2194_v3, %v2195_v11 }
 0x361   : > { %2847 = vpush %v2156_v32 }
 0x362   : > { %2849 = vpush %v2196_v21 }
 0x392   : > { %s2848_s28 = spop %2847 }
 0x393   : > { %s2850_s29 = spop %2849 }
 0x394   : > { %s2198_s30 = ssub.f32 %s2848_s28, %s2850_s29 }
 0x396   : > { %v2199_v53 = vstv %s2198_s30 }
 0x397   : > { %3012 = vrcp.f32 %v2199_v53  ;;  %v2047_v53 = vpop.f32.mrf.mxu3 }
 0x39d   : > { %v5682_v20 = vpop.eup %3012 }
 0x39e   : > { %v2206_v5 = vmul.f32 %v5682_v20, %v2008_v58  ;;  %v2207_v7 = vmul.f32 %v5682_v20, %v2011_v52  ;;  %v2205_v8 = vmul.f32 %v5682_v20, %v2005_v59  ;;  %v2209_v61 = vmul.f32 %v5682_v20, %v2017_v30 }
 0x39f   : > { %v2210_v34 = vmul.f32 %v5682_v20, %v2020_v22  ;;  %v2208_v14 = vmul.f32 %v5682_v20, %v2014_v1  ;;  %v2213_v48 = vmul.f32 %v5682_v20, %v2029_v44  ;;  %v2212_v17 = vmul.f32 %v5682_v20, %v2026_v43  ;;  %v2041_v1 = vpop.f32.mrf.mxu1 }
 0x3a0   : > { %v2224_v60 = vadd.f32 %v5687_v50, %v2207_v7  ;;  %v2223_v15 = vadd.f32 %v5687_v50, %v2206_v5  ;;  %v2222_v39 = vadd.f32 %v5687_v50, %v2205_v8  ;;  %v2226_v29 = vadd.f32 %v5687_v50, %v2209_v61 }
 0x3a1   : > { %v2227_v9 = vadd.f32 %v5687_v50, %v2210_v34  ;;  %v2225_v13 = vadd.f32 %v5687_v50, %v2208_v14  ;;  %v2211_v27 = vmul.f32 %v5682_v20, %v2023_v19  ;;  %v2230_v59 = vadd.f32 %v5687_v50, %v2213_v48 }
 0x3a2   : > { %3014 = vtanh.f32 %v2224_v60  ;;  %v2229_v23 = vadd.f32 %v5687_v50, %v2212_v17  ;;  %v2216_v40 = vmul.f32 %v5682_v20, %v2038_v47  ;;  %v2215_v11 = vmul.f32 %v5682_v20, %v2035_v6 }
 0x3a3   : > { %3016 = vtanh.f32 %v2223_v15  ;;  %v2228_v10 = vadd.f32 %v5687_v50, %v2211_v27  ;;  %v2214_v32 = vmul.f32 %v5682_v20, %v2032_v45  ;;  %v2219_v45 = vmul.f32 %v5682_v20, %v2047_v53 }
 0x3a4   : > { %3018 = vtanh.f32 %v2222_v39  ;;  %v2233_v30 = vadd.f32 %v5687_v50, %v2216_v40  ;;  %v2232_v44 = vadd.f32 %v5687_v50, %v2215_v11  ;;  %v2217_v14 = vmul.f32 %v5682_v20, %v2041_v1 }
 0x3a5   : > { %3020 = vtanh.f32 %v2226_v29  ;;  %v2231_v5 = vadd.f32 %v5687_v50, %v2214_v32  ;;  %v2236_v29 = vadd.f32 %v5687_v50, %v2219_v45 }
 0x3a6   : > { %3022 = vtanh.f32 %v2227_v9 }
 0x3a7   : > { %3024 = vtanh.f32 %v2225_v13  ;;  %v2044_v34 = vpop.f32.mrf.mxu1 }
 0x3a8   : > { %v3015_v51 = vpop.eup %3014  ;;  %3026 = vtanh.f32 %v2230_v59  ;;  %v2218_v15 = vmul.f32 %v5682_v20, %v2044_v34 }
 0x3a9   : > { %v2257_v24 = vmul.f32 %v3015_v51, %v5703_v46  ;;  %v3017_v0 = vpop.eup %3016  ;;  %3028 = vtanh.f32 %v2229_v23  ;;  %v2234_v51 = vadd.f32 %v5687_v50, %v2217_v14 }
 0x3aa   : > { %v3019_v58 = vpop.eup %3018  ;;  %v2256_v54 = vmul.f32 %v3017_v0, %v5703_v46  ;;  %3030 = vtanh.f32 %v2228_v10  ;;  %v2235_v47 = vadd.f32 %v5687_v50, %v2218_v15 }
 0x3ab   : > { %v2277_v52 = vsel %vm1939_vm9, %v2257_v24, 0.0  ;;  %v2255_v2 = vmul.f32 %v3019_v58, %v5703_v46  ;;  %v3021_v56 = vpop.eup %3020  ;;  %3032 = vtanh.f32 %v2233_v30  ;;  %v2050_v58 = vpop.f32.mrf.mxu3 }
 0x3ac   : > { %2278 = vadd.xlane.f32.xlu1 %v2277_v52  ;;  %v2274_v12 = vsel %vm1939_vm9, %v2256_v54, 0.0  ;;  %v3023_v41 = vpop.eup %3022  ;;  %v2259_v21 = vmul.f32 %v3021_v56, %v5703_v46  ;;  %3034 = vtanh.f32 %v2232_v44  ;;  %v2220_v52 = vmul.f32 %v5682_v20, %v2050_v58 }
 0x3ad   : > { %2275 = vadd.xlane.f32.xlu0 %v2274_v12  ;;  %v2271_v16 = vsel %vm1939_vm9, %v2255_v2, 0.0  ;;  %v3025_v3 = vpop.eup %3024  ;;  %v2260_v37 = vmul.f32 %v3023_v41, %v5703_v46  ;;  %3036 = vtanh.f32 %v2231_v5 }
 0x3ae   : > { %2272 = vadd.xlane.f32.xlu2 %v2271_v16  ;;  %v2258_v22 = vmul.f32 %v3025_v3, %v5703_v46  ;;  %v3027_v43 = vpop.eup %3026  ;;  %v2283_v7 = vsel %vm1939_vm9, %v2259_v21, 0.0  ;;  %3038 = vtanh.f32 %v2236_v29  ;;  %v2237_v10 = vadd.f32 %v5687_v50, %v2220_v52 }
 0x3af   : > { %v2286_v19 = vsel %vm1939_vm9, %v2260_v37, 0.0  ;;  %v3029_v6 = vpop.eup %3028  ;;  %v2263_v60 = vmul.f32 %v3027_v43, %v5703_v46  ;;  %3040 = vtanh.f32 %v2235_v47 }
 0x3b0   : > { %v2280_v8 = vsel %vm1939_vm9, %v2258_v22, 0.0  ;;  %v3031_v61 = vpop.eup %3030  ;;  %v2262_v39 = vmul.f32 %v3029_v6, %v5703_v46  ;;  %3042 = vtanh.f32 %v2234_v51 }
 0x3b1   : > { %v2261_v9 = vmul.f32 %v3031_v61, %v5703_v46  ;;  %v2295_v13 = vsel %vm1939_vm9, %v2263_v60, 0.0  ;;  %v3033_v48 = vpop.eup %3032  ;;  %3044 = vtanh.f32 %v2237_v10 }
 0x3b2   : > { %v2292_v17 = vsel %vm1939_vm9, %v2262_v39, 0.0  ;;  %v3035_v27 = vpop.eup %3034  ;;  %v2266_v59 = vmul.f32 %v3033_v48, %v5703_v46 }
 0x3b3   : > { %v2289_v24 = vsel %vm1939_vm9, %v2261_v9, 0.0  ;;  %v3037_v0 = vpop.eup %3036  ;;  %v2265_v54 = vmul.f32 %v3035_v27, %v5703_v46 }
 0x3b4   : > { %2287 = vadd.xlane.f32.xlu1 %v2286_v19  ;;  %v2264_v23 = vmul.f32 %v3037_v0, %v5703_v46  ;;  %v2304_v2 = vsel %vm1939_vm9, %v2266_v59, 0.0  ;;  %v3039_v56 = vpop.eup %3038 }
 0x3b5   : > { %2284 = vadd.xlane.f32.xlu0 %v2283_v7  ;;  %v2301_v12 = vsel %vm1939_vm9, %v2265_v54, 0.0  ;;  %v3041_v41 = vpop.eup %3040  ;;  %v2269_v3 = vmul.f32 %v3039_v56, %v5703_v46 }
 0x3b6   : > { %2281 = vadd.xlane.f32.xlu2 %v2280_v8  ;;  %v2298_v40 = vsel %vm1939_vm9, %v2264_v23, 0.0  ;;  %v3043_v16 = vpop.eup %3042  ;;  %v2268_v1 = vmul.f32 %v3041_v41, %v5703_v46 }
 0x3b7   : > { %v2267_v37 = vmul.f32 %v3043_v16, %v5703_v46  ;;  %v2313_v11 = vsel %vm1939_vm9, %v2269_v3, 0.0  ;;  %v3045_v21 = vpop.eup %3044 }
 0x3b8   : > { %v2310_v50 = vsel %vm1939_vm9, %v2268_v1, 0.0  ;;  %v2270_v30 = vmul.f32 %v3045_v21, %v5703_v46 }
 0x3b9   : > { %v2307_v32 = vsel %vm1939_vm9, %v2267_v37, 0.0 }
 0x3ba   : > { %v2316_v22 = vsel %vm1939_vm9, %v2270_v30, 0.0 }
 0x3bc   : > { %2296 = vadd.xlane.f32.xlu1 %v2295_v13 }
 0x3bd   : > { %2293 = vadd.xlane.f32.xlu0 %v2292_v17 }
 0x3be   : > { %2290 = vadd.xlane.f32.xlu2 %v2289_v24 }
 0x3c4   : > { %2305 = vadd.xlane.f32.xlu1 %v2304_v2 }
 0x3c5   : > { %2302 = vadd.xlane.f32.xlu0 %v2301_v12 }
 0x3c6   : > { %2299 = vadd.xlane.f32.xlu2 %v2298_v40 }
 0x3cc   : > { %2314 = vadd.xlane.f32.xlu1 %v2313_v11 }
 0x3cd   : > { %2311 = vadd.xlane.f32.xlu0 %v2310_v50 }
 0x3ce   : > { %2308 = vadd.xlane.f32.xlu2 %v2307_v32 }
 0x3d6   : > { %2317 = vadd.xlane.f32.xlu2 %v2316_v22 }
 0x41f   : > { %v2279_v19 = vpop.xlane.xlu1 %2278 }
 0x420   : > { %v2276_v43 = vpop.xlane.xlu0 %2275 }
 0x421   : > { %v2273_v44 = vpop.xlane.xlu2 %2272 }
 0x427   : > { %v2288_v5 = vpop.xlane.xlu1 %2287 }
 0x428   : > { %v2285_v53 = vpop.xlane.xlu0 %2284  ;;  %v2320_v14 = vmax.f32 %v2276_v43, %v2288_v5 }
 0x429   : > { %v2282_v7 = vpop.xlane.xlu2 %2281  ;;  %v2319_v39 = vmax.f32 %v2273_v44, %v2285_v53 }
 0x42f   : > { %v2297_v8 = vpop.xlane.xlu1 %2296 }
 0x430   : > { %v2294_v6 = vpop.xlane.xlu0 %2293  ;;  %v2323_v46 = vmax.f32 %v2319_v39, %v2297_v8 }
 0x431   : > { %v2291_v45 = vpop.xlane.xlu2 %2290  ;;  %v2322_v9 = vmax.f32 %v2282_v7, %v2294_v6 }
 0x432   : > { %v2321_v13 = vmax.f32 %v2279_v19, %v2291_v45  ;;  %v2485_v19 = vmul.f32 0.0, %v6253_v49  ;;  %v2487_v45 = vmul.f32 0.0, %v6251_v38  ;;  %v2491_v38 = vmul.f32 0.0, %v5419_v25 }
 0x434   : > { %v2502_v8 = vsel %vm1939_vm9, %v2485_v19, 0.0 }
 0x437   : > { %v2306_v60 = vpop.xlane.xlu1 %2305 }
 0x438   : > { %v2303_v34 = vpop.xlane.xlu0 %2302  ;;  %v2326_v51 = vmax.f32 %v2322_v9, %v2306_v60  ;;  %v2506_v60 = vsel %vm1939_vm9, %v2487_v45, 0.0 }
 0x439   : > { %v2300_v61 = vpop.xlane.xlu2 %2299  ;;  %v2325_v17 = vmax.f32 %v2321_v13, %v2303_v34  ;;  %v2489_v34 = vmul.f32 0.0, %v6254_v4  ;;  %v2514_v4 = vsel %vm1939_vm9, %v2491_v38, 0.0  ;;  %v2202_v38 = vld [vmem:[%s5910_s2 + $0x12] sm:$0x1] }
 0x43a   : > { %v2324_v48 = vmax.f32 %v2320_v14, %v2300_v61  ;;  %v2488_v61 = vmul.f32 0.0, %v6252_v42  ;;  %v2492_v42 = vmul.f32 0.0, %v5481_v62 }
 0x43c   : > { %v2508_v14 = vsel %vm1939_vm9, %v2488_v61, 0.0 }
 0x43f   : > { %v2315_v47 = vpop.xlane.xlu1 %2314 }
 0x440   : > { %v2312_v29 = vpop.xlane.xlu0 %2311  ;;  %v2329_v59 = vmax.f32 %v2325_v17, %v2315_v47  ;;  %v2516_v47 = vsel %vm1939_vm9, %v2492_v42, 0.0  ;;  %v2494_v17 = vmul.f32 0.0, %v5564_v36 }
 0x441   : > { %v2309_v15 = vpop.xlane.xlu2 %2308  ;;  %v2328_v24 = vmax.f32 %v2324_v48, %v2312_v29  ;;  %v2510_v29 = vsel %vm1939_vm9, %v2489_v34, 0.0 }
 0x442   : > { %v2327_v27 = vmax.f32 %v2323_v46, %v2309_v15  ;;  %v2520_v62 = vsel %vm1939_vm9, %v2494_v17, 0.0 }
 0x444   : > { %v2331_v52 = vmax.f32 %v2327_v27, %v2328_v24  ;;  %v2495_v27 = vmul.f32 0.0, %v5637_v63 }
 0x449   : > { %v2318_v0 = vpop.xlane.xlu2 %2317 }
 0x44a   : > { %v2330_v58 = vmax.f32 %v2326_v51, %v2318_v0  ;;  %v2496_v0 = vmul.f32 0.0, %v5667_v57  ;;  %v2540_v57 = vld [vmem:[%s5911_s3 + $0x58] sm:$0xff] }
 0x44b   : > { %2556 = vmatpush.msrb.mxu3 %v2540_v57 }
 0x44c   : > { %v2332_v54 = vmax.f32 %v2329_v59, %v2330_v58  ;;  %v2497_v58 = vmul.f32 0.0, %v5596_v55 }
 0x44e   : > { %v2333_v23 = vmax.f32 %v2331_v52, %v2332_v54  ;;  %v2522_v52 = vsel %vm1939_vm9, %v2495_v27, 0.0 }
 0x450   : > { %v2334_v2 = vrot.slane %v2333_v23, 4 }
 0x452   : > { %v2335_v56 = vmax.f32 %v2333_v23, %v2334_v2  ;;  %v2498_v23 = vmul.f32 0.0, %v5655_v28  ;;  %v2526_v2 = vsel %vm1939_vm9, %v2497_v58, 0.0 }
 0x454   : > { %v2336_v10 = vrot.slane %v2335_v56, 2  ;;  %v2528_v63 = vsel %vm1939_vm9, %v2498_v23, 0.0 }
 0x456   : > { %v2337_v12 = vmax.f32 %v2335_v56, %v2336_v10 }
 0x458   : > { %v2338_v41 = vrot.slane %v2337_v12, 1 }
 0x45a   : > { %v2339_v40 = vmax.f32 %v2337_v12, %v2338_v41 }
 0x45c   : > { %2851 = vpush %v2339_v40 }
 0x48d   : > { %s2852_s10 = spop %2851 }
 0x48e   : > { %v2341_v16 = vstv %s2852_s10  ;;  %s2694_s10 = scalar_lea.hbm %s5912_s4, %s3221_s19 }
 0x48f   : > { %v2342_v3 = vsub.f32 %v2273_v44, %v2341_v16  ;;  %v2343_v1 = vsub.f32 %v2276_v43, %v2341_v16  ;;  %v2486_v43 = vmul.f32 0.0, %v6250_v31  ;;  %v2490_v31 = vmul.f32 0.0, %v5362_v18  ;;  %s2698_s13 = sshll.u32 %s2694_s10, 4  ;;  %s2699_s13 = int_to_ptr.hbm [resolvable:$true] %s2698_s13 }
 0x490   : > { %v2493_v18 = vmul.f32 0.0, %v5541_v35  ;;  %v2524_v35 = vsel %vm1939_vm9, %v2496_v0, 0.0  ;;  %s3121_s20 = sshra.s32 %s2699_s13, 4  ;;  %s3122_s20 = int_to_ptr.hbm [resolvable:$true] %s3121_s20 }
 0x491   : > { %v2358_v37 = vmul.f32 1.442695, %v2342_v3  ;;  %v2360_v11 = vmul.f32 1.442695, %v2343_v1  ;;  %v2512_v9 = vsel %vm1939_vm9, %v2490_v31, 0.0  ;;  %v2539_v1 = vld [vmem:[%s5911_s3 + $0x40] sm:$0xff]  ;;  %v2112_v31 = vpop.f32.mrf.mxu3  ;;  %p3128_p0 = scmp.lt.s32.totalorder %s3122_s20, %s5912_s4 }
 0x492   : > { %v2518_v25 = vsel %vm1939_vm9, %v2493_v18, 0.0  ;;  %2557 = vmatpush.msrb.mxu3 %v2539_v1  ;;  %s3123_s22 = scalar_lea.hbm %s3122_s20, 1 }
 0x493   : > { %3046 = vpow2.f32 %v2358_v37  ;;  %v2538_v37 = vld [vmem:[%s5911_s3 + $0x28] sm:$0xff]  ;;  %p3124_p11 = scmp.ne.s32.totalorder %s3122_s20, %s3123_s22 }
 0x494   : > { %3048 = vpow2.f32 %v2360_v11  ;;  %v2537_v11 = vld [vmem:[%s5911_s3 + $0x10] sm:$0xff]  ;;  %2558 = vmatpush.msrb.mxu3 %v2538_v37 }
 0x495   : > { %p3125_p12 = pnand %p3124_p11, %p3238_p5 }
 0x496   : > { %2559 = vmatpush.msrb.mxu3 %v2537_v11 }
 0x497   : > { %p3126_p13 = pneg %p3125_p12 }
 0x499   : > { %v3047_v50 = vpop.eup %3046 }
 0x49a   : > { %v3049_v32 = vpop.eup %3048  ;;  %v2483_v21 = vmul.f32 %v3047_v50, %v6242_v33  ;;  %v2440_v30 = vsel %vm2439_vm0, %v3047_v50, 0.0 }
 0x49b   : > { %v2484_v22 = vmul.f32 %v3049_v32, %v6247_v26  ;;  %v2441_v53 = vsel %vm2439_vm0, %v3049_v32, 0.0  ;;  %v2504_v26 = vsel %vm1939_vm9, %v2486_v43, 0.0 }
 0x49c   : > { %v2499_v5 = vsel %vm1939_vm9, %v2483_v21, 0.0  ;;  %v2442_v7 = vadd.f32 %v2441_v53, %v2440_v30 }
 0x49d   : > { %v2500_v44 = vsel %vm1939_vm9, %v2484_v22, 0.0 }
 0x49e   : > { %v2501_v6 = vadd.f32 %v2500_v44, %v2499_v5  ;;  %2471 = vadd.xlane.f32.xlu0 %v2442_v7  ;;  %v5804_v44 = vpop.f32.mrf.mxu2 }
 0x4a0   : > { %v2503_v33 = vadd.f32 %v2502_v8, %v2501_v6 }
 0x4a2   : > { %v2505_v49 = vadd.f32 %v2504_v26, %v2503_v33 }
 0x4a4   : > { %v2507_v15 = vadd.f32 %v2506_v60, %v2505_v49 }
 0x4a6   : > { %v2509_v39 = vadd.f32 %v2508_v14, %v2507_v15  ;;  %v5806_v6 = vpop.f32.mrf.mxu2 }
 0x4a8   : > { %v2511_v46 = vadd.f32 %v2510_v29, %v2509_v39  ;;  %v2115_v39 = vpop.f32.mrf.mxu3 }
 0x4aa   : > { %v2513_v13 = vadd.f32 %v2512_v9, %v2511_v46  ;;  %v2579_v9 = vmul.f32 %v5682_v20, %v2115_v39 }
 0x4ac   : > { %v2515_v48 = vadd.f32 %v2514_v4, %v2513_v13  ;;  %v2578_v4 = vmul.f32 %v5682_v20, %v2112_v31 }
 0x4ae   : > { %v2517_v51 = vadd.f32 %v2516_v47, %v2515_v48  ;;  %v5808_v45 = vpop.f32.mrf.mxu2 }
 0x4b0   : > { %v2519_v24 = vadd.f32 %v2518_v25, %v2517_v51 }
 0x4b2   : > { %v2521_v59 = vadd.f32 %v2520_v62, %v2519_v24 }
 0x4b4   : > { %v2523_v54 = vadd.f32 %v2522_v52, %v2521_v59 }
 0x4b6   : > { %v2525_v36 = vadd.f32 %v2524_v35, %v2523_v54  ;;  %v5810_v8 = vpop.f32.mrf.mxu2 }
 0x4b8   : > { %v2527_v56 = vadd.f32 %v2526_v2, %v2525_v36 }
 0x4ba   : > { %v2529_v10 = vadd.f32 %v2528_v63, %v2527_v56 }
 0x4bc   : > { %v2530_v50 = vrot.slane %v2529_v10, 4 }
 0x4be   : > { %v2531_v32 = vadd.f32 %v2530_v50, %v2529_v10  ;;  %v5812_v33 = vpop.f32.mrf.mxu2 }
 0x4bf   : > { %v2568_v37 = vmul.f32 %v5682_v20, %v5812_v33 }
 0x4c0   : > { %v2532_v21 = vrot.slane %v2531_v32, 2 }
 0x4c2   : > { %v2533_v22 = vadd.f32 %v2532_v21, %v2531_v32  ;;  %v2567_v32 = vmul.f32 %v5682_v20, %v5810_v8 }
 0x4c4   : > { %v2534_v19 = vrot.slane %v2533_v22, 1 }
 0x4c6   : > { %v2535_v7 = vadd.f32 %v2534_v19, %v2533_v22  ;;  %v2085_v61 = vpop.f32.mrf.mxu2  ;;  %v2566_v22 = vmul.f32 %v5682_v20, %v5808_v45  ;;  %v2564_v45 = vmul.f32 %v5682_v20, %v5804_v44 }
 0x4ce   : > { %v2088_v26 = vpop.f32.mrf.mxu2 }
 0x4d6   : > { %v2091_v49 = vpop.f32.mrf.mxu2 }
 0x4d7   : > { %v2571_v57 = vmul.f32 %v5682_v20, %v2091_v49 }
 0x4de   : > { %v2094_v34 = vpop.f32.mrf.mxu2 }
 0x4df   : > { %v2572_v56 = vmul.f32 %v5682_v20, %v2094_v34 }
 0x4e6   : > { %v2097_v60 = vpop.f32.mrf.mxu2 }
 0x4e7   : > { %v2573_v35 = vmul.f32 %v5682_v20, %v2097_v60 }
 0x4ee   : > { %v2100_v15 = vpop.f32.mrf.mxu2 }
 0x4ef   : > { %v2574_v52 = vmul.f32 %v5682_v20, %v2100_v15 }
 0x4f6   : > { %v2103_v14 = vpop.f32.mrf.mxu2 }
 0x4f7   : > { %v2575_v0 = vmul.f32 %v5682_v20, %v2103_v14 }
 0x4fe   : > { %v2106_v29 = vpop.f32.mrf.mxu2 }
 0x4ff   : > { %v2576_v27 = vmul.f32 %v5682_v20, %v2106_v29 }
 0x506   : > { %v2109_v51 = vpop.f32.mrf.mxu2 }
 0x507   : > { %v2577_v18 = vmul.f32 %v5682_v20, %v2109_v51 }
 0x511   : > { %v2472_v55 = vpop.xlane.xlu0 %2471 }
 0x512   : > { %v2473_v12 = vrot.slane %v2472_v55, 4 }
 0x514   : > { %v2474_v41 = vadd.f32 %v2473_v12, %v2472_v55 }
 0x516   : > { %v2475_v40 = vrot.slane %v2474_v41, 2 }
 0x518   : > { %v2476_v16 = vadd.f32 %v2475_v40, %v2474_v41  ;;  %v2570_v41 = vmul.f32 %v5682_v20, %v2088_v26  ;;  %v2204_v26 = vld [vmem:[%s5910_s2 + $0x14] sm:$0x1] }
 0x51a   : > { %v2477_v28 = vrot.slane %v2476_v16, 1 }
 0x51c   : > { %v2478_v3 = vadd.f32 %v2477_v28, %v2476_v16  ;;  %v2569_v28 = vmul.f32 %v5682_v20, %v2085_v61 }
 0x51e   : > { %2853 = vpush %v2478_v3 }
 0x54f   : > { %s2854_s27 = spop %2853 }
 0x550   : > { %v2480_v30 = vstv %s2854_s27  ;;  %s3127_s27 = scalar_lea.hbm %s5912_s4, 4 }
 0x551   : > { %3050 = vrcp.f32 %v2480_v30  ;;  %p3129_p1 = scmp.lt.s32.totalorder %s3127_s27, %s3123_s22 }
 0x553   : > { %p3130_p2 = por %p3129_p1, %p3128_p0 }
 0x555   : > { %p3131_p3 = pnand %p3130_p2, %p3126_p13 }
 0x557   : > { %v3051_v53 = vpop.eup %3050 }
 0x558   : > { %v2482_v5 = vmul.f32 %v3051_v53, %v5682_v20 }
 0x55a   : > { %v2536_v43 = vmul.f32 %v2535_v7, %v2482_v5  ;;  %v2565_v5 = vmul.f32 %v5682_v20, %v5806_v6 }
 0x55c   : > { %2817 = vmatmul.msk.f32.vlgmr.msrb.gmra.mxu3 %vm1939_vm9, %v2536_v43 }
 0x5df   : > { %v2561_v46 = vpop.f32.mrf.mxu3 }
 0x5e0   : > { %v2562_v42 = vadd.f32 %v2561_v46, %v2202_v38 }
 0x5e2   : > { %v5818_v13 = vperm.slane %v2562_v42, 0 }
 0x5e4   : > { %v2596_v48 = vadd.f32 %v5818_v13, %v2579_v9  ;;  %v2595_v47 = vadd.f32 %v5818_v13, %v2578_v4  ;;  %v2594_v17 = vadd.f32 %v5818_v13, %v2577_v18  ;;  %v2593_v24 = vadd.f32 %v5818_v13, %v2576_v27 }
 0x5e5   : > { %v2592_v59 = vadd.f32 %v5818_v13, %v2575_v0  ;;  %v2591_v54 = vadd.f32 %v5818_v13, %v2574_v52  ;;  %v2590_v36 = vadd.f32 %v5818_v13, %v2573_v35  ;;  %v2589_v63 = vadd.f32 %v5818_v13, %v2572_v56 }
 0x5e6   : > { %3052 = vtanh.f32 %v2596_v48  ;;  %v2588_v55 = vadd.f32 %v5818_v13, %v2571_v57  ;;  %v2587_v40 = vadd.f32 %v5818_v13, %v2570_v41  ;;  %v2586_v3 = vadd.f32 %v5818_v13, %v2569_v28 }
 0x5e7   : > { %3054 = vtanh.f32 %v2595_v47  ;;  %v2585_v11 = vadd.f32 %v5818_v13, %v2568_v37  ;;  %v2584_v21 = vadd.f32 %v5818_v13, %v2567_v32  ;;  %v2583_v19 = vadd.f32 %v5818_v13, %v2566_v22 }
 0x5e8   : > { %3056 = vtanh.f32 %v2594_v17  ;;  %v2582_v7 = vadd.f32 %v5818_v13, %v2565_v5  ;;  %v2581_v8 = vadd.f32 %v5818_v13, %v2564_v45 }
 0x5e9   : > { %3058 = vtanh.f32 %v2593_v24 }
 0x5ea   : > { %3060 = vtanh.f32 %v2592_v59 }
 0x5eb   : > { %3062 = vtanh.f32 %v2591_v54 }
 0x5ec   : > { %v3053_v25 = vpop.eup %3052  ;;  %3064 = vtanh.f32 %v2590_v36 }
 0x5ed   : > { %2818 = vmatpush.xpose.msk.msra.mxu3 %vm1939_vm9, %v3053_v25  ;;  %v3055_v62 = vpop.eup %3054  ;;  %3066 = vtanh.f32 %v2589_v63 }
 0x5ee   : > { %v3057_v58 = vpop.eup %3056  ;;  %3068 = vtanh.f32 %v2588_v55 }
 0x5ef   : > { %v3059_v23 = vpop.eup %3058  ;;  %3070 = vtanh.f32 %v2587_v40 }
 0x5f0   : > { %v3061_v2 = vpop.eup %3060  ;;  %3072 = vtanh.f32 %v2586_v3 }
 0x5f1   : > { %2819 = vmatpush.xpose.msk.msra.mxu3 %vm1939_vm9, %v3055_v62  ;;  %v3063_v10 = vpop.eup %3062  ;;  %3074 = vtanh.f32 %v2585_v11 }
 0x5f2   : > { %v3065_v12 = vpop.eup %3064  ;;  %3076 = vtanh.f32 %v2584_v21 }
 0x5f3   : > { %v3067_v16 = vpop.eup %3066  ;;  %3078 = vtanh.f32 %v2583_v19 }
 0x5f4   : > { %v3069_v1 = vpop.eup %3068  ;;  %3080 = vtanh.f32 %v2582_v7 }
 0x5f5   : > { %2820 = vmatpush.xpose.msk.msra.mxu3 %vm1939_vm9, %v3057_v58  ;;  %v3071_v50 = vpop.eup %3070  ;;  %3082 = vtanh.f32 %v2581_v8 }
 0x5f6   : > { %v3073_v30 = vpop.eup %3072 }
 0x5f7   : > { %v3075_v53 = vpop.eup %3074 }
 0x5f8   : > { %v3077_v43 = vpop.eup %3076 }
 0x5f9   : > { %2821 = vmatpush.xpose.msk.msra.mxu3 %vm1939_vm9, %v3059_v23  ;;  %v3079_v33 = vpop.eup %3078 }
 0x5fa   : > { %v3081_v6 = vpop.eup %3080 }
 0x5fb   : > { %v3083_v61 = vpop.eup %3082 }
 0x5fd   : > { %2822 = vmatpush.xpose.msk.msra.mxu3 %vm1939_vm9, %v3061_v2 }
 0x601   : > { %2823 = vmatpush.xpose.msk.msra.mxu3 %vm1939_vm9, %v3063_v10 }
 0x605   : > { %2824 = vmatpush.xpose.msk.msra.mxu3 %vm1939_vm9, %v3065_v12 }
 0x609   : > { %2825 = vmatpush.xpose.msk.msra.mxu3 %vm1939_vm9, %v3067_v16 }
 0x60d   : > { %2826 = vmatpush.xpose.msk.msra.mxu3 %vm1939_vm9, %v3069_v1 }
 0x611   : > { %2827 = vmatpush.xpose.msk.msra.mxu3 %vm1939_vm9, %v3071_v50 }
 0x615   : > { %2828 = vmatpush.xpose.msk.msra.mxu3 %vm1939_vm9, %v3073_v30 }
 0x619   : > { %2829 = vmatpush.xpose.msk.msra.mxu3 %vm1939_vm9, %v3075_v53 }
 0x61d   : > { %2830 = vmatpush.xpose.msk.msra.mxu3 %vm1939_vm9, %v3077_v43 }
 0x621   : > { %2831 = vmatpush.xpose.msk.msra.mxu3 %vm1939_vm9, %v3079_v33 }
 0x625   : > { %2832 = vmatpush.xpose.msk.msra.mxu3 %vm1939_vm9, %v3081_v6 }
 0x629   : > { %2833 = vmatpush.xpose.msk.msra.mxu3 %vm1939_vm9, %v3083_v61 }
 0x62c   : > { %2834 = vmatmul.msk.f32.vlgmr.msra.gmra.mxu3 %vm1939_vm9, %v2204_v26 }
 0x6af   : > { %v2681_v20 = vpop.f32.mrf.mxu3 }
 0x6b0   : > { %2684 = vst [vmem:[%s200_s11] sm:$0x1] %v2681_v20 }
 0x6b1   : > { %3134 = shalt.err (!%p3131_p3)
}
 0x6b2   : > { %2855 = dma.vmem_to_hbm [thread:$0]  (%p3238_p5), %s2697_s12, 16, %s2699_s13, %s2686_s14  }
 0x6b3 PF: > { %p2861_p4 = scmp.ge.s32.totalorder %s3169_s18, 2  ;;  %s2710_s29 = sand.u32 1, %s3157_s15  }
 0x6b4   : > { %s2711_s30 = scalar_lea.sflag [#allocation3], %s2710_s29 }
 0x6b5   : > { %p2858_p7 = pnand %p2861_p4, %p3242_p6 }
 0x6b7   : > { %p2859_p8 = pneg %p2858_p7 }
 0x6b9   : > { %3152 = dma.done.wait (%p2859_p8), %s2711_s30, 16  }
 0x6ba   : > { %3154 = vsyncadd (%p2859_p8), %s2711_s30, 4294967280  ;;  %p14_p9 = scmp.ge.s32.totalorder %s3225_s21, 6   ;;  %s6257_s15 = smov %s3161_s16 }
 0x6bb   : > { %s6258_s16 = smov %s3165_s17  ;;  %s6259_s17 = smov %s3236_s24 }
 0x6bc   : > { %s6260_s18 = smov %s3225_s21  ;;  %16 = sbr.rel (!%p14_p9) target bundleno = 3 (0x3), region = 74 }
 0x6c1   :  { %2716 = vsyncpa [#allocation3], 1 }
 0x6c2   :  { %2718 = vsyncpa [#allocation3 + $0x1], 1 }

</bundles_post_ra>
